<compile_context>
chip_gen: v5e
topology: v5e:2x2
jax: 0.10.0
libtpu: 0.0.40
codegen_flags: <defaults>
</compile_context>

<pallas_src>
import jax
import jax.numpy as jnp
from jax.experimental import pallas as pl
from jax.experimental.pallas import tpu as pltpu

D_IN = 6 * 6 * 64   # 2304 = 18 * 128  (lane-aligned contraction dim)
D_H1 = 384          # 3 * 128
D_H2 = 192
D_OUT = 10


def _mlp_kernel(x_ref, w1_ref, b1_ref, w2_ref, b2_ref, w3_ref, b3_ref, o_ref):
    # x_ref: (Bt, 2304); weights pre-transposed to (in, out); biases (1, out).
    x = x_ref[...]
    h1 = jnp.dot(x, w1_ref[...], preferred_element_type=jnp.float32) + b1_ref[...]
    h1 = jnp.maximum(h1, 0.0)                                   # ReLU (VPU)
    h2 = jnp.dot(h1, w2_ref[...], preferred_element_type=jnp.float32) + b2_ref[...]
    h2 = jnp.maximum(h2, 0.0)                                   # ReLU (VPU)
    logits = jnp.dot(h2, w3_ref[...], preferred_element_type=jnp.float32) + b3_ref[...]
    # log_softmax along the class axis (numerically stable).
    m = jnp.max(logits, axis=-1, keepdims=True)
    s = logits - m
    lse = jnp.log(jnp.sum(jnp.exp(s), axis=-1, keepdims=True))
    o_ref[...] = s - lse


def server_model_forward(x, w1, b1, w2, b2, w3, b3, *, bt=128):
    """x: (B, 2304) float32. Weights in PyTorch (out, in) layout, biases (out,)."""
    B, D = x.shape
    assert D == D_IN, (B, D)
    # Batch tile: multiple of 8 (sublane granularity), capped at `bt`.
    bt = min(bt, max(8, ((B + 7) // 8) * 8))
    Bp = pl.cdiv(B, bt) * bt
    if Bp != B:
        x = jnp.pad(x, ((0, Bp - B), (0, 0)))

    # Pre-transpose weights once in the wrapper: (out, in) -> (in, out).
    w1t = jnp.transpose(w1)            # (2304, 384)
    w2t = jnp.transpose(w2)            # (384, 192)
    w3t = jnp.transpose(w3)            # (192, 10)
    b1r = b1.reshape(1, D_H1)
    b2r = b2.reshape(1, D_H2)
    b3r = b3.reshape(1, D_OUT)

    flops = 2 * Bp * (D_IN * D_H1 + D_H1 * D_H2 + D_H2 * D_OUT)
    bytes_accessed = 4 * (Bp * D_IN + D_IN * D_H1 + D_H1
                          + D_H1 * D_H2 + D_H2 + D_H2 * D_OUT + D_OUT
                          + Bp * D_OUT)

    out = pl.pallas_call(
        _mlp_kernel,
        out_shape=jax.ShapeDtypeStruct((Bp, D_OUT), jnp.float32),
        grid_spec=pltpu.PrefetchScalarGridSpec(
            num_scalar_prefetch=0,
            grid=(Bp // bt,),
            in_specs=[
                pl.BlockSpec((bt, D_IN), lambda i: (i, 0)),      # x batch tile
                pl.BlockSpec((D_IN, D_H1), lambda i: (0, 0)),    # W1 (resident)
                pl.BlockSpec((1, D_H1), lambda i: (0, 0)),       # b1
                pl.BlockSpec((D_H1, D_H2), lambda i: (0, 0)),    # W2
                pl.BlockSpec((1, D_H2), lambda i: (0, 0)),       # b2
                pl.BlockSpec((D_H2, D_OUT), lambda i: (0, 0)),   # W3
                pl.BlockSpec((1, D_OUT), lambda i: (0, 0)),      # b3
            ],
            out_specs=pl.BlockSpec((bt, D_OUT), lambda i: (i, 0)),
        ),
        compiler_params=pltpu.CompilerParams(
            dimension_semantics=("parallel",)),
        cost_estimate=pl.CostEstimate(
            flops=flops,
            transcendentals=Bp * D_OUT,          # exp in log_softmax
            bytes_accessed=bytes_accessed),
    )(x, w1t, b1r, w2t, b2r, w3t, b3r)
    return out[:B]


def _reference(x, w1, b1, w2, b2, w3, b3):
    h1 = jax.nn.relu(x @ w1.T + b1)
    h2 = jax.nn.relu(h1 @ w2.T + b2)
    return jax.nn.log_softmax(h2 @ w3.T + b3, axis=1)


if __name__ == "__main__":
    key = jax.random.PRNGKey(0)
    ks = jax.random.split(key, 7)

    B = 8
    x = jax.random.normal(ks[0], (B, D_IN), dtype=jnp.float32)

    # PyTorch-like fan-in uniform init (deterministic).
    def uinit(k, shape, fan_in):
        s = 1.0 / float(fan_in) ** 0.5
        return jax.random.uniform(k, shape, jnp.float32, -s, s)

    w1 = uinit(ks[1], (D_H1, D_IN), D_IN)
    b1 = uinit(ks[2], (D_H1,), D_IN)
    w2 = uinit(ks[3], (D_H2, D_H1), D_H1)
    b2 = uinit(ks[4], (D_H2,), D_H1)
    w3 = uinit(ks[5], (D_OUT, D_H2), D_H2)
    b3 = uinit(ks[6], (D_OUT,), D_H2)

    out = jax.block_until_ready(server_model_forward(x, w1, b1, w2, b2, w3, b3))
    ref = jax.block_until_ready(_reference(x, w1, b1, w2, b2, w3, b3))

    assert out.shape == (B, D_OUT), out.shape
    max_err = float(jnp.max(jnp.abs(out - ref)))
    assert jnp.allclose(out, ref, atol=1e-3, rtol=1e-3), f"mismatch vs reference ({max_err})"
    assert jnp.allclose(jnp.sum(jnp.exp(out), axis=1), 1.0, atol=1e-4), "log_softmax not normalized"
    print("KERNEL_OK")
</pallas_src>

<mosaic_0001>
module attributes {stable_mosaic.version = 11 : i64} {
  func.func @_mlp_kernel(%arg0: i32, %arg1: memref<8x2304xf32, #tpu.memory_space<vmem>>, %arg2: memref<2304x384xf32, #tpu.memory_space<vmem>>, %arg3: memref<1x384xf32, #tpu.memory_space<vmem>>, %arg4: memref<384x192xf32, #tpu.memory_space<vmem>>, %arg5: memref<1x192xf32, #tpu.memory_space<vmem>>, %arg6: memref<192x10xf32, #tpu.memory_space<vmem>>, %arg7: memref<1x10xf32, #tpu.memory_space<vmem>>, %arg8: memref<8x10xf32, #tpu.memory_space<vmem>>) attributes {dimension_semantics = [#tpu.dimension_semantics<parallel>], iteration_bounds = array<i64: 1>, scalar_prefetch = 0 : i64, scratch_operands = 0 : i64, tpu.core_type = #tpu.core_type<tc>, window_params = [{transform_indices = @transform_0, window_bounds = array<i64: 8, 2304>}, {pipeline_mode = #tpu.pipeline_mode<synchronous>, transform_indices = @transform_1, window_bounds = array<i64: 2304, 384>}, {pipeline_mode = #tpu.pipeline_mode<synchronous>, transform_indices = @transform_2, window_bounds = array<i64: 1, 384>}, {pipeline_mode = #tpu.pipeline_mode<synchronous>, transform_indices = @transform_3, window_bounds = array<i64: 384, 192>}, {pipeline_mode = #tpu.pipeline_mode<synchronous>, transform_indices = @transform_4, window_bounds = array<i64: 1, 192>}, {pipeline_mode = #tpu.pipeline_mode<synchronous>, transform_indices = @transform_5, window_bounds = array<i64: 192, 10>}, {pipeline_mode = #tpu.pipeline_mode<synchronous>, transform_indices = @transform_6, window_bounds = array<i64: 1, 10>}, {transform_indices = @transform_7, window_bounds = array<i64: 8, 10>}]} {
    %c0 = arith.constant 0 : index
    %c0_0 = arith.constant 0 : index
    %0 = vector.load %arg1[%c0, %c0_0] : memref<8x2304xf32, #tpu.memory_space<vmem>>, vector<8x2304xf32>
    %c0_1 = arith.constant 0 : index
    %c0_2 = arith.constant 0 : index
    %1 = vector.load %arg2[%c0_1, %c0_2] : memref<2304x384xf32, #tpu.memory_space<vmem>>, vector<2304x384xf32>
    %cst = arith.constant dense<0.000000e+00> : vector<8x384xf32>
    %2 = tpu.matmul %0, %1, %cst {dimension_numbers = #tpu.dot_dimension_numbers<[1], [0], [0], [1], [0, 0, 1, 1], [], []>} : vector<8x2304xf32>, vector<2304x384xf32>, vector<8x384xf32> -> vector<8x384xf32>
    %c0_3 = arith.constant 0 : index
    %c0_4 = arith.constant 0 : index
    %3 = vector.load %arg3[%c0_3, %c0_4] : memref<1x384xf32, #tpu.memory_space<vmem>>, vector<1x384xf32>
    %4 = vector.broadcast %3 : vector<1x384xf32> to vector<8x384xf32>
    %5 = arith.addf %2, %4 : vector<8x384xf32>
    %cst_5 = arith.constant 0.000000e+00 : f32
    %6 = vector.broadcast %cst_5 : f32 to vector<8x384xf32>
    %7 = arith.maximumf %5, %6 : vector<8x384xf32>
    %c0_6 = arith.constant 0 : index
    %c0_7 = arith.constant 0 : index
    %8 = vector.load %arg4[%c0_6, %c0_7] : memref<384x192xf32, #tpu.memory_space<vmem>>, vector<384x192xf32>
    %cst_8 = arith.constant dense<0.000000e+00> : vector<8x192xf32>
    %9 = tpu.matmul %7, %8, %cst_8 {dimension_numbers = #tpu.dot_dimension_numbers<[1], [0], [0], [1], [0, 0, 1, 1], [], []>} : vector<8x384xf32>, vector<384x192xf32>, vector<8x192xf32> -> vector<8x192xf32>
    %c0_9 = arith.constant 0 : index
    %c0_10 = arith.constant 0 : index
    %10 = vector.load %arg5[%c0_9, %c0_10] : memref<1x192xf32, #tpu.memory_space<vmem>>, vector<1x192xf32>
    %11 = vector.broadcast %10 : vector<1x192xf32> to vector<8x192xf32>
    %12 = arith.addf %9, %11 : vector<8x192xf32>
    %cst_11 = arith.constant 0.000000e+00 : f32
    %13 = vector.broadcast %cst_11 : f32 to vector<8x192xf32>
    %14 = arith.maximumf %12, %13 : vector<8x192xf32>
    %c0_12 = arith.constant 0 : index
    %c0_13 = arith.constant 0 : index
    %15 = vector.load %arg6[%c0_12, %c0_13] : memref<192x10xf32, #tpu.memory_space<vmem>>, vector<192x10xf32>
    %cst_14 = arith.constant dense<0.000000e+00> : vector<8x10xf32>
    %16 = tpu.matmul %14, %15, %cst_14 {dimension_numbers = #tpu.dot_dimension_numbers<[1], [0], [0], [1], [0, 0, 1, 1], [], []>} : vector<8x192xf32>, vector<192x10xf32>, vector<8x10xf32> -> vector<8x10xf32>
    %c0_15 = arith.constant 0 : index
    %c0_16 = arith.constant 0 : index
    %17 = vector.load %arg7[%c0_15, %c0_16] : memref<1x10xf32, #tpu.memory_space<vmem>>, vector<1x10xf32>
    %18 = vector.broadcast %17 : vector<1x10xf32> to vector<8x10xf32>
    %19 = arith.addf %16, %18 : vector<8x10xf32>
    %cst_17 = arith.constant dense<0xFF800000> : vector<8xf32>
    %20 = vector.multi_reduction <maximumf>, %19, %cst_17 [1] : vector<8x10xf32> to vector<8xf32>
    %21 = vector.shape_cast %20 : vector<8xf32> to vector<8x1xf32>
    %22 = vector.broadcast %21 : vector<8x1xf32> to vector<8x10xf32>
    %23 = arith.subf %19, %22 : vector<8x10xf32>
    %24 = math.exp %23 : vector<8x10xf32>
    %cst_18 = arith.constant dense<0.000000e+00> : vector<8xf32>
    %25 = vector.multi_reduction <add>, %24, %cst_18 [1] : vector<8x10xf32> to vector<8xf32>
    %26 = vector.shape_cast %25 : vector<8xf32> to vector<8x1xf32>
    %27 = math.log %26 : vector<8x1xf32>
    %28 = vector.broadcast %27 : vector<8x1xf32> to vector<8x10xf32>
    %29 = arith.subf %23, %28 : vector<8x10xf32>
    %c0_19 = arith.constant 0 : index
    %c0_20 = arith.constant 0 : index
    %30 = vector.load %arg8[%c0_19, %c0_20] : memref<8x10xf32, #tpu.memory_space<vmem>>, vector<8x10xf32>
    tpu.vector_store %arg8[%c0_19, %c0_20], %29 {strides = array<i32>} : memref<8x10xf32, #tpu.memory_space<vmem>>, vector<8x10xf32>,
    return
  }
  func.func @transform_0(%arg0: i32) -> (i32, i32) {
    %c0_i32 = arith.constant 0 : i32
    %c0_i32_0 = arith.constant 0 : i32
    return %arg0, %c0_i32 : i32, i32
  }
  func.func @transform_1(%arg0: i32) -> (i32, i32) {
    %c0_i32 = arith.constant 0 : i32
    %c0_i32_0 = arith.constant 0 : i32
    %c0_i32_1 = arith.constant 0 : i32
    return %c0_i32, %c0_i32_0 : i32, i32
  }
  func.func @transform_2(%arg0: i32) -> (i32, i32) {
    %c0_i32 = arith.constant 0 : i32
    %c0_i32_0 = arith.constant 0 : i32
    %c0_i32_1 = arith.constant 0 : i32
    return %c0_i32, %c0_i32_0 : i32, i32
  }
  func.func @transform_3(%arg0: i32) -> (i32, i32) {
    %c0_i32 = arith.constant 0 : i32
    %c0_i32_0 = arith.constant 0 : i32
    %c0_i32_1 = arith.constant 0 : i32
    return %c0_i32, %c0_i32_0 : i32, i32
  }
  func.func @transform_4(%arg0: i32) -> (i32, i32) {
    %c0_i32 = arith.constant 0 : i32
    %c0_i32_0 = arith.constant 0 : i32
    %c0_i32_1 = arith.constant 0 : i32
    return %c0_i32, %c0_i32_0 : i32, i32
  }
  func.func @transform_5(%arg0: i32) -> (i32, i32) {
    %c0_i32 = arith.constant 0 : i32
    %c0_i32_0 = arith.constant 0 : i32
    %c0_i32_1 = arith.constant 0 : i32
    return %c0_i32, %c0_i32_0 : i32, i32
  }
  func.func @transform_6(%arg0: i32) -> (i32, i32) {
    %c0_i32 = arith.constant 0 : i32
    %c0_i32_0 = arith.constant 0 : i32
    %c0_i32_1 = arith.constant 0 : i32
    return %c0_i32, %c0_i32_0 : i32, i32
  }
  func.func @transform_7(%arg0: i32) -> (i32, i32) {
    %c0_i32 = arith.constant 0 : i32
    %c0_i32_0 = arith.constant 0 : i32
    return %arg0, %c0_i32 : i32, i32
  }
}

</mosaic_0001>

<bundles_post_ra>
// kernel: tpu_custom_call.1
= control target key start
LH: loop header
LB: loop body
LE: loop exit
PB: predicated region body
PF: predicated region fallthrough
CT: control target
= control target key end

     0   :  { %12 = vsyncpa [#allocation3], 0  ;;  %s3103_s0 = inlined_call_operand.hbm [shape: f32[8,2304], index: 0, kind: input, shape index: {}]   ;;  %s3104_s1 = inlined_call_operand.hbm [shape: f32[2304,384], index: 1, kind: input, shape index: {}]   ;;  %s3105_s2 = inlined_call_operand.hbm [shape: f32[1,384], index: 2, kind: input, shape index: {}]   ;;  %s3106_s3 = inlined_call_operand.vmem [shape: f32[384,192], index: 3, kind: input, shape index: {}]   ;;  %s3107_s4 = inlined_call_operand.hbm [shape: f32[1,192], index: 4, kind: input, shape index: {}]   ;;  %s3108_s5 = inlined_call_operand.vmem [shape: f32[192,10], index: 5, kind: input, shape index: {}]   ;;  %s3109_s6 = inlined_call_operand.hbm [shape: f32[1,10], index: 6, kind: input, shape index: {}]   ;;  %s3110_s7 = inlined_call_operand.hbm [shape: f32[8,10], index: 7, kind: output, shape index: {}]  }
   0x1   :  { %13 = vsyncpa [#allocation6], 0 }
   0x2   :  { %14 = vsyncpa [#allocation9], 0  ;;  %s31_s26 = sshll.u32 %s3104_s1, 4  ;;  %s32_s26 = int_to_ptr.hbm [resolvable:$true] %s31_s26 }
   0x3   :  { %15 = vsyncpa [#allocation4], 0  ;;  %s2601_s27 = smov [#allocation5]   ;;  %s58_s8 = sshll.u32 %s3107_s4, 4  ;;  %s59_s8 = int_to_ptr.hbm [resolvable:$true] %s58_s8 }
   0x4   :  { %s33_s28 = sshll.u32 %s2601_s27, 4  ;;  %s2602_s9 = smov 384   ;;  %s34_s28 = int_to_ptr.vmem [resolvable:$true] %s33_s28 }
   0x5   :  { %s2603_s10 = smov 24   ;;  %s2604_s11 = smov [#allocation8]  }
   0x6   :  { %39 = dma.hbm_to_vmem [thread:$0]  %s32_s26, 110592, %s34_s28, [#allocation6], %s2602_s9, %s2602_s9, %s2603_s10  }
   0x7   :  { %s60_s12 = sshll.u32 %s2604_s11, 4  ;;  %s21_s15 = sshll.u32 %s3103_s0, 4  ;;  %s61_s12 = int_to_ptr.vmem [resolvable:$true] %s60_s12  ;;  %s22_s15 = int_to_ptr.hbm [resolvable:$true] %s21_s15 }
   0x8   :  { %63 = dma.hbm_to_vmem [thread:$0]  %s59_s8, 32, %s61_s12, [#allocation9]  }
   0x9   :  { %s45_s17 = sshll.u32 %s3105_s2, 4  ;;  %s2605_s18 = smov [#allocation2]   ;;  %s46_s17 = int_to_ptr.hbm [resolvable:$true] %s45_s17 }
   0xa   :  { %s23_s19 = sshll.u32 %s2605_s18, 4  ;;  %s2606_s4 = smov [#allocation7]   ;;  %s24_s19 = int_to_ptr.vmem [resolvable:$true] %s23_s19 }
   0xb   :  { %26 = dma.hbm_to_vmem [thread:$0]  %s22_s15, 2304, %s24_s19, [#allocation3]  }
   0xc   :  { %s47_s20 = sshll.u32 %s2606_s4, 4  ;;  %s71_s23 = sshll.u32 %s3109_s6, 4  ;;  %s48_s20 = int_to_ptr.vmem [resolvable:$true] %s47_s20  ;;  %s72_s23 = int_to_ptr.hbm [resolvable:$true] %s71_s23 }
   0xd   :  { %50 = dma.hbm_to_vmem [thread:$0]  %s46_s17, 48, %s48_s20, [#allocation6]  }
   0xe   :  { %s2607_s0 = smov [#allocation10]  }
   0xf   :  { %s73_s24 = sshll.u32 %s2607_s0, 4  ;;  %s74_s24 = int_to_ptr.vmem [resolvable:$true] %s73_s24 }
  0x10   :  { %76 = dma.hbm_to_vmem [thread:$0]  %s72_s23, 16, %s74_s24, [#allocation9]  }
  0x11   :  { %2593 = dma.done.wait [#allocation3], 2304  }
  0x12   :  { %2594 = vsyncadd [#allocation3], 4294964992 }
  0x13   :  { %2595 = dma.done.wait [#allocation6], 110640  }
  0x14   :  { %2596 = vsyncadd [#allocation6], 4294856656 }
  0x15   :  { %2597 = dma.done.wait [#allocation9], 48  }
  0x16   :  { %2598 = vsyncadd [#allocation9], 4294967248  ;;  %v160_v0 = vld [vmem:[#allocation5 + $0x168] sm:$0xff]  ;;  %v157_v4 = vld [vmem:[#allocation5 + $0x150] sm:$0xff]  ;;  %vm2322_vm0 = vcmask 523264   ;;  %vm2366_vm1 = vcmask 80896  }
  0x17   :  { %v208_v1 = vld [vmem:[#allocation5 + $0x2e8] sm:$0xff]  ;;  %987 = vmatpush.msra.mxu0 %v160_v0  ;;  %v205_v5 = vld [vmem:[#allocation5 + $0x2d0] sm:$0xff]  ;;  %v154_v8 = vld [vmem:[#allocation5 + $0x138] sm:$0xff]  ;;  %s2387_s16 = sshll.u32 %s3110_s7, 4  ;;  %s2388_s16 = int_to_ptr.hbm [resolvable:$true] %s2387_s16 }
  0x18   :  { %v256_v2 = vld [vmem:[#allocation5 + $0x468] sm:$0xff]  ;;  %1007 = vmatpush.msra.mxu1 %v208_v1  ;;  %v253_v6 = vld [vmem:[#allocation5 + $0x450] sm:$0xff]  ;;  %v202_v9 = vld [vmem:[#allocation5 + $0x2b8] sm:$0xff] }
  0x19   :  { %v304_v3 = vld [vmem:[#allocation5 + $0x5e8] sm:$0xff]  ;;  %1027 = vmatpush.msra.mxu2 %v256_v2  ;;  %v301_v7 = vld [vmem:[#allocation5 + $0x5d0] sm:$0xff]  ;;  %988 = vmatpush.msra.mxu0 %v157_v4  ;;  %v250_v10 = vld [vmem:[#allocation5 + $0x438] sm:$0xff] }
  0x1a   :  { %1047 = vmatpush.msra.mxu3 %v304_v3  ;;  %1008 = vmatpush.msra.mxu1 %v205_v5  ;;  %v298_v11 = vld [vmem:[#allocation5 + $0x5b8] sm:$0xff]  ;;  %v151_v12 = vld [vmem:[#allocation5 + $0x120] sm:$0xff]  ;;  %v148_v16 = vld [vmem:[#allocation5 + $0x108] sm:$0xff] }
  0x1b   :  { %1028 = vmatpush.msra.mxu2 %v253_v6  ;;  %v199_v13 = vld [vmem:[#allocation5 + $0x2a0] sm:$0xff]  ;;  %989 = vmatpush.msra.mxu0 %v154_v8  ;;  %v196_v17 = vld [vmem:[#allocation5 + $0x288] sm:$0xff]  ;;  %v145_v20 = vld [vmem:[#allocation5 + $0xf0] sm:$0xff] }
  0x1c   :  { %1048 = vmatpush.msra.mxu3 %v301_v7  ;;  %1009 = vmatpush.msra.mxu1 %v202_v9  ;;  %v247_v14 = vld [vmem:[#allocation5 + $0x420] sm:$0xff]  ;;  %v244_v18 = vld [vmem:[#allocation5 + $0x408] sm:$0xff]  ;;  %v193_v21 = vld [vmem:[#allocation5 + $0x270] sm:$0xff] }
  0x1d   :  { %v295_v15 = vld [vmem:[#allocation5 + $0x5a0] sm:$0xff]  ;;  %1029 = vmatpush.msra.mxu2 %v250_v10  ;;  %990 = vmatpush.msra.mxu0 %v151_v12  ;;  %v292_v19 = vld [vmem:[#allocation5 + $0x588] sm:$0xff]  ;;  %v241_v22 = vld [vmem:[#allocation5 + $0x3f0] sm:$0xff] }
  0x1e   :  { %1049 = vmatpush.msra.mxu3 %v298_v11  ;;  %1010 = vmatpush.msra.mxu1 %v199_v13  ;;  %v289_v23 = vld [vmem:[#allocation5 + $0x570] sm:$0xff]  ;;  %v142_v24 = vld [vmem:[#allocation5 + $0xd8] sm:$0xff]  ;;  %v139_v28 = vld [vmem:[#allocation5 + $0xc0] sm:$0xff] }
  0x1f   :  { %1030 = vmatpush.msra.mxu2 %v247_v14  ;;  %991 = vmatpush.msra.mxu0 %v148_v16  ;;  %v190_v25 = vld [vmem:[#allocation5 + $0x258] sm:$0xff]  ;;  %v187_v29 = vld [vmem:[#allocation5 + $0x240] sm:$0xff]  ;;  %v136_v32 = vld [vmem:[#allocation5 + $0xa8] sm:$0xff] }
  0x20   :  { %1050 = vmatpush.msra.mxu3 %v295_v15  ;;  %1011 = vmatpush.msra.mxu1 %v196_v17  ;;  %v238_v26 = vld [vmem:[#allocation5 + $0x3d8] sm:$0xff]  ;;  %v235_v30 = vld [vmem:[#allocation5 + $0x3c0] sm:$0xff]  ;;  %v184_v33 = vld [vmem:[#allocation5 + $0x228] sm:$0xff] }
  0x21   :  { %1031 = vmatpush.msra.mxu2 %v244_v18  ;;  %992 = vmatpush.msra.mxu0 %v145_v20  ;;  %v286_v27 = vld [vmem:[#allocation5 + $0x558] sm:$0xff]  ;;  %v283_v31 = vld [vmem:[#allocation5 + $0x540] sm:$0xff]  ;;  %v232_v34 = vld [vmem:[#allocation5 + $0x3a8] sm:$0xff] }
  0x22   :  { %1051 = vmatpush.msra.mxu3 %v292_v19  ;;  %1012 = vmatpush.msra.mxu1 %v193_v21  ;;  %v280_v35 = vld [vmem:[#allocation5 + $0x528] sm:$0xff]  ;;  %v133_v36 = vld [vmem:[#allocation5 + $0x90] sm:$0xff]  ;;  %v130_v40 = vld [vmem:[#allocation5 + $0x78] sm:$0xff] }
  0x23   :  { %1032 = vmatpush.msra.mxu2 %v241_v22  ;;  %993 = vmatpush.msra.mxu0 %v142_v24  ;;  %v181_v37 = vld [vmem:[#allocation5 + $0x210] sm:$0xff]  ;;  %v178_v41 = vld [vmem:[#allocation5 + $0x1f8] sm:$0xff]  ;;  %v127_v44 = vld [vmem:[#allocation5 + $0x60] sm:$0xff] }
  0x24   :  { %1052 = vmatpush.msra.mxu3 %v289_v23  ;;  %1013 = vmatpush.msra.mxu1 %v190_v25  ;;  %v229_v38 = vld [vmem:[#allocation5 + $0x390] sm:$0xff]  ;;  %v226_v42 = vld [vmem:[#allocation5 + $0x378] sm:$0xff]  ;;  %v175_v45 = vld [vmem:[#allocation5 + $0x1e0] sm:$0xff] }
  0x25   :  { %1033 = vmatpush.msra.mxu2 %v238_v26  ;;  %994 = vmatpush.msra.mxu0 %v139_v28  ;;  %v277_v39 = vld [vmem:[#allocation5 + $0x510] sm:$0xff]  ;;  %v274_v43 = vld [vmem:[#allocation5 + $0x4f8] sm:$0xff]  ;;  %v223_v46 = vld [vmem:[#allocation5 + $0x360] sm:$0xff] }
  0x26   :  { %1053 = vmatpush.msra.mxu3 %v286_v27  ;;  %1014 = vmatpush.msra.mxu1 %v187_v29  ;;  %v271_v47 = vld [vmem:[#allocation5 + $0x4e0] sm:$0xff]  ;;  %v124_v48 = vld [vmem:[#allocation5 + $0x48] sm:$0xff]  ;;  %v121_v52 = vld [vmem:[#allocation5 + $0x30] sm:$0xff] }
  0x27   :  { %1034 = vmatpush.msra.mxu2 %v235_v30  ;;  %995 = vmatpush.msra.mxu0 %v136_v32  ;;  %v172_v49 = vld [vmem:[#allocation5 + $0x1c8] sm:$0xff]  ;;  %v169_v53 = vld [vmem:[#allocation5 + $0x1b0] sm:$0xff]  ;;  %v118_v56 = vld [vmem:[#allocation5 + $0x18] sm:$0xff] }
  0x28   :  { %1054 = vmatpush.msra.mxu3 %v283_v31  ;;  %1015 = vmatpush.msra.mxu1 %v184_v33  ;;  %v220_v50 = vld [vmem:[#allocation5 + $0x348] sm:$0xff]  ;;  %v217_v54 = vld [vmem:[#allocation5 + $0x330] sm:$0xff]  ;;  %v166_v57 = vld [vmem:[#allocation5 + $0x198] sm:$0xff] }
  0x29   :  { %1035 = vmatpush.msra.mxu2 %v232_v34  ;;  %996 = vmatpush.msra.mxu0 %v133_v36  ;;  %v268_v51 = vld [vmem:[#allocation5 + $0x4c8] sm:$0xff]  ;;  %v265_v55 = vld [vmem:[#allocation5 + $0x4b0] sm:$0xff]  ;;  %v214_v58 = vld [vmem:[#allocation5 + $0x318] sm:$0xff] }
  0x2a   :  { %1055 = vmatpush.msra.mxu3 %v280_v35  ;;  %1016 = vmatpush.msra.mxu1 %v181_v37  ;;  %v262_v59 = vld [vmem:[#allocation5 + $0x498] sm:$0xff]  ;;  %v115_v60 = vld [vmem:[#allocation5] sm:$0xff]  ;;  %v352_v0 = vld [vmem:[#allocation5 + $0x768] sm:$0xff] }
  0x2b   :  { %1036 = vmatpush.msra.mxu2 %v229_v38  ;;  %997 = vmatpush.msra.mxu0 %v130_v40  ;;  %v163_v61 = vld [vmem:[#allocation5 + $0x180] sm:$0xff]  ;;  %v400_v1 = vld [vmem:[#allocation5 + $0x8e8] sm:$0xff]  ;;  %v349_v4 = vld [vmem:[#allocation5 + $0x750] sm:$0xff] }
  0x2c   :  { %1056 = vmatpush.msra.mxu3 %v277_v39  ;;  %1017 = vmatpush.msra.mxu1 %v178_v41  ;;  %v211_v62 = vld [vmem:[#allocation5 + $0x300] sm:$0xff]  ;;  %v448_v2 = vld [vmem:[#allocation5 + $0xa68] sm:$0xff]  ;;  %v397_v5 = vld [vmem:[#allocation5 + $0x8d0] sm:$0xff] }
  0x2d   :  { %1037 = vmatpush.msra.mxu2 %v226_v42  ;;  %998 = vmatpush.msra.mxu0 %v127_v44  ;;  %v259_v63 = vld [vmem:[#allocation5 + $0x480] sm:$0xff]  ;;  %v496_v3 = vld [vmem:[#allocation5 + $0xbe8] sm:$0xff]  ;;  %v445_v6 = vld [vmem:[#allocation5 + $0xa50] sm:$0xff] }
  0x2e   :  { %1057 = vmatpush.msra.mxu3 %v274_v43  ;;  %1018 = vmatpush.msra.mxu1 %v175_v45  ;;  %v493_v7 = vld [vmem:[#allocation5 + $0xbd0] sm:$0xff]  ;;  %v346_v8 = vld [vmem:[#allocation5 + $0x738] sm:$0xff]  ;;  %v343_v12 = vld [vmem:[#allocation5 + $0x720] sm:$0xff] }
  0x2f   :  { %1038 = vmatpush.msra.mxu2 %v223_v46  ;;  %999 = vmatpush.msra.mxu0 %v124_v48  ;;  %v394_v9 = vld [vmem:[#allocation5 + $0x8b8] sm:$0xff]  ;;  %v391_v13 = vld [vmem:[#allocation5 + $0x8a0] sm:$0xff]  ;;  %v340_v16 = vld [vmem:[#allocation5 + $0x708] sm:$0xff] }
  0x30   :  { %1058 = vmatpush.msra.mxu3 %v271_v47  ;;  %1019 = vmatpush.msra.mxu1 %v172_v49  ;;  %v442_v10 = vld [vmem:[#allocation5 + $0xa38] sm:$0xff]  ;;  %v439_v14 = vld [vmem:[#allocation5 + $0xa20] sm:$0xff]  ;;  %v388_v17 = vld [vmem:[#allocation5 + $0x888] sm:$0xff] }
  0x31   :  { %1039 = vmatpush.msra.mxu2 %v220_v50  ;;  %1000 = vmatpush.msra.mxu0 %v121_v52  ;;  %v490_v11 = vld [vmem:[#allocation5 + $0xbb8] sm:$0xff]  ;;  %v487_v15 = vld [vmem:[#allocation5 + $0xba0] sm:$0xff]  ;;  %v436_v18 = vld [vmem:[#allocation5 + $0xa08] sm:$0xff] }
  0x32   :  { %1059 = vmatpush.msra.mxu3 %v268_v51  ;;  %1020 = vmatpush.msra.mxu1 %v169_v53  ;;  %v484_v19 = vld [vmem:[#allocation5 + $0xb88] sm:$0xff]  ;;  %v337_v20 = vld [vmem:[#allocation5 + $0x6f0] sm:$0xff]  ;;  %v334_v24 = vld [vmem:[#allocation5 + $0x6d8] sm:$0xff] }
  0x33   :  { %1040 = vmatpush.msra.mxu2 %v217_v54  ;;  %1001 = vmatpush.msra.mxu0 %v118_v56  ;;  %v385_v21 = vld [vmem:[#allocation5 + $0x870] sm:$0xff]  ;;  %v382_v25 = vld [vmem:[#allocation5 + $0x858] sm:$0xff]  ;;  %v331_v28 = vld [vmem:[#allocation5 + $0x6c0] sm:$0xff] }
  0x34   :  { %1060 = vmatpush.msra.mxu3 %v265_v55  ;;  %1021 = vmatpush.msra.mxu1 %v166_v57  ;;  %v433_v22 = vld [vmem:[#allocation5 + $0x9f0] sm:$0xff]  ;;  %v430_v26 = vld [vmem:[#allocation5 + $0x9d8] sm:$0xff]  ;;  %v379_v29 = vld [vmem:[#allocation5 + $0x840] sm:$0xff] }
  0x35   :  { %1041 = vmatpush.msra.mxu2 %v214_v58  ;;  %1002 = vmatpush.msra.mxu0 %v115_v60  ;;  %v481_v23 = vld [vmem:[#allocation5 + $0xb70] sm:$0xff]  ;;  %v478_v27 = vld [vmem:[#allocation5 + $0xb58] sm:$0xff]  ;;  %v427_v30 = vld [vmem:[#allocation5 + $0x9c0] sm:$0xff] }
  0x36   :  { %1061 = vmatpush.msra.mxu3 %v262_v59  ;;  %1022 = vmatpush.msra.mxu1 %v163_v61  ;;  %v475_v31 = vld [vmem:[#allocation5 + $0xb40] sm:$0xff]  ;;  %v328_v32 = vld [vmem:[#allocation5 + $0x6a8] sm:$0xff]  ;;  %v325_v36 = vld [vmem:[#allocation5 + $0x690] sm:$0xff] }
  0x37   :  { %1042 = vmatpush.msra.mxu2 %v211_v62  ;;  %1067 = vmatpush.msrb.mxu0 %v352_v0  ;;  %v376_v33 = vld [vmem:[#allocation5 + $0x828] sm:$0xff]  ;;  %v373_v37 = vld [vmem:[#allocation5 + $0x810] sm:$0xff]  ;;  %v322_v40 = vld [vmem:[#allocation5 + $0x678] sm:$0xff] }
  0x38   :  { %1062 = vmatpush.msra.mxu3 %v259_v63  ;;  %1087 = vmatpush.msrb.mxu1 %v400_v1  ;;  %v424_v34 = vld [vmem:[#allocation5 + $0x9a8] sm:$0xff]  ;;  %v421_v38 = vld [vmem:[#allocation5 + $0x990] sm:$0xff]  ;;  %v370_v41 = vld [vmem:[#allocation5 + $0x7f8] sm:$0xff] }
  0x39   :  { %1107 = vmatpush.msrb.mxu2 %v448_v2  ;;  %1068 = vmatpush.msrb.mxu0 %v349_v4  ;;  %v472_v35 = vld [vmem:[#allocation5 + $0xb28] sm:$0xff]  ;;  %v469_v39 = vld [vmem:[#allocation5 + $0xb10] sm:$0xff]  ;;  %v418_v42 = vld [vmem:[#allocation5 + $0x978] sm:$0xff] }
  0x3a   :  { %1127 = vmatpush.msrb.mxu3 %v496_v3  ;;  %1088 = vmatpush.msrb.mxu1 %v397_v5  ;;  %v466_v43 = vld [vmem:[#allocation5 + $0xaf8] sm:$0xff]  ;;  %v319_v44 = vld [vmem:[#allocation5 + $0x660] sm:$0xff]  ;;  %v316_v48 = vld [vmem:[#allocation5 + $0x648] sm:$0xff] }
  0x3b   :  { %1108 = vmatpush.msrb.mxu2 %v445_v6  ;;  %1069 = vmatpush.msrb.mxu0 %v346_v8  ;;  %v367_v45 = vld [vmem:[#allocation5 + $0x7e0] sm:$0xff]  ;;  %v364_v49 = vld [vmem:[#allocation5 + $0x7c8] sm:$0xff]  ;;  %v313_v52 = vld [vmem:[#allocation5 + $0x630] sm:$0xff] }
  0x3c   :  { %1128 = vmatpush.msrb.mxu3 %v493_v7  ;;  %1089 = vmatpush.msrb.mxu1 %v394_v9  ;;  %v415_v46 = vld [vmem:[#allocation5 + $0x960] sm:$0xff]  ;;  %v412_v50 = vld [vmem:[#allocation5 + $0x948] sm:$0xff]  ;;  %v361_v53 = vld [vmem:[#allocation5 + $0x7b0] sm:$0xff] }
  0x3d   :  { %1109 = vmatpush.msrb.mxu2 %v442_v10  ;;  %1070 = vmatpush.msrb.mxu0 %v343_v12  ;;  %v463_v47 = vld [vmem:[#allocation5 + $0xae0] sm:$0xff]  ;;  %v460_v51 = vld [vmem:[#allocation5 + $0xac8] sm:$0xff]  ;;  %v409_v54 = vld [vmem:[#allocation5 + $0x930] sm:$0xff] }
  0x3e   :  { %1129 = vmatpush.msrb.mxu3 %v490_v11  ;;  %1090 = vmatpush.msrb.mxu1 %v391_v13  ;;  %v457_v55 = vld [vmem:[#allocation5 + $0xab0] sm:$0xff]  ;;  %v310_v56 = vld [vmem:[#allocation5 + $0x618] sm:$0xff]  ;;  %v99_v60 = vld [vmem:[#allocation2 + $0x10] sm:$0xff] }
  0x3f   :  { %1110 = vmatpush.msrb.mxu2 %v439_v14  ;;  %1071 = vmatpush.msrb.mxu0 %v340_v16  ;;  %v358_v57 = vld [vmem:[#allocation5 + $0x798] sm:$0xff]  ;;  %v307_v61 = vld [vmem:[#allocation5 + $0x600] sm:$0xff]  ;;  %v97_v1 = vld [vmem:[#allocation2] sm:$0xff] }
  0x40   :  { %1130 = vmatpush.msrb.mxu3 %v487_v15  ;;  %1091 = vmatpush.msrb.mxu1 %v388_v17  ;;  %v406_v58 = vld [vmem:[#allocation5 + $0x918] sm:$0xff]  ;;  %v355_v62 = vld [vmem:[#allocation5 + $0x780] sm:$0xff]  ;;  %v100_v3 = vld [vmem:[#allocation2 + $0x18] sm:$0xff] }
  0x41   :  { %1111 = vmatpush.msrb.mxu2 %v436_v18  ;;  %1072 = vmatpush.msrb.mxu0 %v337_v20  ;;  %v454_v59 = vld [vmem:[#allocation5 + $0xa98] sm:$0xff]  ;;  %v403_v63 = vld [vmem:[#allocation5 + $0x900] sm:$0xff]  ;;  %v544_v4 = vld [vmem:[#allocation5 + $0xd68] sm:$0xff] }
  0x42   :  { %1131 = vmatpush.msrb.mxu3 %v484_v19  ;;  %1092 = vmatpush.msrb.mxu1 %v385_v21  ;;  %v451_v0 = vld [vmem:[#allocation5 + $0xa80] sm:$0xff]  ;;  %v98_v2 = vld [vmem:[#allocation2 + $0x8] sm:$0xff]  ;;  %v592_v5 = vld [vmem:[#allocation5 + $0xee8] sm:$0xff] }
  0x43   :  { %1112 = vmatpush.msrb.mxu2 %v433_v22  ;;  %1073 = vmatpush.msrb.mxu0 %v334_v24  ;;  %v640_v6 = vld [vmem:[#allocation5 + $0x1068] sm:$0xff]  ;;  %v541_v8 = vld [vmem:[#allocation5 + $0xd50] sm:$0xff]  ;;  %v538_v12 = vld [vmem:[#allocation5 + $0xd38] sm:$0xff] }
  0x44   :  { %1132 = vmatpush.msrb.mxu3 %v481_v23  ;;  %1093 = vmatpush.msrb.mxu1 %v382_v25  ;;  %v688_v7 = vld [vmem:[#allocation5 + $0x11e8] sm:$0xff]  ;;  %v589_v9 = vld [vmem:[#allocation5 + $0xed0] sm:$0xff]  ;;  %v586_v13 = vld [vmem:[#allocation5 + $0xeb8] sm:$0xff] }
  0x45   :  { %1113 = vmatpush.msrb.mxu2 %v430_v26  ;;  %1074 = vmatpush.msrb.mxu0 %v331_v28  ;;  %v637_v10 = vld [vmem:[#allocation5 + $0x1050] sm:$0xff]  ;;  %v634_v14 = vld [vmem:[#allocation5 + $0x1038] sm:$0xff]  ;;  %v103_v16 = vld [vmem:[#allocation2 + $0x30] sm:$0xff] }
  0x46   :  { %1133 = vmatpush.msrb.mxu3 %v478_v27  ;;  %1094 = vmatpush.msrb.mxu1 %v379_v29  ;;  %v685_v11 = vld [vmem:[#allocation5 + $0x11d0] sm:$0xff]  ;;  %v682_v15 = vld [vmem:[#allocation5 + $0x11b8] sm:$0xff]  ;;  %v535_v17 = vld [vmem:[#allocation5 + $0xd20] sm:$0xff] }
  0x47   :  { %1114 = vmatpush.msrb.mxu2 %v427_v30  ;;  %1075 = vmatpush.msrb.mxu0 %v328_v32  ;;  %v583_v18 = vld [vmem:[#allocation5 + $0xea0] sm:$0xff]  ;;  %v101_v21 = vld [vmem:[#allocation2 + $0x20] sm:$0xff]  ;;  %v104_v22 = vld [vmem:[#allocation2 + $0x38] sm:$0xff] }
  0x48   :  { %1134 = vmatpush.msrb.mxu3 %v475_v31  ;;  %1095 = vmatpush.msrb.mxu1 %v376_v33  ;;  %v631_v19 = vld [vmem:[#allocation5 + $0x1020] sm:$0xff]  ;;  %v532_v23 = vld [vmem:[#allocation5 + $0xd08] sm:$0xff]  ;;  %v102_v27 = vld [vmem:[#allocation2 + $0x28] sm:$0xff] }
  0x49   :  { %1115 = vmatpush.msrb.mxu2 %v424_v34  ;;  %1076 = vmatpush.msrb.mxu0 %v325_v36  ;;  %v679_v20 = vld [vmem:[#allocation5 + $0x11a0] sm:$0xff]  ;;  %v580_v24 = vld [vmem:[#allocation5 + $0xe88] sm:$0xff]  ;;  %v529_v28 = vld [vmem:[#allocation5 + $0xcf0] sm:$0xff] }
  0x4a   :  { %1135 = vmatpush.msrb.mxu3 %v472_v35  ;;  %1096 = vmatpush.msrb.mxu1 %v373_v37  ;;  %v628_v25 = vld [vmem:[#allocation5 + $0x1008] sm:$0xff]  ;;  %v577_v29 = vld [vmem:[#allocation5 + $0xe70] sm:$0xff]  ;;  %v526_v32 = vld [vmem:[#allocation5 + $0xcd8] sm:$0xff] }
  0x4b   :  { %1116 = vmatpush.msrb.mxu2 %v421_v38  ;;  %1077 = vmatpush.msrb.mxu0 %v322_v40  ;;  %v676_v26 = vld [vmem:[#allocation5 + $0x1188] sm:$0xff]  ;;  %v625_v30 = vld [vmem:[#allocation5 + $0xff0] sm:$0xff]  ;;  %v574_v33 = vld [vmem:[#allocation5 + $0xe58] sm:$0xff] }
  0x4c   :  { %1136 = vmatpush.msrb.mxu3 %v469_v39  ;;  %1097 = vmatpush.msrb.mxu1 %v370_v41  ;;  %v673_v31 = vld [vmem:[#allocation5 + $0x1170] sm:$0xff]  ;;  %v622_v34 = vld [vmem:[#allocation5 + $0xfd8] sm:$0xff]  ;;  %v523_v36 = vld [vmem:[#allocation5 + $0xcc0] sm:$0xff] }
  0x4d   :  { %1117 = vmatpush.msrb.mxu2 %v418_v42  ;;  %1078 = vmatpush.msrb.mxu0 %v319_v44  ;;  %v670_v35 = vld [vmem:[#allocation5 + $0x1158] sm:$0xff]  ;;  %v571_v37 = vld [vmem:[#allocation5 + $0xe40] sm:$0xff]  ;;  %v520_v40 = vld [vmem:[#allocation5 + $0xca8] sm:$0xff] }
  0x4e   :  { %1137 = vmatpush.msrb.mxu3 %v466_v43  ;;  %1098 = vmatpush.msrb.mxu1 %v367_v45  ;;  %v619_v38 = vld [vmem:[#allocation5 + $0xfc0] sm:$0xff]  ;;  %v568_v41 = vld [vmem:[#allocation5 + $0xe28] sm:$0xff]  ;;  %v517_v44 = vld [vmem:[#allocation5 + $0xc90] sm:$0xff] }
  0x4f   :  { %1118 = vmatpush.msrb.mxu2 %v415_v46  ;;  %1079 = vmatpush.msrb.mxu0 %v316_v48  ;;  %v667_v39 = vld [vmem:[#allocation5 + $0x1140] sm:$0xff]  ;;  %v616_v42 = vld [vmem:[#allocation5 + $0xfa8] sm:$0xff]  ;;  %v565_v45 = vld [vmem:[#allocation5 + $0xe10] sm:$0xff] }
  0x50   :  { %1138 = vmatpush.msrb.mxu3 %v463_v47  ;;  %1099 = vmatpush.msrb.mxu1 %v364_v49  ;;  %v664_v43 = vld [vmem:[#allocation5 + $0x1128] sm:$0xff]  ;;  %v613_v46 = vld [vmem:[#allocation5 + $0xf90] sm:$0xff]  ;;  %v514_v48 = vld [vmem:[#allocation5 + $0xc78] sm:$0xff] }
  0x51   :  { %1119 = vmatpush.msrb.mxu2 %v412_v50  ;;  %1080 = vmatpush.msrb.mxu0 %v313_v52  ;;  %v661_v47 = vld [vmem:[#allocation5 + $0x1110] sm:$0xff]  ;;  %v562_v49 = vld [vmem:[#allocation5 + $0xdf8] sm:$0xff]  ;;  %v511_v52 = vld [vmem:[#allocation5 + $0xc60] sm:$0xff] }
  0x52   :  { %1139 = vmatpush.msrb.mxu3 %v460_v51  ;;  %1100 = vmatpush.msrb.mxu1 %v361_v53  ;;  %v610_v50 = vld [vmem:[#allocation5 + $0xf78] sm:$0xff]  ;;  %v559_v53 = vld [vmem:[#allocation5 + $0xde0] sm:$0xff] }
  0x53   :  { %1120 = vmatpush.msrb.mxu2 %v409_v54  ;;  %1081 = vmatpush.msrb.mxu0 %v310_v56  ;;  %v658_v51 = vld [vmem:[#allocation5 + $0x10f8] sm:$0xff]  ;;  %v607_v54 = vld [vmem:[#allocation5 + $0xf60] sm:$0xff]  ;;  %v508_v56 = vld [vmem:[#allocation5 + $0xc48] sm:$0xff] }
  0x54   :  { %1140 = vmatpush.msrb.mxu3 %v457_v55  ;;  %1101 = vmatpush.msrb.mxu1 %v358_v57  ;;  %v655_v55 = vld [vmem:[#allocation5 + $0x10e0] sm:$0xff]  ;;  %v556_v57 = vld [vmem:[#allocation5 + $0xdc8] sm:$0xff] }
  0x55   :  { %1121 = vmatpush.msrb.mxu2 %v406_v58  ;;  %1082 = vmatpush.msrb.mxu0 %v307_v61  ;;  %v604_v58 = vld [vmem:[#allocation5 + $0xf48] sm:$0xff]  ;;  %v553_v61 = vld [vmem:[#allocation5 + $0xdb0] sm:$0xff] }
  0x56   :  { %1141 = vmatpush.msrb.mxu3 %v454_v59  ;;  %1043 = vmatmul.f32.vlgmr.msra.gmra.mxu2 %v99_v60  ;;  %v652_v59 = vld [vmem:[#allocation5 + $0x10c8] sm:$0xff]  ;;  %v505_v60 = vld [vmem:[#allocation5 + $0xc30] sm:$0xff] }
  0x57   :  { %1102 = vmatpush.msrb.mxu1 %v355_v62  ;;  %1122 = vmatpush.msrb.mxu2 %v403_v63  ;;  %v601_v62 = vld [vmem:[#allocation5 + $0xf30] sm:$0xff] }
  0x58   :  { %1142 = vmatpush.msrb.mxu3 %v451_v0  ;;  %1003 = vmatmul.f32.vlgmr.msra.gmra.mxu0 %v97_v1  ;;  %v649_v63 = vld [vmem:[#allocation5 + $0x10b0] sm:$0xff]  ;;  %v502_v0 = vld [vmem:[#allocation5 + $0xc18] sm:$0xff] }
  0x59   :  { %1023 = vmatmul.f32.vlgmr.msra.gmra.mxu1 %v98_v2  ;;  %1063 = vmatmul.f32.vlgmr.msra.gmra.mxu3 %v100_v3  ;;  %v550_v1 = vld [vmem:[#allocation5 + $0xd98] sm:$0xff] }
  0x5a   :  { %1147 = vmatpush.msra.mxu0 %v544_v4  ;;  %1167 = vmatpush.msra.mxu1 %v592_v5  ;;  %v598_v2 = vld [vmem:[#allocation5 + $0xf18] sm:$0xff]  ;;  %v499_v4 = vld [vmem:[#allocation5 + $0xc00] sm:$0xff] }
  0x5b   :  { %1187 = vmatpush.msra.mxu2 %v640_v6  ;;  %1207 = vmatpush.msra.mxu3 %v688_v7  ;;  %v646_v3 = vld [vmem:[#allocation5 + $0x1098] sm:$0xff]  ;;  %v547_v5 = vld [vmem:[#allocation5 + $0xd80] sm:$0xff] }
  0x5c   :  { %1148 = vmatpush.msra.mxu0 %v541_v8  ;;  %1168 = vmatpush.msra.mxu1 %v589_v9  ;;  %v595_v6 = vld [vmem:[#allocation5 + $0xf00] sm:$0xff]  ;;  %v105_v8 = vld [vmem:[#allocation2 + $0x40] sm:$0xff] }
  0x5d   :  { %1188 = vmatpush.msra.mxu2 %v637_v10  ;;  %1208 = vmatpush.msra.mxu3 %v685_v11  ;;  %v643_v7 = vld [vmem:[#allocation5 + $0x1080] sm:$0xff]  ;;  %v736_v10 = vld [vmem:[#allocation5 + $0x1368] sm:$0xff] }
  0x5e   :  { %1149 = vmatpush.msra.mxu0 %v538_v12  ;;  %1169 = vmatpush.msra.mxu1 %v586_v13  ;;  %v107_v9 = vld [vmem:[#allocation2 + $0x50] sm:$0xff]  ;;  %v784_v11 = vld [vmem:[#allocation5 + $0x14e8] sm:$0xff] }
  0x5f   :  { %1189 = vmatpush.msra.mxu2 %v634_v14  ;;  %1209 = vmatpush.msra.mxu3 %v682_v15  ;;  %v832_v12 = vld [vmem:[#allocation5 + $0x1668] sm:$0xff]  ;;  %v106_v14 = vld [vmem:[#allocation2 + $0x48] sm:$0xff] }
  0x60   :  { %1123 = vmatmul.f32.vlgmr.msrb.gmra.mxu2 %v103_v16  ;;  %1150 = vmatpush.msra.mxu0 %v535_v17  ;;  %v880_v13 = vld [vmem:[#allocation5 + $0x17e8] sm:$0xff]  ;;  %v733_v16 = vld [vmem:[#allocation5 + $0x1350] sm:$0xff] }
  0x61   :  { %1170 = vmatpush.msra.mxu1 %v583_v18  ;;  %1190 = vmatpush.msra.mxu2 %v631_v19  ;;  %v108_v15 = vld [vmem:[#allocation2 + $0x58] sm:$0xff]  ;;  %v781_v17 = vld [vmem:[#allocation5 + $0x14d0] sm:$0xff] }
  0x62   :  { %1210 = vmatpush.msra.mxu3 %v679_v20  ;;  %1083 = vmatmul.f32.vlgmr.msrb.gmra.mxu0 %v101_v21  ;;  %v829_v18 = vld [vmem:[#allocation5 + $0x1650] sm:$0xff]  ;;  %v730_v20 = vld [vmem:[#allocation5 + $0x1338] sm:$0xff] }
  0x63   :  { %1143 = vmatmul.f32.vlgmr.msrb.gmra.mxu3 %v104_v22  ;;  %1151 = vmatpush.msra.mxu0 %v532_v23  ;;  %v877_v19 = vld [vmem:[#allocation5 + $0x17d0] sm:$0xff]  ;;  %v778_v21 = vld [vmem:[#allocation5 + $0x14b8] sm:$0xff] }
  0x64   :  { %1171 = vmatpush.msra.mxu1 %v580_v24  ;;  %1191 = vmatpush.msra.mxu2 %v628_v25  ;;  %v826_v22 = vld [vmem:[#allocation5 + $0x1638] sm:$0xff]  ;;  %v727_v24 = vld [vmem:[#allocation5 + $0x1320] sm:$0xff] }
  0x65   :  { %1211 = vmatpush.msra.mxu3 %v676_v26  ;;  %1103 = vmatmul.f32.vlgmr.msrb.gmra.mxu1 %v102_v27  ;;  %v874_v23 = vld [vmem:[#allocation5 + $0x17b8] sm:$0xff]  ;;  %v775_v25 = vld [vmem:[#allocation5 + $0x14a0] sm:$0xff] }
  0x66   :  { %1152 = vmatpush.msra.mxu0 %v529_v28  ;;  %1172 = vmatpush.msra.mxu1 %v577_v29  ;;  %v823_v26 = vld [vmem:[#allocation5 + $0x1620] sm:$0xff]  ;;  %v724_v28 = vld [vmem:[#allocation5 + $0x1308] sm:$0xff] }
  0x67   :  { %1192 = vmatpush.msra.mxu2 %v625_v30  ;;  %1212 = vmatpush.msra.mxu3 %v673_v31  ;;  %v871_v27 = vld [vmem:[#allocation5 + $0x17a0] sm:$0xff]  ;;  %v772_v29 = vld [vmem:[#allocation5 + $0x1488] sm:$0xff] }
  0x68   :  { %1153 = vmatpush.msra.mxu0 %v526_v32  ;;  %1173 = vmatpush.msra.mxu1 %v574_v33  ;;  %v820_v30 = vld [vmem:[#allocation5 + $0x1608] sm:$0xff]  ;;  %v721_v32 = vld [vmem:[#allocation5 + $0x12f0] sm:$0xff] }
  0x69   :  { %1193 = vmatpush.msra.mxu2 %v622_v34  ;;  %1213 = vmatpush.msra.mxu3 %v670_v35  ;;  %v868_v31 = vld [vmem:[#allocation5 + $0x1788] sm:$0xff]  ;;  %v769_v33 = vld [vmem:[#allocation5 + $0x1470] sm:$0xff] }
  0x6a   :  { %1154 = vmatpush.msra.mxu0 %v523_v36  ;;  %1174 = vmatpush.msra.mxu1 %v571_v37  ;;  %v817_v34 = vld [vmem:[#allocation5 + $0x15f0] sm:$0xff]  ;;  %v718_v36 = vld [vmem:[#allocation5 + $0x12d8] sm:$0xff] }
  0x6b   :  { %1194 = vmatpush.msra.mxu2 %v619_v38  ;;  %1214 = vmatpush.msra.mxu3 %v667_v39  ;;  %v865_v35 = vld [vmem:[#allocation5 + $0x1770] sm:$0xff]  ;;  %v766_v37 = vld [vmem:[#allocation5 + $0x1458] sm:$0xff] }
  0x6c   :  { %1155 = vmatpush.msra.mxu0 %v520_v40  ;;  %1175 = vmatpush.msra.mxu1 %v568_v41  ;;  %v814_v38 = vld [vmem:[#allocation5 + $0x15d8] sm:$0xff]  ;;  %v715_v40 = vld [vmem:[#allocation5 + $0x12c0] sm:$0xff] }
  0x6d   :  { %1195 = vmatpush.msra.mxu2 %v616_v42  ;;  %1215 = vmatpush.msra.mxu3 %v664_v43  ;;  %v862_v39 = vld [vmem:[#allocation5 + $0x1758] sm:$0xff]  ;;  %v763_v41 = vld [vmem:[#allocation5 + $0x1440] sm:$0xff] }
  0x6e   :  { %1156 = vmatpush.msra.mxu0 %v517_v44  ;;  %1176 = vmatpush.msra.mxu1 %v565_v45  ;;  %v811_v42 = vld [vmem:[#allocation5 + $0x15c0] sm:$0xff]  ;;  %v712_v44 = vld [vmem:[#allocation5 + $0x12a8] sm:$0xff] }
  0x6f   :  { %1196 = vmatpush.msra.mxu2 %v613_v46  ;;  %1216 = vmatpush.msra.mxu3 %v661_v47  ;;  %v859_v43 = vld [vmem:[#allocation5 + $0x1740] sm:$0xff]  ;;  %v760_v45 = vld [vmem:[#allocation5 + $0x1428] sm:$0xff] }
  0x70   :  { %1157 = vmatpush.msra.mxu0 %v514_v48  ;;  %1177 = vmatpush.msra.mxu1 %v562_v49  ;;  %v808_v46 = vld [vmem:[#allocation5 + $0x15a8] sm:$0xff]  ;;  %v709_v48 = vld [vmem:[#allocation5 + $0x1290] sm:$0xff] }
  0x71   :  { %1197 = vmatpush.msra.mxu2 %v610_v50  ;;  %1217 = vmatpush.msra.mxu3 %v658_v51  ;;  %v856_v47 = vld [vmem:[#allocation5 + $0x1728] sm:$0xff]  ;;  %v757_v49 = vld [vmem:[#allocation5 + $0x1410] sm:$0xff] }
  0x72   :  { %1158 = vmatpush.msra.mxu0 %v511_v52  ;;  %1178 = vmatpush.msra.mxu1 %v559_v53  ;;  %v805_v50 = vld [vmem:[#allocation5 + $0x1590] sm:$0xff]  ;;  %v706_v52 = vld [vmem:[#allocation5 + $0x1278] sm:$0xff] }
  0x73   :  { %1198 = vmatpush.msra.mxu2 %v607_v54  ;;  %1218 = vmatpush.msra.mxu3 %v655_v55  ;;  %v853_v51 = vld [vmem:[#allocation5 + $0x1710] sm:$0xff]  ;;  %v754_v53 = vld [vmem:[#allocation5 + $0x13f8] sm:$0xff] }
  0x74   :  { %1159 = vmatpush.msra.mxu0 %v508_v56  ;;  %1179 = vmatpush.msra.mxu1 %v556_v57  ;;  %v802_v54 = vld [vmem:[#allocation5 + $0x1578] sm:$0xff]  ;;  %v703_v56 = vld [vmem:[#allocation5 + $0x1260] sm:$0xff] }
  0x75   :  { %1199 = vmatpush.msra.mxu2 %v604_v58  ;;  %1219 = vmatpush.msra.mxu3 %v652_v59  ;;  %v850_v55 = vld [vmem:[#allocation5 + $0x16f8] sm:$0xff]  ;;  %v751_v57 = vld [vmem:[#allocation5 + $0x13e0] sm:$0xff] }
  0x76   :  { %1160 = vmatpush.msra.mxu0 %v505_v60  ;;  %1180 = vmatpush.msra.mxu1 %v553_v61  ;;  %v799_v58 = vld [vmem:[#allocation5 + $0x1560] sm:$0xff]  ;;  %v700_v60 = vld [vmem:[#allocation5 + $0x1248] sm:$0xff] }
  0x77   :  { %1200 = vmatpush.msra.mxu2 %v601_v62  ;;  %1220 = vmatpush.msra.mxu3 %v649_v63  ;;  %v847_v59 = vld [vmem:[#allocation5 + $0x16e0] sm:$0xff]  ;;  %v748_v61 = vld [vmem:[#allocation5 + $0x13c8] sm:$0xff] }
  0x78   :  { %1161 = vmatpush.msra.mxu0 %v502_v0  ;;  %1181 = vmatpush.msra.mxu1 %v550_v1  ;;  %v796_v62 = vld [vmem:[#allocation5 + $0x1548] sm:$0xff]  ;;  %v697_v0 = vld [vmem:[#allocation5 + $0x1230] sm:$0xff] }
  0x79   :  { %1201 = vmatpush.msra.mxu2 %v598_v2  ;;  %1221 = vmatpush.msra.mxu3 %v646_v3  ;;  %v844_v63 = vld [vmem:[#allocation5 + $0x16c8] sm:$0xff]  ;;  %v745_v1 = vld [vmem:[#allocation5 + $0x13b0] sm:$0xff] }
  0x7a   :  { %1162 = vmatpush.msra.mxu0 %v499_v4  ;;  %1182 = vmatpush.msra.mxu1 %v547_v5  ;;  %v793_v2 = vld [vmem:[#allocation5 + $0x1530] sm:$0xff]  ;;  %v694_v4 = vld [vmem:[#allocation5 + $0x1218] sm:$0xff] }
  0x7b   :  { %1202 = vmatpush.msra.mxu2 %v595_v6  ;;  %1222 = vmatpush.msra.mxu3 %v643_v7  ;;  %v841_v3 = vld [vmem:[#allocation5 + $0x16b0] sm:$0xff]  ;;  %v742_v5 = vld [vmem:[#allocation5 + $0x1398] sm:$0xff] }
  0x7c   :  { %1163 = vmatmul.f32.vlgmr.msra.gmra.mxu0 %v105_v8  ;;  %1203 = vmatmul.f32.vlgmr.msra.gmra.mxu2 %v107_v9  ;;  %v790_v6 = vld [vmem:[#allocation5 + $0x1518] sm:$0xff]  ;;  %v691_v8 = vld [vmem:[#allocation5 + $0x1200] sm:$0xff] }
  0x7d   :  { %1227 = vmatpush.msrb.mxu0 %v736_v10  ;;  %1247 = vmatpush.msrb.mxu1 %v784_v11  ;;  %v838_v7 = vld [vmem:[#allocation5 + $0x1698] sm:$0xff]  ;;  %v739_v9 = vld [vmem:[#allocation5 + $0x1380] sm:$0xff] }
  0x7e   :  { %1267 = vmatpush.msrb.mxu2 %v832_v12  ;;  %1287 = vmatpush.msrb.mxu3 %v880_v13  ;;  %v787_v10 = vld [vmem:[#allocation5 + $0x1500] sm:$0xff]  ;;  %v109_v12 = vld [vmem:[#allocation2 + $0x60] sm:$0xff] }
  0x7f   :  { %1183 = vmatmul.f32.vlgmr.msra.gmra.mxu1 %v106_v14  ;;  %1223 = vmatmul.f32.vlgmr.msra.gmra.mxu3 %v108_v15  ;;  %v835_v11 = vld [vmem:[#allocation5 + $0x1680] sm:$0xff]  ;;  %v928_v14 = vld [vmem:[#allocation5 + $0x1968] sm:$0xff] }
  0x80   :  { %1228 = vmatpush.msrb.mxu0 %v733_v16  ;;  %1248 = vmatpush.msrb.mxu1 %v781_v17  ;;  %v111_v13 = vld [vmem:[#allocation2 + $0x70] sm:$0xff]  ;;  %v976_v15 = vld [vmem:[#allocation5 + $0x1ae8] sm:$0xff]  ;;  %v161_v16 = vld [vmem:[#allocation5 + $0x170] sm:$0xff] }
  0x81   :  { %1268 = vmatpush.msrb.mxu2 %v829_v18  ;;  %1288 = vmatpush.msrb.mxu3 %v877_v19  ;;  %v209_v17 = vld [vmem:[#allocation5 + $0x2f0] sm:$0xff]  ;;  %v110_v18 = vld [vmem:[#allocation2 + $0x68] sm:$0xff]  ;;  %v112_v19 = vld [vmem:[#allocation2 + $0x78] sm:$0xff] }
  0x82   :  { %1229 = vmatpush.msrb.mxu0 %v730_v20  ;;  %1249 = vmatpush.msrb.mxu1 %v778_v21  ;;  %v925_v20 = vld [vmem:[#allocation5 + $0x1950] sm:$0xff] }
  0x83   :  { %1269 = vmatpush.msrb.mxu2 %v826_v22  ;;  %1289 = vmatpush.msrb.mxu3 %v874_v23  ;;  %v973_v21 = vld [vmem:[#allocation5 + $0x1ad0] sm:$0xff]  ;;  %v158_v22 = vld [vmem:[#allocation5 + $0x158] sm:$0xff] }
  0x84   :  { %1230 = vmatpush.msrb.mxu0 %v727_v24  ;;  %1250 = vmatpush.msrb.mxu1 %v775_v25  ;;  %v206_v23 = vld [vmem:[#allocation5 + $0x2d8] sm:$0xff] }
  0x85   :  { %1270 = vmatpush.msrb.mxu2 %v823_v26  ;;  %1290 = vmatpush.msrb.mxu3 %v871_v27  ;;  %v922_v24 = vld [vmem:[#allocation5 + $0x1938] sm:$0xff]  ;;  %v155_v26 = vld [vmem:[#allocation5 + $0x140] sm:$0xff] }
  0x86   :  { %1231 = vmatpush.msrb.mxu0 %v724_v28  ;;  %1251 = vmatpush.msrb.mxu1 %v772_v29  ;;  %v970_v25 = vld [vmem:[#allocation5 + $0x1ab8] sm:$0xff]  ;;  %v203_v27 = vld [vmem:[#allocation5 + $0x2c0] sm:$0xff] }
  0x87   :  { %1271 = vmatpush.msrb.mxu2 %v820_v30  ;;  %1291 = vmatpush.msrb.mxu3 %v868_v31  ;;  %v919_v28 = vld [vmem:[#allocation5 + $0x1920] sm:$0xff]  ;;  %v152_v30 = vld [vmem:[#allocation5 + $0x128] sm:$0xff] }
  0x88   :  { %1232 = vmatpush.msrb.mxu0 %v721_v32  ;;  %1252 = vmatpush.msrb.mxu1 %v769_v33  ;;  %v967_v29 = vld [vmem:[#allocation5 + $0x1aa0] sm:$0xff]  ;;  %v200_v31 = vld [vmem:[#allocation5 + $0x2a8] sm:$0xff] }
  0x89   :  { %1272 = vmatpush.msrb.mxu2 %v817_v34  ;;  %1292 = vmatpush.msrb.mxu3 %v865_v35  ;;  %v916_v32 = vld [vmem:[#allocation5 + $0x1908] sm:$0xff]  ;;  %v149_v34 = vld [vmem:[#allocation5 + $0x110] sm:$0xff] }
  0x8a   :  { %1233 = vmatpush.msrb.mxu0 %v718_v36  ;;  %1253 = vmatpush.msrb.mxu1 %v766_v37  ;;  %v964_v33 = vld [vmem:[#allocation5 + $0x1a88] sm:$0xff]  ;;  %v197_v35 = vld [vmem:[#allocation5 + $0x290] sm:$0xff] }
  0x8b   :  { %1273 = vmatpush.msrb.mxu2 %v814_v38  ;;  %1293 = vmatpush.msrb.mxu3 %v862_v39  ;;  %v913_v36 = vld [vmem:[#allocation5 + $0x18f0] sm:$0xff]  ;;  %v146_v38 = vld [vmem:[#allocation5 + $0xf8] sm:$0xff] }
  0x8c   :  { %1234 = vmatpush.msrb.mxu0 %v715_v40  ;;  %1254 = vmatpush.msrb.mxu1 %v763_v41  ;;  %v961_v37 = vld [vmem:[#allocation5 + $0x1a70] sm:$0xff]  ;;  %v194_v39 = vld [vmem:[#allocation5 + $0x278] sm:$0xff] }
  0x8d   :  { %1274 = vmatpush.msrb.mxu2 %v811_v42  ;;  %1294 = vmatpush.msrb.mxu3 %v859_v43  ;;  %v910_v40 = vld [vmem:[#allocation5 + $0x18d8] sm:$0xff]  ;;  %v143_v42 = vld [vmem:[#allocation5 + $0xe0] sm:$0xff] }
  0x8e   :  { %1235 = vmatpush.msrb.mxu0 %v712_v44  ;;  %1255 = vmatpush.msrb.mxu1 %v760_v45  ;;  %v958_v41 = vld [vmem:[#allocation5 + $0x1a58] sm:$0xff]  ;;  %v191_v43 = vld [vmem:[#allocation5 + $0x260] sm:$0xff] }
  0x8f   :  { %1275 = vmatpush.msrb.mxu2 %v808_v46  ;;  %1295 = vmatpush.msrb.mxu3 %v856_v47  ;;  %v907_v44 = vld [vmem:[#allocation5 + $0x18c0] sm:$0xff]  ;;  %v140_v46 = vld [vmem:[#allocation5 + $0xc8] sm:$0xff] }
  0x90   :  { %1236 = vmatpush.msrb.mxu0 %v709_v48  ;;  %1256 = vmatpush.msrb.mxu1 %v757_v49  ;;  %v955_v45 = vld [vmem:[#allocation5 + $0x1a40] sm:$0xff]  ;;  %v188_v47 = vld [vmem:[#allocation5 + $0x248] sm:$0xff] }
  0x91   :  { %1276 = vmatpush.msrb.mxu2 %v805_v50  ;;  %1296 = vmatpush.msrb.mxu3 %v853_v51  ;;  %v904_v48 = vld [vmem:[#allocation5 + $0x18a8] sm:$0xff]  ;;  %v137_v50 = vld [vmem:[#allocation5 + $0xb0] sm:$0xff] }
  0x92   :  { %1237 = vmatpush.msrb.mxu0 %v706_v52  ;;  %1257 = vmatpush.msrb.mxu1 %v754_v53  ;;  %v952_v49 = vld [vmem:[#allocation5 + $0x1a28] sm:$0xff]  ;;  %v185_v51 = vld [vmem:[#allocation5 + $0x230] sm:$0xff] }
  0x93   :  { %1277 = vmatpush.msrb.mxu2 %v802_v54  ;;  %1297 = vmatpush.msrb.mxu3 %v850_v55  ;;  %v901_v52 = vld [vmem:[#allocation5 + $0x1890] sm:$0xff]  ;;  %v134_v54 = vld [vmem:[#allocation5 + $0x98] sm:$0xff] }
  0x94   :  { %1238 = vmatpush.msrb.mxu0 %v703_v56  ;;  %1258 = vmatpush.msrb.mxu1 %v751_v57  ;;  %v949_v53 = vld [vmem:[#allocation5 + $0x1a10] sm:$0xff]  ;;  %v182_v55 = vld [vmem:[#allocation5 + $0x218] sm:$0xff] }
  0x95   :  { %1278 = vmatpush.msrb.mxu2 %v799_v58  ;;  %1298 = vmatpush.msrb.mxu3 %v847_v59  ;;  %v898_v56 = vld [vmem:[#allocation5 + $0x1878] sm:$0xff]  ;;  %v131_v58 = vld [vmem:[#allocation5 + $0x80] sm:$0xff] }
  0x96   :  { %1239 = vmatpush.msrb.mxu0 %v700_v60  ;;  %1259 = vmatpush.msrb.mxu1 %v748_v61  ;;  %v946_v57 = vld [vmem:[#allocation5 + $0x19f8] sm:$0xff]  ;;  %v179_v59 = vld [vmem:[#allocation5 + $0x200] sm:$0xff] }
  0x97   :  { %1279 = vmatpush.msrb.mxu2 %v796_v62  ;;  %1299 = vmatpush.msrb.mxu3 %v844_v63  ;;  %v895_v60 = vld [vmem:[#allocation5 + $0x1860] sm:$0xff]  ;;  %v128_v62 = vld [vmem:[#allocation5 + $0x68] sm:$0xff] }
  0x98   :  { %1240 = vmatpush.msrb.mxu0 %v697_v0  ;;  %1260 = vmatpush.msrb.mxu1 %v745_v1  ;;  %v943_v61 = vld [vmem:[#allocation5 + $0x19e0] sm:$0xff]  ;;  %v176_v63 = vld [vmem:[#allocation5 + $0x1e8] sm:$0xff] }
  0x99   :  { %1280 = vmatpush.msrb.mxu2 %v793_v2  ;;  %1300 = vmatpush.msrb.mxu3 %v841_v3  ;;  %v892_v0 = vld [vmem:[#allocation5 + $0x1848] sm:$0xff]  ;;  %v125_v2 = vld [vmem:[#allocation5 + $0x50] sm:$0xff] }
  0x9a   :  { %1241 = vmatpush.msrb.mxu0 %v694_v4  ;;  %1261 = vmatpush.msrb.mxu1 %v742_v5  ;;  %v940_v1 = vld [vmem:[#allocation5 + $0x19c8] sm:$0xff]  ;;  %v173_v3 = vld [vmem:[#allocation5 + $0x1d0] sm:$0xff] }
  0x9b   :  { %1281 = vmatpush.msrb.mxu2 %v790_v6  ;;  %1301 = vmatpush.msrb.mxu3 %v838_v7  ;;  %v889_v4 = vld [vmem:[#allocation5 + $0x1830] sm:$0xff]  ;;  %v122_v6 = vld [vmem:[#allocation5 + $0x38] sm:$0xff] }
  0x9c   :  { %1242 = vmatpush.msrb.mxu0 %v691_v8  ;;  %1262 = vmatpush.msrb.mxu1 %v739_v9  ;;  %v937_v5 = vld [vmem:[#allocation5 + $0x19b0] sm:$0xff]  ;;  %v170_v7 = vld [vmem:[#allocation5 + $0x1b8] sm:$0xff] }
  0x9d   :  { %1282 = vmatpush.msrb.mxu2 %v787_v10  ;;  %1302 = vmatpush.msrb.mxu3 %v835_v11  ;;  %v886_v8 = vld [vmem:[#allocation5 + $0x1818] sm:$0xff]  ;;  %v119_v10 = vld [vmem:[#allocation5 + $0x20] sm:$0xff] }
  0x9e   :  { %1243 = vmatmul.f32.vlgmr.msrb.gmra.mxu0 %v109_v12  ;;  %1283 = vmatmul.f32.vlgmr.msrb.gmra.mxu2 %v111_v13  ;;  %v934_v9 = vld [vmem:[#allocation5 + $0x1998] sm:$0xff]  ;;  %v167_v11 = vld [vmem:[#allocation5 + $0x1a0] sm:$0xff] }
  0x9f   :  { %1307 = vmatpush.msra.mxu0 %v928_v14  ;;  %1327 = vmatpush.msra.mxu1 %v976_v15  ;;  %v883_v12 = vld [vmem:[#allocation5 + $0x1800] sm:$0xff]  ;;  %v116_v14 = vld [vmem:[#allocation5 + $0x8] sm:$0xff] }
  0xa0   :  { %1347 = vmatpush.msra.mxu2 %v161_v16  ;;  %1367 = vmatpush.msra.mxu3 %v209_v17  ;;  %v931_v13 = vld [vmem:[#allocation5 + $0x1980] sm:$0xff]  ;;  %v164_v15 = vld [vmem:[#allocation5 + $0x188] sm:$0xff]  ;;  %v113_v16 = vld [vmem:[#allocation2 + $0x80] sm:$0xff] }
  0xa1   :  { %1263 = vmatmul.f32.vlgmr.msrb.gmra.mxu1 %v110_v18  ;;  %1303 = vmatmul.f32.vlgmr.msrb.gmra.mxu3 %v112_v19  ;;  %v305_v17 = vld [vmem:[#allocation5 + $0x5f0] sm:$0xff] }
  0xa2   :  { %1308 = vmatpush.msra.mxu0 %v925_v20  ;;  %1328 = vmatpush.msra.mxu1 %v973_v21  ;;  %v257_v18 = vld [vmem:[#allocation5 + $0x470] sm:$0xff]  ;;  %v114_v21 = vld [vmem:[#allocation2 + $0x88] sm:$0xff] }
  0xa3   :  { %1348 = vmatpush.msra.mxu2 %v158_v22  ;;  %1368 = vmatpush.msra.mxu3 %v206_v23  ;;  %v353_v19 = vld [vmem:[#allocation5 + $0x770] sm:$0xff]  ;;  %v254_v22 = vld [vmem:[#allocation5 + $0x458] sm:$0xff] }
  0xa4   :  { %1309 = vmatpush.msra.mxu0 %v922_v24  ;;  %1329 = vmatpush.msra.mxu1 %v970_v25  ;;  %v401_v20 = vld [vmem:[#allocation5 + $0x8f0] sm:$0xff]  ;;  %v302_v23 = vld [vmem:[#allocation5 + $0x5d8] sm:$0xff] }
  0xa5   :  { %1349 = vmatpush.msra.mxu2 %v155_v26  ;;  %1369 = vmatpush.msra.mxu3 %v203_v27  ;;  %v350_v24 = vld [vmem:[#allocation5 + $0x758] sm:$0xff]  ;;  %v251_v26 = vld [vmem:[#allocation5 + $0x440] sm:$0xff] }
  0xa6   :  { %1310 = vmatpush.msra.mxu0 %v919_v28  ;;  %1330 = vmatpush.msra.mxu1 %v967_v29  ;;  %v398_v25 = vld [vmem:[#allocation5 + $0x8d8] sm:$0xff]  ;;  %v299_v27 = vld [vmem:[#allocation5 + $0x5c0] sm:$0xff] }
  0xa7   :  { %1350 = vmatpush.msra.mxu2 %v152_v30  ;;  %1370 = vmatpush.msra.mxu3 %v200_v31  ;;  %v347_v28 = vld [vmem:[#allocation5 + $0x740] sm:$0xff]  ;;  %v248_v30 = vld [vmem:[#allocation5 + $0x428] sm:$0xff] }
  0xa8   :  { %1311 = vmatpush.msra.mxu0 %v916_v32  ;;  %1331 = vmatpush.msra.mxu1 %v964_v33  ;;  %v395_v29 = vld [vmem:[#allocation5 + $0x8c0] sm:$0xff]  ;;  %v296_v31 = vld [vmem:[#allocation5 + $0x5a8] sm:$0xff] }
  0xa9   :  { %1351 = vmatpush.msra.mxu2 %v149_v34  ;;  %1371 = vmatpush.msra.mxu3 %v197_v35  ;;  %v344_v32 = vld [vmem:[#allocation5 + $0x728] sm:$0xff]  ;;  %v245_v34 = vld [vmem:[#allocation5 + $0x410] sm:$0xff] }
  0xaa   :  { %1312 = vmatpush.msra.mxu0 %v913_v36  ;;  %1332 = vmatpush.msra.mxu1 %v961_v37  ;;  %v392_v33 = vld [vmem:[#allocation5 + $0x8a8] sm:$0xff]  ;;  %v293_v35 = vld [vmem:[#allocation5 + $0x590] sm:$0xff] }
  0xab   :  { %1352 = vmatpush.msra.mxu2 %v146_v38  ;;  %1372 = vmatpush.msra.mxu3 %v194_v39  ;;  %v341_v36 = vld [vmem:[#allocation5 + $0x710] sm:$0xff]  ;;  %v242_v38 = vld [vmem:[#allocation5 + $0x3f8] sm:$0xff] }
  0xac   :  { %1313 = vmatpush.msra.mxu0 %v910_v40  ;;  %1333 = vmatpush.msra.mxu1 %v958_v41  ;;  %v389_v37 = vld [vmem:[#allocation5 + $0x890] sm:$0xff]  ;;  %v290_v39 = vld [vmem:[#allocation5 + $0x578] sm:$0xff] }
  0xad   :  { %1353 = vmatpush.msra.mxu2 %v143_v42  ;;  %1373 = vmatpush.msra.mxu3 %v191_v43  ;;  %v338_v40 = vld [vmem:[#allocation5 + $0x6f8] sm:$0xff]  ;;  %v239_v42 = vld [vmem:[#allocation5 + $0x3e0] sm:$0xff] }
  0xae   :  { %1314 = vmatpush.msra.mxu0 %v907_v44  ;;  %1334 = vmatpush.msra.mxu1 %v955_v45  ;;  %v386_v41 = vld [vmem:[#allocation5 + $0x878] sm:$0xff]  ;;  %v287_v43 = vld [vmem:[#allocation5 + $0x560] sm:$0xff] }
  0xaf   :  { %1354 = vmatpush.msra.mxu2 %v140_v46  ;;  %1374 = vmatpush.msra.mxu3 %v188_v47  ;;  %v335_v44 = vld [vmem:[#allocation5 + $0x6e0] sm:$0xff]  ;;  %v236_v46 = vld [vmem:[#allocation5 + $0x3c8] sm:$0xff] }
  0xb0   :  { %1315 = vmatpush.msra.mxu0 %v904_v48  ;;  %1335 = vmatpush.msra.mxu1 %v952_v49  ;;  %v383_v45 = vld [vmem:[#allocation5 + $0x860] sm:$0xff]  ;;  %v284_v47 = vld [vmem:[#allocation5 + $0x548] sm:$0xff] }
  0xb1   :  { %1355 = vmatpush.msra.mxu2 %v137_v50  ;;  %1375 = vmatpush.msra.mxu3 %v185_v51  ;;  %v332_v48 = vld [vmem:[#allocation5 + $0x6c8] sm:$0xff]  ;;  %v233_v50 = vld [vmem:[#allocation5 + $0x3b0] sm:$0xff] }
  0xb2   :  { %1316 = vmatpush.msra.mxu0 %v901_v52  ;;  %1336 = vmatpush.msra.mxu1 %v949_v53  ;;  %v380_v49 = vld [vmem:[#allocation5 + $0x848] sm:$0xff]  ;;  %v281_v51 = vld [vmem:[#allocation5 + $0x530] sm:$0xff] }
  0xb3   :  { %1356 = vmatpush.msra.mxu2 %v134_v54  ;;  %1376 = vmatpush.msra.mxu3 %v182_v55  ;;  %v329_v52 = vld [vmem:[#allocation5 + $0x6b0] sm:$0xff]  ;;  %v230_v54 = vld [vmem:[#allocation5 + $0x398] sm:$0xff] }
  0xb4   :  { %1317 = vmatpush.msra.mxu0 %v898_v56  ;;  %1337 = vmatpush.msra.mxu1 %v946_v57  ;;  %v377_v53 = vld [vmem:[#allocation5 + $0x830] sm:$0xff]  ;;  %v278_v55 = vld [vmem:[#allocation5 + $0x518] sm:$0xff] }
  0xb5   :  { %1357 = vmatpush.msra.mxu2 %v131_v58  ;;  %1377 = vmatpush.msra.mxu3 %v179_v59  ;;  %v326_v56 = vld [vmem:[#allocation5 + $0x698] sm:$0xff]  ;;  %v227_v58 = vld [vmem:[#allocation5 + $0x380] sm:$0xff] }
  0xb6   :  { %1318 = vmatpush.msra.mxu0 %v895_v60  ;;  %1338 = vmatpush.msra.mxu1 %v943_v61  ;;  %v374_v57 = vld [vmem:[#allocation5 + $0x818] sm:$0xff]  ;;  %v275_v59 = vld [vmem:[#allocation5 + $0x500] sm:$0xff] }
  0xb7   :  { %1358 = vmatpush.msra.mxu2 %v128_v62  ;;  %1378 = vmatpush.msra.mxu3 %v176_v63  ;;  %v323_v60 = vld [vmem:[#allocation5 + $0x680] sm:$0xff]  ;;  %v224_v62 = vld [vmem:[#allocation5 + $0x368] sm:$0xff] }
  0xb8   :  { %1319 = vmatpush.msra.mxu0 %v892_v0  ;;  %1339 = vmatpush.msra.mxu1 %v940_v1  ;;  %v371_v61 = vld [vmem:[#allocation5 + $0x800] sm:$0xff]  ;;  %v272_v63 = vld [vmem:[#allocation5 + $0x4e8] sm:$0xff] }
  0xb9   :  { %1359 = vmatpush.msra.mxu2 %v125_v2  ;;  %1379 = vmatpush.msra.mxu3 %v173_v3  ;;  %v320_v0 = vld [vmem:[#allocation5 + $0x668] sm:$0xff]  ;;  %v221_v2 = vld [vmem:[#allocation5 + $0x350] sm:$0xff] }
  0xba   :  { %1320 = vmatpush.msra.mxu0 %v889_v4  ;;  %1340 = vmatpush.msra.mxu1 %v937_v5  ;;  %v368_v1 = vld [vmem:[#allocation5 + $0x7e8] sm:$0xff]  ;;  %v269_v3 = vld [vmem:[#allocation5 + $0x4d0] sm:$0xff] }
  0xbb   :  { %1360 = vmatpush.msra.mxu2 %v122_v6  ;;  %1380 = vmatpush.msra.mxu3 %v170_v7  ;;  %v317_v4 = vld [vmem:[#allocation5 + $0x650] sm:$0xff]  ;;  %v218_v6 = vld [vmem:[#allocation5 + $0x338] sm:$0xff] }
  0xbc   :  { %1321 = vmatpush.msra.mxu0 %v886_v8  ;;  %1341 = vmatpush.msra.mxu1 %v934_v9  ;;  %v365_v5 = vld [vmem:[#allocation5 + $0x7d0] sm:$0xff]  ;;  %v266_v7 = vld [vmem:[#allocation5 + $0x4b8] sm:$0xff] }
  0xbd   :  { %1361 = vmatpush.msra.mxu2 %v119_v10  ;;  %1381 = vmatpush.msra.mxu3 %v167_v11  ;;  %v314_v8 = vld [vmem:[#allocation5 + $0x638] sm:$0xff]  ;;  %v215_v10 = vld [vmem:[#allocation5 + $0x320] sm:$0xff] }
  0xbe   :  { %1322 = vmatpush.msra.mxu0 %v883_v12  ;;  %1342 = vmatpush.msra.mxu1 %v931_v13  ;;  %v362_v9 = vld [vmem:[#allocation5 + $0x7b8] sm:$0xff]  ;;  %v263_v11 = vld [vmem:[#allocation5 + $0x4a0] sm:$0xff] }
  0xbf   :  { %1362 = vmatpush.msra.mxu2 %v116_v14  ;;  %1382 = vmatpush.msra.mxu3 %v164_v15  ;;  %v311_v12 = vld [vmem:[#allocation5 + $0x620] sm:$0xff]  ;;  %v212_v14 = vld [vmem:[#allocation5 + $0x308] sm:$0xff] }
  0xc0   :  { %1323 = vmatmul.f32.vlgmr.msra.gmra.mxu0 %v113_v16  ;;  %1407 = vmatpush.msrb.mxu1 %v305_v17  ;;  %v359_v13 = vld [vmem:[#allocation5 + $0x7a0] sm:$0xff]  ;;  %v260_v15 = vld [vmem:[#allocation5 + $0x488] sm:$0xff] }
  0xc1   :  { %1387 = vmatpush.msrb.mxu0 %v257_v18  ;;  %1427 = vmatpush.msrb.mxu2 %v353_v19  ;;  %v308_v16 = vld [vmem:[#allocation5 + $0x608] sm:$0xff]  ;;  %v449_v18 = vld [vmem:[#allocation5 + $0xa70] sm:$0xff] }
  0xc2   :  { %1447 = vmatpush.msrb.mxu3 %v401_v20  ;;  %1343 = vmatmul.f32.vlgmr.msra.gmra.mxu1 %v114_v21  ;;  %v356_v17 = vld [vmem:[#allocation5 + $0x788] sm:$0xff]  ;;  %v497_v19 = vld [vmem:[#allocation5 + $0xbf0] sm:$0xff] }
  0xc3   :  { %1388 = vmatpush.msrb.mxu0 %v254_v22  ;;  %1408 = vmatpush.msrb.mxu1 %v302_v23  ;;  %v545_v20 = vld [vmem:[#allocation5 + $0xd70] sm:$0xff]  ;;  %v2414_v23 = vld [vmem:[#allocation2 + $0x8] sm:$0xff] }
  0xc4   :  { %1428 = vmatpush.msrb.mxu2 %v350_v24  ;;  %1448 = vmatpush.msrb.mxu3 %v398_v25  ;;  %v593_v21 = vld [vmem:[#allocation5 + $0xef0] sm:$0xff]  ;;  %v446_v24 = vld [vmem:[#allocation5 + $0xa58] sm:$0xff] }
  0xc5   :  { %1389 = vmatpush.msrb.mxu0 %v251_v26  ;;  %1409 = vmatpush.msrb.mxu1 %v299_v27  ;;  %v2413_v22 = vld [vmem:[#allocation2] sm:$0xff]  ;;  %v494_v25 = vld [vmem:[#allocation5 + $0xbd8] sm:$0xff] }
  0xc6   :  { %1429 = vmatpush.msrb.mxu2 %v347_v28  ;;  %1449 = vmatpush.msrb.mxu3 %v395_v29  ;;  %v542_v26 = vld [vmem:[#allocation5 + $0xd58] sm:$0xff]  ;;  %v443_v28 = vld [vmem:[#allocation5 + $0xa40] sm:$0xff] }
  0xc7   :  { %1390 = vmatpush.msrb.mxu0 %v248_v30  ;;  %1410 = vmatpush.msrb.mxu1 %v296_v31  ;;  %v590_v27 = vld [vmem:[#allocation5 + $0xed8] sm:$0xff]  ;;  %v491_v29 = vld [vmem:[#allocation5 + $0xbc0] sm:$0xff] }
  0xc8   :  { %1430 = vmatpush.msrb.mxu2 %v344_v32  ;;  %1450 = vmatpush.msrb.mxu3 %v392_v33  ;;  %v539_v30 = vld [vmem:[#allocation5 + $0xd40] sm:$0xff]  ;;  %v440_v32 = vld [vmem:[#allocation5 + $0xa28] sm:$0xff] }
  0xc9   :  { %1391 = vmatpush.msrb.mxu0 %v245_v34  ;;  %1411 = vmatpush.msrb.mxu1 %v293_v35  ;;  %v587_v31 = vld [vmem:[#allocation5 + $0xec0] sm:$0xff]  ;;  %v488_v33 = vld [vmem:[#allocation5 + $0xba8] sm:$0xff] }
  0xca   :  { %1431 = vmatpush.msrb.mxu2 %v341_v36  ;;  %1451 = vmatpush.msrb.mxu3 %v389_v37  ;;  %v536_v34 = vld [vmem:[#allocation5 + $0xd28] sm:$0xff]  ;;  %v437_v36 = vld [vmem:[#allocation5 + $0xa10] sm:$0xff] }
  0xcb   :  { %1392 = vmatpush.msrb.mxu0 %v242_v38  ;;  %1412 = vmatpush.msrb.mxu1 %v290_v39  ;;  %v584_v35 = vld [vmem:[#allocation5 + $0xea8] sm:$0xff]  ;;  %v485_v37 = vld [vmem:[#allocation5 + $0xb90] sm:$0xff] }
  0xcc   :  { %1432 = vmatpush.msrb.mxu2 %v338_v40  ;;  %1452 = vmatpush.msrb.mxu3 %v386_v41  ;;  %v533_v38 = vld [vmem:[#allocation5 + $0xd10] sm:$0xff]  ;;  %v434_v40 = vld [vmem:[#allocation5 + $0x9f8] sm:$0xff] }
  0xcd   :  { %1393 = vmatpush.msrb.mxu0 %v239_v42  ;;  %1413 = vmatpush.msrb.mxu1 %v287_v43  ;;  %v581_v39 = vld [vmem:[#allocation5 + $0xe90] sm:$0xff]  ;;  %v482_v41 = vld [vmem:[#allocation5 + $0xb78] sm:$0xff] }
  0xce   :  { %1433 = vmatpush.msrb.mxu2 %v335_v44  ;;  %1453 = vmatpush.msrb.mxu3 %v383_v45  ;;  %v530_v42 = vld [vmem:[#allocation5 + $0xcf8] sm:$0xff]  ;;  %v431_v44 = vld [vmem:[#allocation5 + $0x9e0] sm:$0xff] }
  0xcf   :  { %1394 = vmatpush.msrb.mxu0 %v236_v46  ;;  %1414 = vmatpush.msrb.mxu1 %v284_v47  ;;  %v578_v43 = vld [vmem:[#allocation5 + $0xe78] sm:$0xff]  ;;  %v479_v45 = vld [vmem:[#allocation5 + $0xb60] sm:$0xff] }
  0xd0   :  { %1434 = vmatpush.msrb.mxu2 %v332_v48  ;;  %1454 = vmatpush.msrb.mxu3 %v380_v49  ;;  %v527_v46 = vld [vmem:[#allocation5 + $0xce0] sm:$0xff]  ;;  %v428_v48 = vld [vmem:[#allocation5 + $0x9c8] sm:$0xff] }
  0xd1   :  { %1395 = vmatpush.msrb.mxu0 %v233_v50  ;;  %1415 = vmatpush.msrb.mxu1 %v281_v51  ;;  %v575_v47 = vld [vmem:[#allocation5 + $0xe60] sm:$0xff]  ;;  %v476_v49 = vld [vmem:[#allocation5 + $0xb48] sm:$0xff] }
  0xd2   :  { %1435 = vmatpush.msrb.mxu2 %v329_v52  ;;  %1455 = vmatpush.msrb.mxu3 %v377_v53  ;;  %v524_v50 = vld [vmem:[#allocation5 + $0xcc8] sm:$0xff]  ;;  %v425_v52 = vld [vmem:[#allocation5 + $0x9b0] sm:$0xff] }
  0xd3   :  { %1396 = vmatpush.msrb.mxu0 %v230_v54  ;;  %1416 = vmatpush.msrb.mxu1 %v278_v55  ;;  %v572_v51 = vld [vmem:[#allocation5 + $0xe48] sm:$0xff]  ;;  %v473_v53 = vld [vmem:[#allocation5 + $0xb30] sm:$0xff] }
  0xd4   :  { %1436 = vmatpush.msrb.mxu2 %v326_v56  ;;  %1456 = vmatpush.msrb.mxu3 %v374_v57  ;;  %v521_v54 = vld [vmem:[#allocation5 + $0xcb0] sm:$0xff]  ;;  %v422_v56 = vld [vmem:[#allocation5 + $0x998] sm:$0xff] }
  0xd5   :  { %1397 = vmatpush.msrb.mxu0 %v227_v58  ;;  %1417 = vmatpush.msrb.mxu1 %v275_v59  ;;  %v569_v55 = vld [vmem:[#allocation5 + $0xe30] sm:$0xff]  ;;  %v470_v57 = vld [vmem:[#allocation5 + $0xb18] sm:$0xff] }
  0xd6   :  { %1437 = vmatpush.msrb.mxu2 %v323_v60  ;;  %1457 = vmatpush.msrb.mxu3 %v371_v61  ;;  %v518_v58 = vld [vmem:[#allocation5 + $0xc98] sm:$0xff]  ;;  %v419_v60 = vld [vmem:[#allocation5 + $0x980] sm:$0xff] }
  0xd7   :  { %1398 = vmatpush.msrb.mxu0 %v224_v62  ;;  %1418 = vmatpush.msrb.mxu1 %v272_v63  ;;  %v566_v59 = vld [vmem:[#allocation5 + $0xe18] sm:$0xff]  ;;  %v467_v61 = vld [vmem:[#allocation5 + $0xb00] sm:$0xff] }
  0xd8   :  { %1438 = vmatpush.msrb.mxu2 %v320_v0  ;;  %1458 = vmatpush.msrb.mxu3 %v368_v1  ;;  %v515_v62 = vld [vmem:[#allocation5 + $0xc80] sm:$0xff]  ;;  %v416_v0 = vld [vmem:[#allocation5 + $0x968] sm:$0xff] }
  0xd9   :  { %1399 = vmatpush.msrb.mxu0 %v221_v2  ;;  %1419 = vmatpush.msrb.mxu1 %v269_v3  ;;  %v563_v63 = vld [vmem:[#allocation5 + $0xe00] sm:$0xff]  ;;  %v464_v1 = vld [vmem:[#allocation5 + $0xae8] sm:$0xff] }
  0xda   :  { %1439 = vmatpush.msrb.mxu2 %v317_v4  ;;  %1459 = vmatpush.msrb.mxu3 %v365_v5  ;;  %v512_v2 = vld [vmem:[#allocation5 + $0xc68] sm:$0xff]  ;;  %v413_v4 = vld [vmem:[#allocation5 + $0x950] sm:$0xff] }
  0xdb   :  { %1400 = vmatpush.msrb.mxu0 %v218_v6  ;;  %1420 = vmatpush.msrb.mxu1 %v266_v7  ;;  %v560_v3 = vld [vmem:[#allocation5 + $0xde8] sm:$0xff]  ;;  %v461_v5 = vld [vmem:[#allocation5 + $0xad0] sm:$0xff] }
  0xdc   :  { %1440 = vmatpush.msrb.mxu2 %v314_v8  ;;  %1460 = vmatpush.msrb.mxu3 %v362_v9  ;;  %v509_v6 = vld [vmem:[#allocation5 + $0xc50] sm:$0xff]  ;;  %v410_v8 = vld [vmem:[#allocation5 + $0x938] sm:$0xff] }
  0xdd   :  { %1401 = vmatpush.msrb.mxu0 %v215_v10  ;;  %1421 = vmatpush.msrb.mxu1 %v263_v11  ;;  %v557_v7 = vld [vmem:[#allocation5 + $0xdd0] sm:$0xff]  ;;  %v458_v9 = vld [vmem:[#allocation5 + $0xab8] sm:$0xff] }
  0xde   :  { %1441 = vmatpush.msrb.mxu2 %v311_v12  ;;  %1461 = vmatpush.msrb.mxu3 %v359_v13  ;;  %v506_v10 = vld [vmem:[#allocation5 + $0xc38] sm:$0xff]  ;;  %v407_v12 = vld [vmem:[#allocation5 + $0x920] sm:$0xff] }
  0xdf   :  { %1402 = vmatpush.msrb.mxu0 %v212_v14  ;;  %1422 = vmatpush.msrb.mxu1 %v260_v15  ;;  %v554_v11 = vld [vmem:[#allocation5 + $0xdb8] sm:$0xff]  ;;  %v455_v13 = vld [vmem:[#allocation5 + $0xaa0] sm:$0xff] }
  0xe0   :  { %1442 = vmatpush.msrb.mxu2 %v308_v16  ;;  %1462 = vmatpush.msrb.mxu3 %v356_v17  ;;  %v503_v14 = vld [vmem:[#allocation5 + $0xc20] sm:$0xff]  ;;  %v404_v16 = vld [vmem:[#allocation5 + $0x908] sm:$0xff] }
  0xe1   :  { %1363 = vmatmul.f32.vlgmr.msra.gmra.mxu2 %v2413_v22  ;;  %1383 = vmatmul.f32.vlgmr.msra.gmra.mxu3 %v2414_v23  ;;  %v551_v15 = vld [vmem:[#allocation5 + $0xda0] sm:$0xff]  ;;  %v452_v17 = vld [vmem:[#allocation5 + $0xa88] sm:$0xff]  ;;  %v689_v22 = vld [vmem:[#allocation5 + $0x11f0] sm:$0xff] }
  0xe2   :  { %1467 = vmatpush.msra.mxu0 %v449_v18  ;;  %1487 = vmatpush.msra.mxu1 %v497_v19  ;;  %v500_v18 = vld [vmem:[#allocation5 + $0xc08] sm:$0xff]  ;;  %v2416_v23 = vld [vmem:[#allocation2 + $0x10] sm:$0xff] }
  0xe3   :  { %1507 = vmatpush.msra.mxu2 %v545_v20  ;;  %1527 = vmatpush.msra.mxu3 %v593_v21  ;;  %v548_v19 = vld [vmem:[#allocation5 + $0xd88] sm:$0xff]  ;;  %v2415_v20 = vld [vmem:[#allocation2 + $0x20] sm:$0xff] }
  0xe4   :  { %1468 = vmatpush.msra.mxu0 %v446_v24  ;;  %1488 = vmatpush.msra.mxu1 %v494_v25  ;;  %v641_v21 = vld [vmem:[#allocation5 + $0x1070] sm:$0xff] }
  0xe5   :  { %1508 = vmatpush.msra.mxu2 %v542_v26  ;;  %1528 = vmatpush.msra.mxu3 %v590_v27  ;;  %v737_v24 = vld [vmem:[#allocation5 + $0x1370] sm:$0xff]  ;;  %v2417_v26 = vld [vmem:[#allocation2 + $0x18] sm:$0xff]  ;;  %v2418_v27 = vld [vmem:[#allocation2 + $0x28] sm:$0xff] }
  0xe6   :  { %1469 = vmatpush.msra.mxu0 %v443_v28  ;;  %1489 = vmatpush.msra.mxu1 %v491_v29  ;;  %v785_v25 = vld [vmem:[#allocation5 + $0x14f0] sm:$0xff]  ;;  %v638_v28 = vld [vmem:[#allocation5 + $0x1058] sm:$0xff] }
  0xe7   :  { %1509 = vmatpush.msra.mxu2 %v539_v30  ;;  %1529 = vmatpush.msra.mxu3 %v587_v31  ;;  %v686_v29 = vld [vmem:[#allocation5 + $0x11d8] sm:$0xff] }
  0xe8   :  { %1470 = vmatpush.msra.mxu0 %v440_v32  ;;  %1490 = vmatpush.msra.mxu1 %v488_v33  ;;  %v734_v30 = vld [vmem:[#allocation5 + $0x1358] sm:$0xff]  ;;  %v635_v32 = vld [vmem:[#allocation5 + $0x1040] sm:$0xff] }
  0xe9   :  { %1510 = vmatpush.msra.mxu2 %v536_v34  ;;  %1530 = vmatpush.msra.mxu3 %v584_v35  ;;  %v782_v31 = vld [vmem:[#allocation5 + $0x14d8] sm:$0xff]  ;;  %v683_v33 = vld [vmem:[#allocation5 + $0x11c0] sm:$0xff] }
  0xea   :  { %1471 = vmatpush.msra.mxu0 %v437_v36  ;;  %1491 = vmatpush.msra.mxu1 %v485_v37  ;;  %v731_v34 = vld [vmem:[#allocation5 + $0x1340] sm:$0xff]  ;;  %v632_v36 = vld [vmem:[#allocation5 + $0x1028] sm:$0xff] }
  0xeb   :  { %1511 = vmatpush.msra.mxu2 %v533_v38  ;;  %1531 = vmatpush.msra.mxu3 %v581_v39  ;;  %v779_v35 = vld [vmem:[#allocation5 + $0x14c0] sm:$0xff]  ;;  %v680_v37 = vld [vmem:[#allocation5 + $0x11a8] sm:$0xff] }
  0xec   :  { %1472 = vmatpush.msra.mxu0 %v434_v40  ;;  %1492 = vmatpush.msra.mxu1 %v482_v41  ;;  %v728_v38 = vld [vmem:[#allocation5 + $0x1328] sm:$0xff]  ;;  %v2419_v40 = vld [vmem:[#allocation2 + $0x40] sm:$0xff] }
  0xed   :  { %1512 = vmatpush.msra.mxu2 %v530_v42  ;;  %1532 = vmatpush.msra.mxu3 %v578_v43  ;;  %v776_v39 = vld [vmem:[#allocation5 + $0x14a8] sm:$0xff]  ;;  %v629_v41 = vld [vmem:[#allocation5 + $0x1010] sm:$0xff] }
  0xee   :  { %1473 = vmatpush.msra.mxu0 %v431_v44  ;;  %1493 = vmatpush.msra.mxu1 %v479_v45  ;;  %v677_v42 = vld [vmem:[#allocation5 + $0x1190] sm:$0xff]  ;;  %v2420_v44 = vld [vmem:[#allocation2 + $0x30] sm:$0xff] }
  0xef   :  { %1513 = vmatpush.msra.mxu2 %v527_v46  ;;  %1533 = vmatpush.msra.mxu3 %v575_v47  ;;  %v725_v43 = vld [vmem:[#allocation5 + $0x1310] sm:$0xff]  ;;  %v2421_v46 = vld [vmem:[#allocation2 + $0x48] sm:$0xff] }
  0xf0   :  { %1474 = vmatpush.msra.mxu0 %v428_v48  ;;  %1494 = vmatpush.msra.mxu1 %v476_v49  ;;  %v773_v45 = vld [vmem:[#allocation5 + $0x1490] sm:$0xff]  ;;  %v626_v47 = vld [vmem:[#allocation5 + $0xff8] sm:$0xff] }
  0xf1   :  { %1514 = vmatpush.msra.mxu2 %v524_v50  ;;  %1534 = vmatpush.msra.mxu3 %v572_v51  ;;  %v674_v48 = vld [vmem:[#allocation5 + $0x1178] sm:$0xff]  ;;  %v2422_v51 = vld [vmem:[#allocation2 + $0x38] sm:$0xff] }
  0xf2   :  { %1475 = vmatpush.msra.mxu0 %v425_v52  ;;  %1495 = vmatpush.msra.mxu1 %v473_v53  ;;  %v722_v49 = vld [vmem:[#allocation5 + $0x12f8] sm:$0xff]  ;;  %v623_v52 = vld [vmem:[#allocation5 + $0xfe0] sm:$0xff] }
  0xf3   :  { %1515 = vmatpush.msra.mxu2 %v521_v54  ;;  %1535 = vmatpush.msra.mxu3 %v569_v55  ;;  %v770_v50 = vld [vmem:[#allocation5 + $0x1478] sm:$0xff]  ;;  %v671_v53 = vld [vmem:[#allocation5 + $0x1160] sm:$0xff] }
  0xf4   :  { %1476 = vmatpush.msra.mxu0 %v422_v56  ;;  %1496 = vmatpush.msra.mxu1 %v470_v57  ;;  %v719_v54 = vld [vmem:[#allocation5 + $0x12e0] sm:$0xff]  ;;  %v620_v56 = vld [vmem:[#allocation5 + $0xfc8] sm:$0xff] }
  0xf5   :  { %1516 = vmatpush.msra.mxu2 %v518_v58  ;;  %1536 = vmatpush.msra.mxu3 %v566_v59  ;;  %v767_v55 = vld [vmem:[#allocation5 + $0x1460] sm:$0xff]  ;;  %v668_v57 = vld [vmem:[#allocation5 + $0x1148] sm:$0xff] }
  0xf6   :  { %1477 = vmatpush.msra.mxu0 %v419_v60  ;;  %1497 = vmatpush.msra.mxu1 %v467_v61  ;;  %v716_v58 = vld [vmem:[#allocation5 + $0x12c8] sm:$0xff]  ;;  %v617_v60 = vld [vmem:[#allocation5 + $0xfb0] sm:$0xff] }
  0xf7   :  { %1517 = vmatpush.msra.mxu2 %v515_v62  ;;  %1537 = vmatpush.msra.mxu3 %v563_v63  ;;  %v764_v59 = vld [vmem:[#allocation5 + $0x1448] sm:$0xff]  ;;  %v665_v61 = vld [vmem:[#allocation5 + $0x1130] sm:$0xff] }
  0xf8   :  { %1478 = vmatpush.msra.mxu0 %v416_v0  ;;  %1498 = vmatpush.msra.mxu1 %v464_v1  ;;  %v713_v62 = vld [vmem:[#allocation5 + $0x12b0] sm:$0xff]  ;;  %v614_v0 = vld [vmem:[#allocation5 + $0xf98] sm:$0xff] }
  0xf9   :  { %1518 = vmatpush.msra.mxu2 %v512_v2  ;;  %1538 = vmatpush.msra.mxu3 %v560_v3  ;;  %v761_v63 = vld [vmem:[#allocation5 + $0x1430] sm:$0xff]  ;;  %v662_v1 = vld [vmem:[#allocation5 + $0x1118] sm:$0xff] }
  0xfa   :  { %1479 = vmatpush.msra.mxu0 %v413_v4  ;;  %1499 = vmatpush.msra.mxu1 %v461_v5  ;;  %v710_v2 = vld [vmem:[#allocation5 + $0x1298] sm:$0xff]  ;;  %v611_v4 = vld [vmem:[#allocation5 + $0xf80] sm:$0xff] }
  0xfb   :  { %1519 = vmatpush.msra.mxu2 %v509_v6  ;;  %1539 = vmatpush.msra.mxu3 %v557_v7  ;;  %v758_v3 = vld [vmem:[#allocation5 + $0x1418] sm:$0xff]  ;;  %v659_v5 = vld [vmem:[#allocation5 + $0x1100] sm:$0xff] }
  0xfc   :  { %1480 = vmatpush.msra.mxu0 %v410_v8  ;;  %1500 = vmatpush.msra.mxu1 %v458_v9  ;;  %v707_v6 = vld [vmem:[#allocation5 + $0x1280] sm:$0xff]  ;;  %v608_v8 = vld [vmem:[#allocation5 + $0xf68] sm:$0xff] }
  0xfd   :  { %1520 = vmatpush.msra.mxu2 %v506_v10  ;;  %1540 = vmatpush.msra.mxu3 %v554_v11  ;;  %v755_v7 = vld [vmem:[#allocation5 + $0x1400] sm:$0xff]  ;;  %v656_v9 = vld [vmem:[#allocation5 + $0x10e8] sm:$0xff] }
  0xfe   :  { %1481 = vmatpush.msra.mxu0 %v407_v12  ;;  %1501 = vmatpush.msra.mxu1 %v455_v13  ;;  %v704_v10 = vld [vmem:[#allocation5 + $0x1268] sm:$0xff]  ;;  %v605_v12 = vld [vmem:[#allocation5 + $0xf50] sm:$0xff] }
  0xff   :  { %1521 = vmatpush.msra.mxu2 %v503_v14  ;;  %1541 = vmatpush.msra.mxu3 %v551_v15  ;;  %v752_v11 = vld [vmem:[#allocation5 + $0x13e8] sm:$0xff]  ;;  %v653_v13 = vld [vmem:[#allocation5 + $0x10d0] sm:$0xff] }
 0x100   :  { %1443 = vmatmul.f32.vlgmr.msrb.gmra.mxu2 %v2415_v20  ;;  %1482 = vmatpush.msra.mxu0 %v404_v16  ;;  %v701_v14 = vld [vmem:[#allocation5 + $0x1250] sm:$0xff]  ;;  %v602_v16 = vld [vmem:[#allocation5 + $0xf38] sm:$0xff]  ;;  %v599_v20 = vld [vmem:[#allocation5 + $0xf20] sm:$0xff] }
 0x101   :  { %1502 = vmatpush.msra.mxu1 %v452_v17  ;;  %1522 = vmatpush.msra.mxu2 %v500_v18  ;;  %v749_v15 = vld [vmem:[#allocation5 + $0x13d0] sm:$0xff]  ;;  %v650_v17 = vld [vmem:[#allocation5 + $0x10b8] sm:$0xff] }
 0x102   :  { %1542 = vmatpush.msra.mxu3 %v548_v19  ;;  %1403 = vmatmul.f32.vlgmr.msrb.gmra.mxu0 %v2416_v23  ;;  %v698_v18 = vld [vmem:[#allocation5 + $0x1238] sm:$0xff]  ;;  %v743_v23 = vld [vmem:[#allocation5 + $0x13a0] sm:$0xff] }
 0x103   :  { %1423 = vmatmul.f32.vlgmr.msrb.gmra.mxu1 %v2417_v26  ;;  %1463 = vmatmul.f32.vlgmr.msrb.gmra.mxu3 %v2418_v27  ;;  %v746_v19 = vld [vmem:[#allocation5 + $0x13b8] sm:$0xff]  ;;  %v692_v26 = vld [vmem:[#allocation5 + $0x1208] sm:$0xff] }
 0x104   :  { %1547 = vmatpush.msrb.mxu0 %v641_v21  ;;  %1567 = vmatpush.msrb.mxu1 %v689_v22  ;;  %v647_v21 = vld [vmem:[#allocation5 + $0x10a0] sm:$0xff]  ;;  %v740_v27 = vld [vmem:[#allocation5 + $0x1388] sm:$0xff] }
 0x105   :  { %1587 = vmatpush.msrb.mxu2 %v737_v24  ;;  %1607 = vmatpush.msrb.mxu3 %v785_v25  ;;  %v695_v22 = vld [vmem:[#allocation5 + $0x1220] sm:$0xff]  ;;  %v596_v24 = vld [vmem:[#allocation5 + $0xf08] sm:$0xff] }
 0x106   :  { %1548 = vmatpush.msrb.mxu0 %v638_v28  ;;  %1568 = vmatpush.msrb.mxu1 %v686_v29  ;;  %v644_v25 = vld [vmem:[#allocation5 + $0x1088] sm:$0xff]  ;;  %v833_v28 = vld [vmem:[#allocation5 + $0x1670] sm:$0xff] }
 0x107   :  { %1588 = vmatpush.msrb.mxu2 %v734_v30  ;;  %1608 = vmatpush.msrb.mxu3 %v782_v31  ;;  %v881_v29 = vld [vmem:[#allocation5 + $0x17f0] sm:$0xff] }
 0x108   :  { %1549 = vmatpush.msrb.mxu0 %v635_v32  ;;  %1569 = vmatpush.msrb.mxu1 %v683_v33  ;;  %v929_v30 = vld [vmem:[#allocation5 + $0x1970] sm:$0xff]  ;;  %v2423_v32 = vld [vmem:[#allocation2 + $0x50] sm:$0xff] }
 0x109   :  { %1589 = vmatpush.msrb.mxu2 %v731_v34  ;;  %1609 = vmatpush.msrb.mxu3 %v779_v35  ;;  %v977_v31 = vld [vmem:[#allocation5 + $0x1af0] sm:$0xff]  ;;  %v830_v34 = vld [vmem:[#allocation5 + $0x1658] sm:$0xff] }
 0x10a   :  { %1523 = vmatmul.f32.vlgmr.msra.gmra.mxu2 %v2419_v40  ;;  %1550 = vmatpush.msrb.mxu0 %v632_v36  ;;  %v2424_v33 = vld [vmem:[#allocation2 + $0x60] sm:$0xff]  ;;  %v878_v35 = vld [vmem:[#allocation5 + $0x17d8] sm:$0xff]  ;;  %v827_v40 = vld [vmem:[#allocation5 + $0x1640] sm:$0xff] }
 0x10b   :  { %1570 = vmatpush.msrb.mxu1 %v680_v37  ;;  %1590 = vmatpush.msrb.mxu2 %v728_v38  ;;  %v926_v36 = vld [vmem:[#allocation5 + $0x1958] sm:$0xff]  ;;  %v2425_v38 = vld [vmem:[#allocation2 + $0x58] sm:$0xff] }
 0x10c   :  { %1610 = vmatpush.msrb.mxu3 %v776_v39  ;;  %1483 = vmatmul.f32.vlgmr.msra.gmra.mxu0 %v2420_v44  ;;  %v974_v37 = vld [vmem:[#allocation5 + $0x1ad8] sm:$0xff]  ;;  %v824_v44 = vld [vmem:[#allocation5 + $0x1628] sm:$0xff] }
 0x10d   :  { %1543 = vmatmul.f32.vlgmr.msra.gmra.mxu3 %v2421_v46  ;;  %1551 = vmatpush.msrb.mxu0 %v629_v41  ;;  %v2426_v39 = vld [vmem:[#allocation2 + $0x68] sm:$0xff]  ;;  %v875_v41 = vld [vmem:[#allocation5 + $0x17c0] sm:$0xff]  ;;  %v920_v46 = vld [vmem:[#allocation5 + $0x1928] sm:$0xff] }
 0x10e   :  { %1571 = vmatpush.msrb.mxu1 %v677_v42  ;;  %1591 = vmatpush.msrb.mxu2 %v725_v43  ;;  %v923_v42 = vld [vmem:[#allocation5 + $0x1940] sm:$0xff] }
 0x10f   :  { %1611 = vmatpush.msrb.mxu3 %v773_v45  ;;  %1503 = vmatmul.f32.vlgmr.msra.gmra.mxu1 %v2422_v51  ;;  %v971_v43 = vld [vmem:[#allocation5 + $0x1ac0] sm:$0xff]  ;;  %v872_v45 = vld [vmem:[#allocation5 + $0x17a8] sm:$0xff]  ;;  %v965_v51 = vld [vmem:[#allocation5 + $0x1a90] sm:$0xff] }
 0x110   :  { %1552 = vmatpush.msrb.mxu0 %v626_v47  ;;  %1572 = vmatpush.msrb.mxu1 %v674_v48  ;;  %v968_v47 = vld [vmem:[#allocation5 + $0x1aa8] sm:$0xff]  ;;  %v821_v48 = vld [vmem:[#allocation5 + $0x1610] sm:$0xff] }
 0x111   :  { %1592 = vmatpush.msrb.mxu2 %v722_v49  ;;  %1612 = vmatpush.msrb.mxu3 %v770_v50  ;;  %v869_v49 = vld [vmem:[#allocation5 + $0x1790] sm:$0xff] }
 0x112   :  { %1553 = vmatpush.msrb.mxu0 %v623_v52  ;;  %1573 = vmatpush.msrb.mxu1 %v671_v53  ;;  %v917_v50 = vld [vmem:[#allocation5 + $0x1910] sm:$0xff]  ;;  %v818_v52 = vld [vmem:[#allocation5 + $0x15f8] sm:$0xff] }
 0x113   :  { %1593 = vmatpush.msrb.mxu2 %v719_v54  ;;  %1613 = vmatpush.msrb.mxu3 %v767_v55  ;;  %v866_v53 = vld [vmem:[#allocation5 + $0x1778] sm:$0xff] }
 0x114   :  { %1554 = vmatpush.msrb.mxu0 %v620_v56  ;;  %1574 = vmatpush.msrb.mxu1 %v668_v57  ;;  %v914_v54 = vld [vmem:[#allocation5 + $0x18f8] sm:$0xff]  ;;  %v815_v56 = vld [vmem:[#allocation5 + $0x15e0] sm:$0xff] }
 0x115   :  { %1594 = vmatpush.msrb.mxu2 %v716_v58  ;;  %1614 = vmatpush.msrb.mxu3 %v764_v59  ;;  %v962_v55 = vld [vmem:[#allocation5 + $0x1a78] sm:$0xff]  ;;  %v863_v57 = vld [vmem:[#allocation5 + $0x1760] sm:$0xff] }
 0x116   :  { %1555 = vmatpush.msrb.mxu0 %v617_v60  ;;  %1575 = vmatpush.msrb.mxu1 %v665_v61  ;;  %v911_v58 = vld [vmem:[#allocation5 + $0x18e0] sm:$0xff]  ;;  %v812_v60 = vld [vmem:[#allocation5 + $0x15c8] sm:$0xff] }
 0x117   :  { %1595 = vmatpush.msrb.mxu2 %v713_v62  ;;  %1615 = vmatpush.msrb.mxu3 %v761_v63  ;;  %v959_v59 = vld [vmem:[#allocation5 + $0x1a60] sm:$0xff]  ;;  %v860_v61 = vld [vmem:[#allocation5 + $0x1748] sm:$0xff] }
 0x118   :  { %1556 = vmatpush.msrb.mxu0 %v614_v0  ;;  %1576 = vmatpush.msrb.mxu1 %v662_v1  ;;  %v908_v62 = vld [vmem:[#allocation5 + $0x18c8] sm:$0xff]  ;;  %v809_v0 = vld [vmem:[#allocation5 + $0x15b0] sm:$0xff] }
 0x119   :  { %1596 = vmatpush.msrb.mxu2 %v710_v2  ;;  %1616 = vmatpush.msrb.mxu3 %v758_v3  ;;  %v956_v63 = vld [vmem:[#allocation5 + $0x1a48] sm:$0xff]  ;;  %v857_v1 = vld [vmem:[#allocation5 + $0x1730] sm:$0xff] }
 0x11a   :  { %1557 = vmatpush.msrb.mxu0 %v611_v4  ;;  %1577 = vmatpush.msrb.mxu1 %v659_v5  ;;  %v905_v2 = vld [vmem:[#allocation5 + $0x18b0] sm:$0xff]  ;;  %v806_v4 = vld [vmem:[#allocation5 + $0x1598] sm:$0xff] }
 0x11b   :  { %1597 = vmatpush.msrb.mxu2 %v707_v6  ;;  %1617 = vmatpush.msrb.mxu3 %v755_v7  ;;  %v953_v3 = vld [vmem:[#allocation5 + $0x1a30] sm:$0xff]  ;;  %v854_v5 = vld [vmem:[#allocation5 + $0x1718] sm:$0xff] }
 0x11c   :  { %1558 = vmatpush.msrb.mxu0 %v608_v8  ;;  %1578 = vmatpush.msrb.mxu1 %v656_v9  ;;  %v902_v6 = vld [vmem:[#allocation5 + $0x1898] sm:$0xff]  ;;  %v803_v8 = vld [vmem:[#allocation5 + $0x1580] sm:$0xff] }
 0x11d   :  { %1598 = vmatpush.msrb.mxu2 %v704_v10  ;;  %1618 = vmatpush.msrb.mxu3 %v752_v11  ;;  %v950_v7 = vld [vmem:[#allocation5 + $0x1a18] sm:$0xff]  ;;  %v851_v9 = vld [vmem:[#allocation5 + $0x1700] sm:$0xff] }
 0x11e   :  { %1559 = vmatpush.msrb.mxu0 %v605_v12  ;;  %1579 = vmatpush.msrb.mxu1 %v653_v13  ;;  %v899_v10 = vld [vmem:[#allocation5 + $0x1880] sm:$0xff]  ;;  %v800_v12 = vld [vmem:[#allocation5 + $0x1568] sm:$0xff] }
 0x11f   :  { %1599 = vmatpush.msrb.mxu2 %v701_v14  ;;  %1619 = vmatpush.msrb.mxu3 %v749_v15  ;;  %v947_v11 = vld [vmem:[#allocation5 + $0x1a00] sm:$0xff]  ;;  %v848_v13 = vld [vmem:[#allocation5 + $0x16e8] sm:$0xff] }
 0x120   :  { %1560 = vmatpush.msrb.mxu0 %v602_v16  ;;  %1580 = vmatpush.msrb.mxu1 %v650_v17  ;;  %v896_v14 = vld [vmem:[#allocation5 + $0x1868] sm:$0xff]  ;;  %v797_v16 = vld [vmem:[#allocation5 + $0x1550] sm:$0xff] }
 0x121   :  { %1600 = vmatpush.msrb.mxu2 %v698_v18  ;;  %1620 = vmatpush.msrb.mxu3 %v746_v19  ;;  %v944_v15 = vld [vmem:[#allocation5 + $0x19e8] sm:$0xff]  ;;  %v845_v17 = vld [vmem:[#allocation5 + $0x16d0] sm:$0xff] }
 0x122   :  { %1561 = vmatpush.msrb.mxu0 %v599_v20  ;;  %1581 = vmatpush.msrb.mxu1 %v647_v21  ;;  %v893_v18 = vld [vmem:[#allocation5 + $0x1850] sm:$0xff]  ;;  %v794_v20 = vld [vmem:[#allocation5 + $0x1538] sm:$0xff] }
 0x123   :  { %1601 = vmatpush.msrb.mxu2 %v695_v22  ;;  %1621 = vmatpush.msrb.mxu3 %v743_v23  ;;  %v941_v19 = vld [vmem:[#allocation5 + $0x19d0] sm:$0xff]  ;;  %v842_v21 = vld [vmem:[#allocation5 + $0x16b8] sm:$0xff] }
 0x124   :  { %1562 = vmatpush.msrb.mxu0 %v596_v24  ;;  %1582 = vmatpush.msrb.mxu1 %v644_v25  ;;  %v890_v22 = vld [vmem:[#allocation5 + $0x1838] sm:$0xff]  ;;  %v791_v24 = vld [vmem:[#allocation5 + $0x1520] sm:$0xff] }
 0x125   :  { %1602 = vmatpush.msrb.mxu2 %v692_v26  ;;  %1622 = vmatpush.msrb.mxu3 %v740_v27  ;;  %v938_v23 = vld [vmem:[#allocation5 + $0x19b8] sm:$0xff]  ;;  %v839_v25 = vld [vmem:[#allocation5 + $0x16a0] sm:$0xff] }
 0x126   :  { %1563 = vmatmul.f32.vlgmr.msrb.gmra.mxu0 %v2423_v32  ;;  %1603 = vmatmul.f32.vlgmr.msrb.gmra.mxu2 %v2424_v33  ;;  %v887_v26 = vld [vmem:[#allocation5 + $0x1820] sm:$0xff]  ;;  %v162_v32 = vld [vmem:[#allocation5 + $0x178] sm:$0xff] }
 0x127   :  { %1627 = vmatpush.msra.mxu0 %v833_v28  ;;  %1647 = vmatpush.msra.mxu1 %v881_v29  ;;  %v935_v27 = vld [vmem:[#allocation5 + $0x19a0] sm:$0xff]  ;;  %v788_v28 = vld [vmem:[#allocation5 + $0x1508] sm:$0xff]  ;;  %v210_v33 = vld [vmem:[#allocation5 + $0x2f8] sm:$0xff] }
 0x128   :  { %1667 = vmatpush.msra.mxu2 %v929_v30  ;;  %1687 = vmatpush.msra.mxu3 %v977_v31  ;;  %v836_v29 = vld [vmem:[#allocation5 + $0x1688] sm:$0xff] }
 0x129   :  { %1583 = vmatmul.f32.vlgmr.msrb.gmra.mxu1 %v2425_v38  ;;  %1623 = vmatmul.f32.vlgmr.msrb.gmra.mxu3 %v2426_v39  ;;  %v884_v30 = vld [vmem:[#allocation5 + $0x1808] sm:$0xff]  ;;  %v159_v38 = vld [vmem:[#allocation5 + $0x160] sm:$0xff] }
 0x12a   :  { %1628 = vmatpush.msra.mxu0 %v830_v34  ;;  %1648 = vmatpush.msra.mxu1 %v878_v35  ;;  %v932_v31 = vld [vmem:[#allocation5 + $0x1988] sm:$0xff]  ;;  %v258_v34 = vld [vmem:[#allocation5 + $0x478] sm:$0xff]  ;;  %v207_v39 = vld [vmem:[#allocation5 + $0x2e0] sm:$0xff] }
 0x12b   :  { %1668 = vmatpush.msra.mxu2 %v926_v36  ;;  %1688 = vmatpush.msra.mxu3 %v974_v37  ;;  %v306_v35 = vld [vmem:[#allocation5 + $0x5f8] sm:$0xff]  ;;  %v2427_v36 = vld [vmem:[#allocation2 + $0x70] sm:$0xff]  ;;  %v2428_v37 = vld [vmem:[#allocation2 + $0x80] sm:$0xff] }
 0x12c   :  { %1629 = vmatpush.msra.mxu0 %v827_v40  ;;  %1649 = vmatpush.msra.mxu1 %v875_v41  ;;  %v255_v40 = vld [vmem:[#allocation5 + $0x460] sm:$0xff] }
 0x12d   :  { %1669 = vmatpush.msra.mxu2 %v923_v42  ;;  %1689 = vmatpush.msra.mxu3 %v971_v43  ;;  %v303_v41 = vld [vmem:[#allocation5 + $0x5e0] sm:$0xff]  ;;  %v2429_v42 = vld [vmem:[#allocation2 + $0x78] sm:$0xff]  ;;  %v2430_v43 = vld [vmem:[#allocation2 + $0x88] sm:$0xff] }
 0x12e   :  { %1630 = vmatpush.msra.mxu0 %v824_v44  ;;  %1650 = vmatpush.msra.mxu1 %v872_v45  ;;  %v156_v44 = vld [vmem:[#allocation5 + $0x148] sm:$0xff] }
 0x12f   :  { %1670 = vmatpush.msra.mxu2 %v920_v46  ;;  %1690 = vmatpush.msra.mxu3 %v968_v47  ;;  %v204_v45 = vld [vmem:[#allocation5 + $0x2c8] sm:$0xff] }
 0x130   :  { %1631 = vmatpush.msra.mxu0 %v821_v48  ;;  %1651 = vmatpush.msra.mxu1 %v869_v49  ;;  %v252_v46 = vld [vmem:[#allocation5 + $0x448] sm:$0xff]  ;;  %v153_v48 = vld [vmem:[#allocation5 + $0x130] sm:$0xff] }
 0x131   :  { %1671 = vmatpush.msra.mxu2 %v917_v50  ;;  %1691 = vmatpush.msra.mxu3 %v965_v51  ;;  %v300_v47 = vld [vmem:[#allocation5 + $0x5c8] sm:$0xff]  ;;  %v201_v49 = vld [vmem:[#allocation5 + $0x2b0] sm:$0xff] }
 0x132   :  { %1632 = vmatpush.msra.mxu0 %v818_v52  ;;  %1652 = vmatpush.msra.mxu1 %v866_v53  ;;  %v249_v50 = vld [vmem:[#allocation5 + $0x430] sm:$0xff]  ;;  %v150_v52 = vld [vmem:[#allocation5 + $0x118] sm:$0xff] }
 0x133   :  { %1672 = vmatpush.msra.mxu2 %v914_v54  ;;  %1692 = vmatpush.msra.mxu3 %v962_v55  ;;  %v297_v51 = vld [vmem:[#allocation5 + $0x5b0] sm:$0xff]  ;;  %v198_v53 = vld [vmem:[#allocation5 + $0x298] sm:$0xff] }
 0x134   :  { %1633 = vmatpush.msra.mxu0 %v815_v56  ;;  %1653 = vmatpush.msra.mxu1 %v863_v57  ;;  %v246_v54 = vld [vmem:[#allocation5 + $0x418] sm:$0xff]  ;;  %v147_v56 = vld [vmem:[#allocation5 + $0x100] sm:$0xff] }
 0x135   :  { %1673 = vmatpush.msra.mxu2 %v911_v58  ;;  %1693 = vmatpush.msra.mxu3 %v959_v59  ;;  %v294_v55 = vld [vmem:[#allocation5 + $0x598] sm:$0xff]  ;;  %v195_v57 = vld [vmem:[#allocation5 + $0x280] sm:$0xff] }
 0x136   :  { %1634 = vmatpush.msra.mxu0 %v812_v60  ;;  %1654 = vmatpush.msra.mxu1 %v860_v61  ;;  %v243_v58 = vld [vmem:[#allocation5 + $0x400] sm:$0xff]  ;;  %v144_v60 = vld [vmem:[#allocation5 + $0xe8] sm:$0xff] }
 0x137   :  { %1674 = vmatpush.msra.mxu2 %v908_v62  ;;  %1694 = vmatpush.msra.mxu3 %v956_v63  ;;  %v291_v59 = vld [vmem:[#allocation5 + $0x580] sm:$0xff]  ;;  %v192_v61 = vld [vmem:[#allocation5 + $0x268] sm:$0xff] }
 0x138   :  { %1635 = vmatpush.msra.mxu0 %v809_v0  ;;  %1655 = vmatpush.msra.mxu1 %v857_v1  ;;  %v240_v62 = vld [vmem:[#allocation5 + $0x3e8] sm:$0xff]  ;;  %v141_v0 = vld [vmem:[#allocation5 + $0xd0] sm:$0xff] }
 0x139   :  { %1675 = vmatpush.msra.mxu2 %v905_v2  ;;  %1695 = vmatpush.msra.mxu3 %v953_v3  ;;  %v288_v63 = vld [vmem:[#allocation5 + $0x568] sm:$0xff]  ;;  %v189_v1 = vld [vmem:[#allocation5 + $0x250] sm:$0xff] }
 0x13a   :  { %1636 = vmatpush.msra.mxu0 %v806_v4  ;;  %1656 = vmatpush.msra.mxu1 %v854_v5  ;;  %v237_v2 = vld [vmem:[#allocation5 + $0x3d0] sm:$0xff]  ;;  %v138_v4 = vld [vmem:[#allocation5 + $0xb8] sm:$0xff] }
 0x13b   :  { %1676 = vmatpush.msra.mxu2 %v902_v6  ;;  %1696 = vmatpush.msra.mxu3 %v950_v7  ;;  %v285_v3 = vld [vmem:[#allocation5 + $0x550] sm:$0xff]  ;;  %v186_v5 = vld [vmem:[#allocation5 + $0x238] sm:$0xff] }
 0x13c   :  { %1637 = vmatpush.msra.mxu0 %v803_v8  ;;  %1657 = vmatpush.msra.mxu1 %v851_v9  ;;  %v234_v6 = vld [vmem:[#allocation5 + $0x3b8] sm:$0xff]  ;;  %v135_v8 = vld [vmem:[#allocation5 + $0xa0] sm:$0xff] }
 0x13d   :  { %1677 = vmatpush.msra.mxu2 %v899_v10  ;;  %1697 = vmatpush.msra.mxu3 %v947_v11  ;;  %v282_v7 = vld [vmem:[#allocation5 + $0x538] sm:$0xff]  ;;  %v183_v9 = vld [vmem:[#allocation5 + $0x220] sm:$0xff] }
 0x13e   :  { %1638 = vmatpush.msra.mxu0 %v800_v12  ;;  %1658 = vmatpush.msra.mxu1 %v848_v13  ;;  %v231_v10 = vld [vmem:[#allocation5 + $0x3a0] sm:$0xff]  ;;  %v132_v12 = vld [vmem:[#allocation5 + $0x88] sm:$0xff] }
 0x13f   :  { %1678 = vmatpush.msra.mxu2 %v896_v14  ;;  %1698 = vmatpush.msra.mxu3 %v944_v15  ;;  %v279_v11 = vld [vmem:[#allocation5 + $0x520] sm:$0xff]  ;;  %v180_v13 = vld [vmem:[#allocation5 + $0x208] sm:$0xff] }
 0x140   :  { %1639 = vmatpush.msra.mxu0 %v797_v16  ;;  %1659 = vmatpush.msra.mxu1 %v845_v17  ;;  %v228_v14 = vld [vmem:[#allocation5 + $0x388] sm:$0xff]  ;;  %v129_v16 = vld [vmem:[#allocation5 + $0x70] sm:$0xff] }
 0x141   :  { %1679 = vmatpush.msra.mxu2 %v893_v18  ;;  %1699 = vmatpush.msra.mxu3 %v941_v19  ;;  %v276_v15 = vld [vmem:[#allocation5 + $0x508] sm:$0xff]  ;;  %v177_v17 = vld [vmem:[#allocation5 + $0x1f0] sm:$0xff] }
 0x142   :  { %1640 = vmatpush.msra.mxu0 %v794_v20  ;;  %1660 = vmatpush.msra.mxu1 %v842_v21  ;;  %v225_v18 = vld [vmem:[#allocation5 + $0x370] sm:$0xff]  ;;  %v126_v20 = vld [vmem:[#allocation5 + $0x58] sm:$0xff] }
 0x143   :  { %1680 = vmatpush.msra.mxu2 %v890_v22  ;;  %1700 = vmatpush.msra.mxu3 %v938_v23  ;;  %v273_v19 = vld [vmem:[#allocation5 + $0x4f0] sm:$0xff]  ;;  %v174_v21 = vld [vmem:[#allocation5 + $0x1d8] sm:$0xff] }
 0x144   :  { %1641 = vmatpush.msra.mxu0 %v791_v24  ;;  %1661 = vmatpush.msra.mxu1 %v839_v25  ;;  %v222_v22 = vld [vmem:[#allocation5 + $0x358] sm:$0xff]  ;;  %v123_v24 = vld [vmem:[#allocation5 + $0x40] sm:$0xff] }
 0x145   :  { %1681 = vmatpush.msra.mxu2 %v887_v26  ;;  %1701 = vmatpush.msra.mxu3 %v935_v27  ;;  %v270_v23 = vld [vmem:[#allocation5 + $0x4d8] sm:$0xff]  ;;  %v171_v25 = vld [vmem:[#allocation5 + $0x1c0] sm:$0xff] }
 0x146   :  { %1642 = vmatpush.msra.mxu0 %v788_v28  ;;  %1662 = vmatpush.msra.mxu1 %v836_v29  ;;  %v219_v26 = vld [vmem:[#allocation5 + $0x340] sm:$0xff]  ;;  %v120_v28 = vld [vmem:[#allocation5 + $0x28] sm:$0xff] }
 0x147   :  { %1682 = vmatpush.msra.mxu2 %v884_v30  ;;  %1702 = vmatpush.msra.mxu3 %v932_v31  ;;  %v267_v27 = vld [vmem:[#allocation5 + $0x4c0] sm:$0xff]  ;;  %v168_v29 = vld [vmem:[#allocation5 + $0x1a8] sm:$0xff] }
 0x148   :  { %1643 = vmatmul.f32.vlgmr.msra.gmra.mxu0 %v2427_v36  ;;  %1683 = vmatmul.f32.vlgmr.msra.gmra.mxu2 %v2428_v37  ;;  %v216_v30 = vld [vmem:[#allocation5 + $0x328] sm:$0xff]  ;;  %v354_v36 = vld [vmem:[#allocation5 + $0x778] sm:$0xff] }
 0x149   :  { %1707 = vmatpush.msrb.mxu0 %v162_v32  ;;  %1727 = vmatpush.msrb.mxu1 %v210_v33  ;;  %v264_v31 = vld [vmem:[#allocation5 + $0x4a8] sm:$0xff]  ;;  %v117_v32 = vld [vmem:[#allocation5 + $0x10] sm:$0xff]  ;;  %v402_v37 = vld [vmem:[#allocation5 + $0x8f8] sm:$0xff] }
 0x14a   :  { %1747 = vmatpush.msrb.mxu2 %v258_v34  ;;  %1767 = vmatpush.msrb.mxu3 %v306_v35  ;;  %v165_v33 = vld [vmem:[#allocation5 + $0x190] sm:$0xff] }
 0x14b   :  { %1663 = vmatmul.f32.vlgmr.msra.gmra.mxu1 %v2429_v42  ;;  %1703 = vmatmul.f32.vlgmr.msra.gmra.mxu3 %v2430_v43  ;;  %v213_v34 = vld [vmem:[#allocation5 + $0x310] sm:$0xff]  ;;  %v447_v42 = vld [vmem:[#allocation5 + $0xa60] sm:$0xff] }
 0x14c   :  { %1708 = vmatpush.msrb.mxu0 %v159_v38  ;;  %1728 = vmatpush.msrb.mxu1 %v207_v39  ;;  %v261_v35 = vld [vmem:[#allocation5 + $0x490] sm:$0xff]  ;;  %v450_v38 = vld [vmem:[#allocation5 + $0xa78] sm:$0xff]  ;;  %v495_v43 = vld [vmem:[#allocation5 + $0xbe0] sm:$0xff] }
 0x14d   :  { %1748 = vmatpush.msrb.mxu2 %v255_v40  ;;  %1768 = vmatpush.msrb.mxu3 %v303_v41  ;;  %v498_v39 = vld [vmem:[#allocation5 + $0xbf8] sm:$0xff]  ;;  %v351_v40 = vld [vmem:[#allocation5 + $0x760] sm:$0xff] }
 0x14e   :  { %1709 = vmatpush.msrb.mxu0 %v156_v44  ;;  %1729 = vmatpush.msrb.mxu1 %v204_v45  ;;  %v399_v41 = vld [vmem:[#allocation5 + $0x8e0] sm:$0xff]  ;;  %v348_v44 = vld [vmem:[#allocation5 + $0x748] sm:$0xff] }
 0x14f   :  { %1749 = vmatpush.msrb.mxu2 %v252_v46  ;;  %1769 = vmatpush.msrb.mxu3 %v300_v47  ;;  %v396_v45 = vld [vmem:[#allocation5 + $0x8c8] sm:$0xff] }
 0x150   :  { %1710 = vmatpush.msrb.mxu0 %v153_v48  ;;  %1730 = vmatpush.msrb.mxu1 %v201_v49  ;;  %v444_v46 = vld [vmem:[#allocation5 + $0xa48] sm:$0xff]  ;;  %v345_v48 = vld [vmem:[#allocation5 + $0x730] sm:$0xff] }
 0x151   :  { %1750 = vmatpush.msrb.mxu2 %v249_v50  ;;  %1770 = vmatpush.msrb.mxu3 %v297_v51  ;;  %v492_v47 = vld [vmem:[#allocation5 + $0xbc8] sm:$0xff]  ;;  %v393_v49 = vld [vmem:[#allocation5 + $0x8b0] sm:$0xff] }
 0x152   :  { %1711 = vmatpush.msrb.mxu0 %v150_v52  ;;  %1731 = vmatpush.msrb.mxu1 %v198_v53  ;;  %v441_v50 = vld [vmem:[#allocation5 + $0xa30] sm:$0xff]  ;;  %v342_v52 = vld [vmem:[#allocation5 + $0x718] sm:$0xff] }
 0x153   :  { %1751 = vmatpush.msrb.mxu2 %v246_v54  ;;  %1771 = vmatpush.msrb.mxu3 %v294_v55  ;;  %v489_v51 = vld [vmem:[#allocation5 + $0xbb0] sm:$0xff]  ;;  %v390_v53 = vld [vmem:[#allocation5 + $0x898] sm:$0xff] }
 0x154   :  { %1712 = vmatpush.msrb.mxu0 %v147_v56  ;;  %1732 = vmatpush.msrb.mxu1 %v195_v57  ;;  %v438_v54 = vld [vmem:[#allocation5 + $0xa18] sm:$0xff]  ;;  %v339_v56 = vld [vmem:[#allocation5 + $0x700] sm:$0xff] }
 0x155   :  { %1752 = vmatpush.msrb.mxu2 %v243_v58  ;;  %1772 = vmatpush.msrb.mxu3 %v291_v59  ;;  %v486_v55 = vld [vmem:[#allocation5 + $0xb98] sm:$0xff]  ;;  %v387_v57 = vld [vmem:[#allocation5 + $0x880] sm:$0xff] }
 0x156   :  { %1713 = vmatpush.msrb.mxu0 %v144_v60  ;;  %1733 = vmatpush.msrb.mxu1 %v192_v61  ;;  %v435_v58 = vld [vmem:[#allocation5 + $0xa00] sm:$0xff]  ;;  %v336_v60 = vld [vmem:[#allocation5 + $0x6e8] sm:$0xff] }
 0x157   :  { %1753 = vmatpush.msrb.mxu2 %v240_v62  ;;  %1773 = vmatpush.msrb.mxu3 %v288_v63  ;;  %v483_v59 = vld [vmem:[#allocation5 + $0xb80] sm:$0xff]  ;;  %v384_v61 = vld [vmem:[#allocation5 + $0x868] sm:$0xff] }
 0x158   :  { %1714 = vmatpush.msrb.mxu0 %v141_v0  ;;  %1734 = vmatpush.msrb.mxu1 %v189_v1  ;;  %v432_v62 = vld [vmem:[#allocation5 + $0x9e8] sm:$0xff]  ;;  %v333_v0 = vld [vmem:[#allocation5 + $0x6d0] sm:$0xff] }
 0x159   :  { %1754 = vmatpush.msrb.mxu2 %v237_v2  ;;  %1774 = vmatpush.msrb.mxu3 %v285_v3  ;;  %v480_v63 = vld [vmem:[#allocation5 + $0xb68] sm:$0xff]  ;;  %v381_v1 = vld [vmem:[#allocation5 + $0x850] sm:$0xff] }
 0x15a   :  { %1715 = vmatpush.msrb.mxu0 %v138_v4  ;;  %1735 = vmatpush.msrb.mxu1 %v186_v5  ;;  %v429_v2 = vld [vmem:[#allocation5 + $0x9d0] sm:$0xff]  ;;  %v330_v4 = vld [vmem:[#allocation5 + $0x6b8] sm:$0xff] }
 0x15b   :  { %1755 = vmatpush.msrb.mxu2 %v234_v6  ;;  %1775 = vmatpush.msrb.mxu3 %v282_v7  ;;  %v477_v3 = vld [vmem:[#allocation5 + $0xb50] sm:$0xff]  ;;  %v378_v5 = vld [vmem:[#allocation5 + $0x838] sm:$0xff] }
 0x15c   :  { %1716 = vmatpush.msrb.mxu0 %v135_v8  ;;  %1736 = vmatpush.msrb.mxu1 %v183_v9  ;;  %v426_v6 = vld [vmem:[#allocation5 + $0x9b8] sm:$0xff]  ;;  %v327_v8 = vld [vmem:[#allocation5 + $0x6a0] sm:$0xff] }
 0x15d   :  { %1756 = vmatpush.msrb.mxu2 %v231_v10  ;;  %1776 = vmatpush.msrb.mxu3 %v279_v11  ;;  %v474_v7 = vld [vmem:[#allocation5 + $0xb38] sm:$0xff]  ;;  %v375_v9 = vld [vmem:[#allocation5 + $0x820] sm:$0xff] }
 0x15e   :  { %1717 = vmatpush.msrb.mxu0 %v132_v12  ;;  %1737 = vmatpush.msrb.mxu1 %v180_v13  ;;  %v423_v10 = vld [vmem:[#allocation5 + $0x9a0] sm:$0xff]  ;;  %v324_v12 = vld [vmem:[#allocation5 + $0x688] sm:$0xff] }
 0x15f   :  { %1757 = vmatpush.msrb.mxu2 %v228_v14  ;;  %1777 = vmatpush.msrb.mxu3 %v276_v15  ;;  %v471_v11 = vld [vmem:[#allocation5 + $0xb20] sm:$0xff]  ;;  %v372_v13 = vld [vmem:[#allocation5 + $0x808] sm:$0xff] }
 0x160   :  { %1718 = vmatpush.msrb.mxu0 %v129_v16  ;;  %1738 = vmatpush.msrb.mxu1 %v177_v17  ;;  %v420_v14 = vld [vmem:[#allocation5 + $0x988] sm:$0xff]  ;;  %v321_v16 = vld [vmem:[#allocation5 + $0x670] sm:$0xff] }
 0x161   :  { %1758 = vmatpush.msrb.mxu2 %v225_v18  ;;  %1778 = vmatpush.msrb.mxu3 %v273_v19  ;;  %v468_v15 = vld [vmem:[#allocation5 + $0xb08] sm:$0xff]  ;;  %v369_v17 = vld [vmem:[#allocation5 + $0x7f0] sm:$0xff] }
 0x162   :  { %1719 = vmatpush.msrb.mxu0 %v126_v20  ;;  %1739 = vmatpush.msrb.mxu1 %v174_v21  ;;  %v417_v18 = vld [vmem:[#allocation5 + $0x970] sm:$0xff]  ;;  %v318_v20 = vld [vmem:[#allocation5 + $0x658] sm:$0xff] }
 0x163   :  { %1759 = vmatpush.msrb.mxu2 %v222_v22  ;;  %1779 = vmatpush.msrb.mxu3 %v270_v23  ;;  %v465_v19 = vld [vmem:[#allocation5 + $0xaf0] sm:$0xff]  ;;  %v366_v21 = vld [vmem:[#allocation5 + $0x7d8] sm:$0xff] }
 0x164   :  { %1720 = vmatpush.msrb.mxu0 %v123_v24  ;;  %1740 = vmatpush.msrb.mxu1 %v171_v25  ;;  %v414_v22 = vld [vmem:[#allocation5 + $0x958] sm:$0xff]  ;;  %v315_v24 = vld [vmem:[#allocation5 + $0x640] sm:$0xff] }
 0x165   :  { %1760 = vmatpush.msrb.mxu2 %v219_v26  ;;  %1780 = vmatpush.msrb.mxu3 %v267_v27  ;;  %v462_v23 = vld [vmem:[#allocation5 + $0xad8] sm:$0xff]  ;;  %v363_v25 = vld [vmem:[#allocation5 + $0x7c0] sm:$0xff] }
 0x166   :  { %1721 = vmatpush.msrb.mxu0 %v120_v28  ;;  %1741 = vmatpush.msrb.mxu1 %v168_v29  ;;  %v411_v26 = vld [vmem:[#allocation5 + $0x940] sm:$0xff]  ;;  %v312_v28 = vld [vmem:[#allocation5 + $0x628] sm:$0xff] }
 0x167   :  { %1761 = vmatpush.msrb.mxu2 %v216_v30  ;;  %1781 = vmatpush.msrb.mxu3 %v264_v31  ;;  %v459_v27 = vld [vmem:[#allocation5 + $0xac0] sm:$0xff]  ;;  %v360_v29 = vld [vmem:[#allocation5 + $0x7a8] sm:$0xff] }
 0x168   :  { %1722 = vmatpush.msrb.mxu0 %v117_v32  ;;  %1742 = vmatpush.msrb.mxu1 %v165_v33  ;;  %v408_v30 = vld [vmem:[#allocation5 + $0x928] sm:$0xff]  ;;  %v309_v32 = vld [vmem:[#allocation5 + $0x610] sm:$0xff] }
 0x169   :  { %1762 = vmatpush.msrb.mxu2 %v213_v34  ;;  %1782 = vmatpush.msrb.mxu3 %v261_v35  ;;  %v456_v31 = vld [vmem:[#allocation5 + $0xaa8] sm:$0xff]  ;;  %v357_v33 = vld [vmem:[#allocation5 + $0x790] sm:$0xff] }
 0x16a   :  { %1787 = vmatpush.msra.mxu0 %v354_v36  ;;  %1807 = vmatpush.msra.mxu1 %v402_v37  ;;  %v405_v34 = vld [vmem:[#allocation5 + $0x910] sm:$0xff]  ;;  %v2431_v36 = vld [vmem:[#allocation2 + $0x10] sm:$0xff]  ;;  %v546_v37 = vld [vmem:[#allocation5 + $0xd78] sm:$0xff] }
 0x16b   :  { %1827 = vmatpush.msra.mxu2 %v450_v38  ;;  %1847 = vmatpush.msra.mxu3 %v498_v39  ;;  %v453_v35 = vld [vmem:[#allocation5 + $0xa90] sm:$0xff]  ;;  %v594_v38 = vld [vmem:[#allocation5 + $0xef8] sm:$0xff] }
 0x16c   :  { %1788 = vmatpush.msra.mxu0 %v351_v40  ;;  %1808 = vmatpush.msra.mxu1 %v399_v41  ;;  %v2432_v39 = vld [vmem:[#allocation2] sm:$0xff]  ;;  %v642_v40 = vld [vmem:[#allocation5 + $0x1078] sm:$0xff] }
 0x16d   :  { %1828 = vmatpush.msra.mxu2 %v447_v42  ;;  %1848 = vmatpush.msra.mxu3 %v495_v43  ;;  %v690_v41 = vld [vmem:[#allocation5 + $0x11f8] sm:$0xff]  ;;  %v2434_v43 = vld [vmem:[#allocation2 + $0x18] sm:$0xff] }
 0x16e   :  { %1789 = vmatpush.msra.mxu0 %v348_v44  ;;  %1809 = vmatpush.msra.mxu1 %v396_v45  ;;  %v2433_v42 = vld [vmem:[#allocation2 + $0x8] sm:$0xff]  ;;  %v543_v44 = vld [vmem:[#allocation5 + $0xd60] sm:$0xff] }
 0x16f   :  { %1829 = vmatpush.msra.mxu2 %v444_v46  ;;  %1849 = vmatpush.msra.mxu3 %v492_v47  ;;  %v591_v45 = vld [vmem:[#allocation5 + $0xee0] sm:$0xff]  ;;  %v2664_v46 = vpop.f32.mrf.mxu0  ;;  %v2666_v47 = vpop.f32.mrf.mxu2 }
 0x170   :  { %1790 = vmatpush.msra.mxu0 %v345_v48  ;;  %1810 = vmatpush.msra.mxu1 %v393_v49  ;;  %v639_v48 = vld [vmem:[#allocation5 + $0x1060] sm:$0xff] }
 0x171   :  { %1830 = vmatpush.msra.mxu2 %v441_v50  ;;  %1850 = vmatpush.msra.mxu3 %v489_v51  ;;  %v687_v49 = vld [vmem:[#allocation5 + $0x11e0] sm:$0xff]  ;;  %v540_v50 = vld [vmem:[#allocation5 + $0xd48] sm:$0xff] }
 0x172   :  { %1791 = vmatpush.msra.mxu0 %v342_v52  ;;  %1811 = vmatpush.msra.mxu1 %v390_v53  ;;  %v588_v51 = vld [vmem:[#allocation5 + $0xec8] sm:$0xff] }
 0x173   :  { %1831 = vmatpush.msra.mxu2 %v438_v54  ;;  %1851 = vmatpush.msra.mxu3 %v486_v55  ;;  %v636_v52 = vld [vmem:[#allocation5 + $0x1048] sm:$0xff]  ;;  %v537_v54 = vld [vmem:[#allocation5 + $0xd30] sm:$0xff]  ;;  %v2668_v55 = vpop.f32.mrf.mxu1 }
 0x174   :  { %1792 = vmatpush.msra.mxu0 %v339_v56  ;;  %1812 = vmatpush.msra.mxu1 %v387_v57  ;;  %v684_v53 = vld [vmem:[#allocation5 + $0x11c8] sm:$0xff]  ;;  %v2670_v56 = vpop.f32.mrf.mxu3  ;;  %v585_v57 = vld [vmem:[#allocation5 + $0xeb0] sm:$0xff] }
 0x175   :  { %1832 = vmatpush.msra.mxu2 %v435_v58  ;;  %1852 = vmatpush.msra.mxu3 %v483_v59  ;;  %v633_v58 = vld [vmem:[#allocation5 + $0x1030] sm:$0xff] }
 0x176   :  { %1793 = vmatpush.msra.mxu0 %v336_v60  ;;  %1813 = vmatpush.msra.mxu1 %v384_v61  ;;  %v681_v59 = vld [vmem:[#allocation5 + $0x11b0] sm:$0xff]  ;;  %v2435_v60 = vld [vmem:[#allocation2 + $0x30] sm:$0xff]  ;;  %v534_v61 = vld [vmem:[#allocation5 + $0xd18] sm:$0xff] }
 0x177   :  { %1833 = vmatpush.msra.mxu2 %v432_v62  ;;  %1853 = vmatpush.msra.mxu3 %v480_v63  ;;  %v582_v62 = vld [vmem:[#allocation5 + $0xe98] sm:$0xff] }
 0x178   :  { %1794 = vmatpush.msra.mxu0 %v333_v0  ;;  %1814 = vmatpush.msra.mxu1 %v381_v1  ;;  %v630_v63 = vld [vmem:[#allocation5 + $0x1018] sm:$0xff]  ;;  %v2436_v0 = vld [vmem:[#allocation2 + $0x20] sm:$0xff] }
 0x179   :  { %1834 = vmatpush.msra.mxu2 %v429_v2  ;;  %1854 = vmatpush.msra.mxu3 %v477_v3  ;;  %v678_v1 = vld [vmem:[#allocation5 + $0x1198] sm:$0xff]  ;;  %v2437_v2 = vld [vmem:[#allocation2 + $0x38] sm:$0xff]  ;;  %v531_v3 = vld [vmem:[#allocation5 + $0xd00] sm:$0xff] }
 0x17a   :  { %1795 = vmatpush.msra.mxu0 %v330_v4  ;;  %1815 = vmatpush.msra.mxu1 %v378_v5  ;;  %v579_v4 = vld [vmem:[#allocation5 + $0xe80] sm:$0xff]  ;;  %v2672_v5 = vpop.f32.mrf.mxu0 }
 0x17b   :  { %1835 = vmatpush.msra.mxu2 %v426_v6  ;;  %1855 = vmatpush.msra.mxu3 %v474_v7  ;;  %v2674_v6 = vpop.f32.mrf.mxu2  ;;  %v627_v7 = vld [vmem:[#allocation5 + $0x1000] sm:$0xff] }
 0x17c   :  { %1796 = vmatpush.msra.mxu0 %v327_v8  ;;  %1816 = vmatpush.msra.mxu1 %v375_v9  ;;  %v675_v8 = vld [vmem:[#allocation5 + $0x1180] sm:$0xff]  ;;  %v2438_v9 = vld [vmem:[#allocation2 + $0x28] sm:$0xff] }
 0x17d   :  { %1836 = vmatpush.msra.mxu2 %v423_v10  ;;  %1856 = vmatpush.msra.mxu3 %v471_v11  ;;  %v528_v10 = vld [vmem:[#allocation5 + $0xce8] sm:$0xff] }
 0x17e   :  { %1797 = vmatpush.msra.mxu0 %v324_v12  ;;  %1817 = vmatpush.msra.mxu1 %v372_v13  ;;  %v576_v11 = vld [vmem:[#allocation5 + $0xe68] sm:$0xff] }
 0x17f   :  { %1837 = vmatpush.msra.mxu2 %v420_v14  ;;  %1857 = vmatpush.msra.mxu3 %v468_v15  ;;  %v624_v12 = vld [vmem:[#allocation5 + $0xfe8] sm:$0xff]  ;;  %v525_v14 = vld [vmem:[#allocation5 + $0xcd0] sm:$0xff] }
 0x180   :  { %1798 = vmatpush.msra.mxu0 %v321_v16  ;;  %1818 = vmatpush.msra.mxu1 %v369_v17  ;;  %v672_v13 = vld [vmem:[#allocation5 + $0x1168] sm:$0xff]  ;;  %v573_v15 = vld [vmem:[#allocation5 + $0xe50] sm:$0xff]  ;;  %v2676_v16 = vpop.f32.mrf.mxu1  ;;  %v2678_v17 = vpop.f32.mrf.mxu3 }
 0x181   :  { %1838 = vmatpush.msra.mxu2 %v417_v18  ;;  %1858 = vmatpush.msra.mxu3 %v465_v19  ;;  %v621_v18 = vld [vmem:[#allocation5 + $0xfd0] sm:$0xff] }
 0x182   :  { %1799 = vmatpush.msra.mxu0 %v318_v20  ;;  %1819 = vmatpush.msra.mxu1 %v366_v21  ;;  %v669_v19 = vld [vmem:[#allocation5 + $0x1150] sm:$0xff]  ;;  %v522_v20 = vld [vmem:[#allocation5 + $0xcb8] sm:$0xff] }
 0x183   :  { %1839 = vmatpush.msra.mxu2 %v414_v22  ;;  %1859 = vmatpush.msra.mxu3 %v462_v23  ;;  %v570_v21 = vld [vmem:[#allocation5 + $0xe38] sm:$0xff] }
 0x184   :  { %1800 = vmatpush.msra.mxu0 %v315_v24  ;;  %1820 = vmatpush.msra.mxu1 %v363_v25  ;;  %v618_v22 = vld [vmem:[#allocation5 + $0xfb8] sm:$0xff]  ;;  %v519_v24 = vld [vmem:[#allocation5 + $0xca0] sm:$0xff] }
 0x185   :  { %1840 = vmatpush.msra.mxu2 %v411_v26  ;;  %1860 = vmatpush.msra.mxu3 %v459_v27  ;;  %v666_v23 = vld [vmem:[#allocation5 + $0x1138] sm:$0xff]  ;;  %v567_v25 = vld [vmem:[#allocation5 + $0xe20] sm:$0xff]  ;;  %v2680_v26 = vpop.f32.mrf.mxu0  ;;  %v2682_v27 = vpop.f32.mrf.mxu2 }
 0x186   :  { %1801 = vmatpush.msra.mxu0 %v312_v28  ;;  %1821 = vmatpush.msra.mxu1 %v360_v29  ;;  %v615_v28 = vld [vmem:[#allocation5 + $0xfa0] sm:$0xff] }
 0x187   :  { %1841 = vmatpush.msra.mxu2 %v408_v30  ;;  %1861 = vmatpush.msra.mxu3 %v456_v31  ;;  %v663_v29 = vld [vmem:[#allocation5 + $0x1120] sm:$0xff]  ;;  %v516_v30 = vld [vmem:[#allocation5 + $0xc88] sm:$0xff] }
 0x188   :  { %1763 = vmatmul.f32.vlgmr.msrb.gmra.mxu2 %v2431_v36  ;;  %1802 = vmatpush.msra.mxu0 %v309_v32  ;;  %v564_v31 = vld [vmem:[#allocation5 + $0xe08] sm:$0xff]  ;;  %v2684_v36 = vpop.f32.mrf.mxu1 }
 0x189   :  { %1822 = vmatpush.msra.mxu1 %v357_v33  ;;  %1842 = vmatpush.msra.mxu2 %v405_v34  ;;  %v612_v32 = vld [vmem:[#allocation5 + $0xf88] sm:$0xff]  ;;  %v513_v34 = vld [vmem:[#allocation5 + $0xc70] sm:$0xff] }
 0x18a   :  { %1862 = vmatpush.msra.mxu3 %v453_v35  ;;  %1723 = vmatmul.f32.vlgmr.msrb.gmra.mxu0 %v2432_v39  ;;  %v660_v33 = vld [vmem:[#allocation5 + $0x1108] sm:$0xff]  ;;  %v561_v35 = vld [vmem:[#allocation5 + $0xdf0] sm:$0xff] }
 0x18b   :  { %1743 = vmatmul.f32.vlgmr.msrb.gmra.mxu1 %v2433_v42  ;;  %1783 = vmatmul.f32.vlgmr.msrb.gmra.mxu3 %v2434_v43  ;;  %v657_v39 = vld [vmem:[#allocation5 + $0x10f0] sm:$0xff]  ;;  %v606_v42 = vld [vmem:[#allocation5 + $0xf58] sm:$0xff] }
 0x18c   :  { %1867 = vmatpush.msrb.mxu0 %v546_v37  ;;  %1887 = vmatpush.msrb.mxu1 %v594_v38  ;;  %v2686_v37 = vpop.f32.mrf.mxu3  ;;  %v609_v38 = vld [vmem:[#allocation5 + $0xf70] sm:$0xff]  ;;  %v654_v43 = vld [vmem:[#allocation5 + $0x10d8] sm:$0xff] }
 0x18d   :  { %1907 = vmatpush.msrb.mxu2 %v642_v40  ;;  %1927 = vmatpush.msrb.mxu3 %v690_v41  ;;  %v510_v40 = vld [vmem:[#allocation5 + $0xc58] sm:$0xff] }
 0x18e   :  { %1868 = vmatpush.msrb.mxu0 %v543_v44  ;;  %1888 = vmatpush.msrb.mxu1 %v591_v45  ;;  %v558_v41 = vld [vmem:[#allocation5 + $0xdd8] sm:$0xff]  ;;  %v507_v44 = vld [vmem:[#allocation5 + $0xc40] sm:$0xff] }
 0x18f   :  { %1908 = vmatpush.msrb.mxu2 %v639_v48  ;;  %1928 = vmatpush.msrb.mxu3 %v687_v49  ;;  %v555_v45 = vld [vmem:[#allocation5 + $0xdc0] sm:$0xff]  ;;  %v2688_v48 = vpop.f32.mrf.mxu0  ;;  %v2690_v49 = vpop.f32.mrf.mxu2 }
 0x190   :  { %1869 = vmatpush.msrb.mxu0 %v540_v50  ;;  %1889 = vmatpush.msrb.mxu1 %v588_v51  ;;  %v603_v50 = vld [vmem:[#allocation5 + $0xf40] sm:$0xff] }
 0x191   :  { %1909 = vmatpush.msrb.mxu2 %v636_v52  ;;  %1929 = vmatpush.msrb.mxu3 %v684_v53  ;;  %v651_v51 = vld [vmem:[#allocation5 + $0x10c0] sm:$0xff]  ;;  %v504_v52 = vld [vmem:[#allocation5 + $0xc28] sm:$0xff] }
 0x192   :  { %1843 = vmatmul.f32.vlgmr.msra.gmra.mxu2 %v2435_v60  ;;  %1870 = vmatpush.msrb.mxu0 %v537_v54  ;;  %v552_v53 = vld [vmem:[#allocation5 + $0xda8] sm:$0xff]  ;;  %v2692_v60 = vpop.f32.mrf.mxu1 }
 0x193   :  { %1890 = vmatpush.msrb.mxu1 %v585_v57  ;;  %1910 = vmatpush.msrb.mxu2 %v633_v58  ;;  %v600_v54 = vld [vmem:[#allocation5 + $0xf28] sm:$0xff]  ;;  %v501_v58 = vld [vmem:[#allocation5 + $0xc10] sm:$0xff] }
 0x194   :  { %1930 = vmatpush.msrb.mxu3 %v681_v59  ;;  %1803 = vmatmul.f32.vlgmr.msra.gmra.mxu0 %v2436_v0  ;;  %v648_v57 = vld [vmem:[#allocation5 + $0x10a8] sm:$0xff]  ;;  %v549_v59 = vld [vmem:[#allocation5 + $0xd90] sm:$0xff]  ;;  %v2696_v0 = vld [vmem:[#allocation7] sm:$0x7] }
 0x195   :  { %1863 = vmatmul.f32.vlgmr.msra.gmra.mxu3 %v2437_v2  ;;  %1871 = vmatpush.msrb.mxu0 %v534_v61  ;;  %v2694_v61 = vpop.f32.mrf.mxu3  ;;  %v786_v2 = vld [vmem:[#allocation5 + $0x14f8] sm:$0xff] }
 0x196   :  { %1891 = vmatpush.msrb.mxu1 %v582_v62  ;;  %1911 = vmatpush.msrb.mxu2 %v630_v63  ;;  %v597_v62 = vld [vmem:[#allocation5 + $0xf10] sm:$0xff] }
 0x197   :  { %1931 = vmatpush.msrb.mxu3 %v678_v1  ;;  %1823 = vmatmul.f32.vlgmr.msra.gmra.mxu1 %v2438_v9  ;;  %v645_v63 = vld [vmem:[#allocation5 + $0x1090] sm:$0xff]  ;;  %v738_v1 = vld [vmem:[#allocation5 + $0x1378] sm:$0xff]  ;;  %v2700_v9 = vpop.f32.mrf.mxu0 }
 0x198   :  { %1872 = vmatpush.msrb.mxu0 %v531_v3  ;;  %1892 = vmatpush.msrb.mxu1 %v579_v4  ;;  %v982_v3 = vperm.slane %v2696_v0, 1  ;;  %v834_v4 = vld [vmem:[#allocation5 + $0x1678] sm:$0xff] }
 0x199   :  { %1912 = vmatpush.msrb.mxu2 %v627_v7  ;;  %1932 = vmatpush.msrb.mxu3 %v675_v8  ;;  %v882_v7 = vld [vmem:[#allocation5 + $0x17f8] sm:$0xff]  ;;  %v981_v8 = vperm.slane %v2696_v0, 0 }
 0x19a   :  { %1873 = vmatpush.msrb.mxu0 %v528_v10  ;;  %1893 = vmatpush.msrb.mxu1 %v576_v11  ;;  %v1364_v10 = vpop.f32.mrf.mxu2  ;;  %v2439_v11 = vld [vmem:[#allocation2 + $0x40] sm:$0xff] }
 0x19b   :  { %1913 = vmatpush.msrb.mxu2 %v624_v12  ;;  %1933 = vmatpush.msrb.mxu3 %v672_v13  ;;  %v2440_v12 = vld [vmem:[#allocation2 + $0x50] sm:$0xff] }
 0x19c   :  { %1874 = vmatpush.msrb.mxu0 %v525_v14  ;;  %1894 = vmatpush.msrb.mxu1 %v573_v15  ;;  %v735_v13 = vld [vmem:[#allocation5 + $0x1360] sm:$0xff] }
 0x19d   :  { %1914 = vmatpush.msrb.mxu2 %v621_v18  ;;  %1934 = vmatpush.msrb.mxu3 %v669_v19  ;;  %v783_v14 = vld [vmem:[#allocation5 + $0x14e0] sm:$0xff]  ;;  %v1365_v19 = vadd.f32 %v1364_v10, %v982_v3  ;;  %v714_v3 = vld [vmem:[#allocation5 + $0x12b8] sm:$0xff] }
 0x19e   :  { %1875 = vmatpush.msrb.mxu0 %v522_v20  ;;  %1895 = vmatpush.msrb.mxu1 %v570_v21  ;;  %v831_v15 = vld [vmem:[#allocation5 + $0x1660] sm:$0xff]  ;;  %v2441_v20 = vld [vmem:[#allocation2 + $0x48] sm:$0xff]  ;;  %v2442_v21 = vld [vmem:[#allocation2 + $0x58] sm:$0xff] }
 0x19f   :  { %1915 = vmatpush.msrb.mxu2 %v618_v22  ;;  %1935 = vmatpush.msrb.mxu3 %v666_v23  ;;  %v879_v18 = vld [vmem:[#allocation5 + $0x17e0] sm:$0xff]  ;;  %v732_v22 = vld [vmem:[#allocation5 + $0x1348] sm:$0xff]  ;;  %v858_v10 = vld [vmem:[#allocation5 + $0x1738] sm:$0xff] }
 0x1a0   :  { %1876 = vmatpush.msrb.mxu0 %v519_v24  ;;  %1896 = vmatpush.msrb.mxu1 %v567_v25  ;;  %v780_v23 = vld [vmem:[#allocation5 + $0x14c8] sm:$0xff]  ;;  %v1005_v24 = vadd.f32 %v2664_v46, %v981_v8  ;;  %v2703_v25 = vpop.f32.mrf.mxu1  ;;  %v774_v46 = vld [vmem:[#allocation5 + $0x1498] sm:$0xff] }
 0x1a1   :  { %1916 = vmatpush.msrb.mxu2 %v615_v28  ;;  %1936 = vmatpush.msrb.mxu3 %v663_v29  ;;  %v1384_v28 = vpop.f32.mrf.mxu3  ;;  %v828_v29 = vld [vmem:[#allocation5 + $0x1648] sm:$0xff]  ;;  %v810_v8 = vld [vmem:[#allocation5 + $0x15b8] sm:$0xff] }
 0x1a2   :  { %1877 = vmatpush.msrb.mxu0 %v516_v30  ;;  %1897 = vmatpush.msrb.mxu1 %v564_v31  ;;  %v876_v30 = vld [vmem:[#allocation5 + $0x17c8] sm:$0xff]  ;;  %v729_v31 = vld [vmem:[#allocation5 + $0x1330] sm:$0xff] }
 0x1a3   :  { %1917 = vmatpush.msrb.mxu2 %v612_v32  ;;  %1937 = vmatpush.msrb.mxu3 %v660_v33  ;;  %v777_v32 = vld [vmem:[#allocation5 + $0x14b0] sm:$0xff] }
 0x1a4   :  { %1878 = vmatpush.msrb.mxu0 %v513_v34  ;;  %1898 = vmatpush.msrb.mxu1 %v561_v35  ;;  %v825_v33 = vld [vmem:[#allocation5 + $0x1630] sm:$0xff]  ;;  %v1385_v35 = vadd.f32 %v1384_v28, %v1365_v19  ;;  %v756_v19 = vld [vmem:[#allocation5 + $0x1408] sm:$0xff] }
 0x1a5   :  { %1918 = vmatpush.msrb.mxu2 %v609_v38  ;;  %1938 = vmatpush.msrb.mxu3 %v657_v39  ;;  %v873_v34 = vld [vmem:[#allocation5 + $0x17b0] sm:$0xff]  ;;  %v726_v38 = vld [vmem:[#allocation5 + $0x1318] sm:$0xff]  ;;  %v1025_v39 = vadd.f32 %v2668_v55, %v1005_v24 }
 0x1a6   :  { %1879 = vmatpush.msrb.mxu0 %v510_v40  ;;  %1899 = vmatpush.msrb.mxu1 %v558_v41  ;;  %v1404_v40 = vpop.f32.mrf.mxu0  ;;  %v822_v41 = vld [vmem:[#allocation5 + $0x1618] sm:$0xff]  ;;  %v753_v24 = vld [vmem:[#allocation5 + $0x13f0] sm:$0xff] }
 0x1a7   :  { %1919 = vmatpush.msrb.mxu2 %v606_v42  ;;  %1939 = vmatpush.msrb.mxu3 %v654_v43  ;;  %v870_v42 = vld [vmem:[#allocation5 + $0x1798] sm:$0xff]  ;;  %v723_v43 = vld [vmem:[#allocation5 + $0x1300] sm:$0xff]  ;;  %v1045_v55 = vadd.f32 %v2666_v47, %v1025_v39  ;;  %v801_v28 = vld [vmem:[#allocation5 + $0x1570] sm:$0xff] }
 0x1a8   :  { %1880 = vmatpush.msrb.mxu0 %v507_v44  ;;  %1900 = vmatpush.msrb.mxu1 %v555_v45  ;;  %v771_v44 = vld [vmem:[#allocation5 + $0x1480] sm:$0xff] }
 0x1a9   :  { %1920 = vmatpush.msrb.mxu2 %v603_v50  ;;  %1940 = vmatpush.msrb.mxu3 %v651_v51  ;;  %v819_v45 = vld [vmem:[#allocation5 + $0x1600] sm:$0xff]  ;;  %v1405_v51 = vadd.f32 %v1404_v40, %v1385_v35  ;;  %v1065_v47 = vadd.f32 %v2670_v56, %v1045_v55  ;;  %v846_v35 = vld [vmem:[#allocation5 + $0x16d8] sm:$0xff]  ;;  %v837_v55 = vld [vmem:[#allocation5 + $0x1690] sm:$0xff] }
 0x1aa   :  { %1881 = vmatpush.msrb.mxu0 %v504_v52  ;;  %1901 = vmatpush.msrb.mxu1 %v552_v53  ;;  %v867_v50 = vld [vmem:[#allocation5 + $0x1780] sm:$0xff]  ;;  %v720_v52 = vld [vmem:[#allocation5 + $0x12e8] sm:$0xff] }
 0x1ab   :  { %1921 = vmatpush.msrb.mxu2 %v600_v54  ;;  %1941 = vmatpush.msrb.mxu3 %v648_v57  ;;  %v768_v53 = vld [vmem:[#allocation5 + $0x1468] sm:$0xff]  ;;  %v1424_v54 = vpop.f32.mrf.mxu1  ;;  %v1085_v56 = vadd.f32 %v2672_v5, %v1065_v47  ;;  %v795_v39 = vld [vmem:[#allocation5 + $0x1540] sm:$0xff] }
 0x1ac   :  { %1882 = vmatpush.msrb.mxu0 %v501_v58  ;;  %1902 = vmatpush.msrb.mxu1 %v549_v59  ;;  %v816_v57 = vld [vmem:[#allocation5 + $0x15e8] sm:$0xff]  ;;  %v717_v59 = vld [vmem:[#allocation5 + $0x12d0] sm:$0xff]  ;;  %v843_v40 = vld [vmem:[#allocation5 + $0x16c0] sm:$0xff] }
 0x1ad   :  { %1922 = vmatpush.msrb.mxu2 %v597_v62  ;;  %1942 = vmatpush.msrb.mxu3 %v645_v63  ;;  %v864_v58 = vld [vmem:[#allocation5 + $0x1768] sm:$0xff]  ;;  %v765_v62 = vld [vmem:[#allocation5 + $0x1450] sm:$0xff]  ;;  %v1105_v5 = vadd.f32 %v2676_v16, %v1085_v56  ;;  %v975_v47 = vld [vmem:[#allocation5 + $0x1ae0] sm:$0xff] }
 0x1ae   :  { %1883 = vmatmul.f32.vlgmr.msrb.gmra.mxu0 %v2439_v11  ;;  %1923 = vmatmul.f32.vlgmr.msrb.gmra.mxu2 %v2440_v12  ;;  %v813_v63 = vld [vmem:[#allocation5 + $0x15d0] sm:$0xff]  ;;  %v711_v11 = vld [vmem:[#allocation5 + $0x12a0] sm:$0xff] }
 0x1af   :  { %1947 = vmatpush.msra.mxu0 %v738_v1  ;;  %1967 = vmatpush.msra.mxu1 %v786_v2  ;;  %v861_v1 = vld [vmem:[#allocation5 + $0x1750] sm:$0xff]  ;;  %v1425_v2 = vadd.f32 %v1424_v54, %v1405_v51  ;;  %v759_v12 = vld [vmem:[#allocation5 + $0x1420] sm:$0xff]  ;;  %v1125_v16 = vadd.f32 %v2674_v6, %v1105_v5  ;;  %v930_v6 = vld [vmem:[#allocation5 + $0x1978] sm:$0xff] }
 0x1b0   :  { %1987 = vmatpush.msra.mxu2 %v834_v4  ;;  %2007 = vmatpush.msra.mxu3 %v882_v7  ;;  %v762_v4 = vld [vmem:[#allocation5 + $0x1438] sm:$0xff]  ;;  %v1444_v7 = vpop.f32.mrf.mxu2  ;;  %v693_v51 = vld [vmem:[#allocation5 + $0x1210] sm:$0xff]  ;;  %v963_v5 = vld [vmem:[#allocation5 + $0x1a80] sm:$0xff] }
 0x1b1   :  { %1903 = vmatmul.f32.vlgmr.msrb.gmra.mxu1 %v2441_v20  ;;  %1943 = vmatmul.f32.vlgmr.msrb.gmra.mxu3 %v2442_v21  ;;  %v1464_v20 = vpop.f32.mrf.mxu3  ;;  %v804_v21 = vld [vmem:[#allocation5 + $0x1588] sm:$0xff] }
 0x1b2   :  { %1948 = vmatpush.msra.mxu0 %v735_v13  ;;  %1968 = vmatpush.msra.mxu1 %v783_v14  ;;  %v807_v13 = vld [vmem:[#allocation5 + $0x15a0] sm:$0xff] }
 0x1b3   :  { %1988 = vmatpush.msra.mxu2 %v831_v15  ;;  %2008 = vmatpush.msra.mxu3 %v879_v18  ;;  %v855_v14 = vld [vmem:[#allocation5 + $0x1720] sm:$0xff]  ;;  %v1445_v15 = vadd.f32 %v1444_v7, %v1425_v2  ;;  %v708_v18 = vld [vmem:[#allocation5 + $0x1288] sm:$0xff]  ;;  %v2443_v2 = vld [vmem:[#allocation2 + $0x60] sm:$0xff] }
 0x1b4   :  { %1949 = vmatpush.msra.mxu0 %v732_v22  ;;  %1969 = vmatpush.msra.mxu1 %v780_v23  ;;  %v852_v22 = vld [vmem:[#allocation5 + $0x1708] sm:$0xff]  ;;  %v705_v23 = vld [vmem:[#allocation5 + $0x1270] sm:$0xff] }
 0x1b5   :  { %1989 = vmatpush.msra.mxu2 %v828_v29  ;;  %2009 = vmatpush.msra.mxu3 %v876_v30  ;;  %v849_v29 = vld [vmem:[#allocation5 + $0x16f0] sm:$0xff]  ;;  %v1465_v30 = vadd.f32 %v1464_v20, %v1445_v15 }
 0x1b6   :  { %1950 = vmatpush.msra.mxu0 %v729_v31  ;;  %1970 = vmatpush.msra.mxu1 %v777_v32  ;;  %v702_v31 = vld [vmem:[#allocation5 + $0x1258] sm:$0xff]  ;;  %v921_v20 = vld [vmem:[#allocation5 + $0x1930] sm:$0xff] }
 0x1b7   :  { %1990 = vmatpush.msra.mxu2 %v825_v33  ;;  %2010 = vmatpush.msra.mxu3 %v873_v34  ;;  %v750_v32 = vld [vmem:[#allocation5 + $0x13d8] sm:$0xff]  ;;  %v1484_v33 = vpop.f32.mrf.mxu0 }
 0x1b8   :  { %1951 = vmatpush.msra.mxu0 %v726_v38  ;;  %1971 = vmatpush.msra.mxu1 %v774_v46  ;;  %v798_v34 = vld [vmem:[#allocation5 + $0x1558] sm:$0xff]  ;;  %v699_v38 = vld [vmem:[#allocation5 + $0x1240] sm:$0xff] }
 0x1b9   :  { %1991 = vmatpush.msra.mxu2 %v822_v41  ;;  %2011 = vmatpush.msra.mxu3 %v870_v42  ;;  %v747_v46 = vld [vmem:[#allocation5 + $0x13c0] sm:$0xff]  ;;  %v1485_v41 = vadd.f32 %v1484_v33, %v1465_v30  ;;  %v696_v42 = vld [vmem:[#allocation5 + $0x1228] sm:$0xff]  ;;  %v1544_v7 = vpop.f32.mrf.mxu3 }
 0x1ba   :  { %1952 = vmatpush.msra.mxu0 %v723_v43  ;;  %1972 = vmatpush.msra.mxu1 %v771_v44  ;;  %v744_v43 = vld [vmem:[#allocation5 + $0x13a8] sm:$0xff]  ;;  %v1504_v44 = vpop.f32.mrf.mxu1 }
 0x1bb   :  { %1992 = vmatpush.msra.mxu2 %v819_v45  ;;  %2012 = vmatpush.msra.mxu3 %v867_v50  ;;  %v792_v45 = vld [vmem:[#allocation5 + $0x1528] sm:$0xff]  ;;  %v1505_v54 = vadd.f32 %v1504_v44, %v1485_v41  ;;  %v957_v44 = vld [vmem:[#allocation5 + $0x1a50] sm:$0xff] }
 0x1bc   :  { %1953 = vmatpush.msra.mxu0 %v720_v52  ;;  %1973 = vmatpush.msra.mxu1 %v768_v53  ;;  %v840_v50 = vld [vmem:[#allocation5 + $0x16a8] sm:$0xff]  ;;  %v741_v52 = vld [vmem:[#allocation5 + $0x1390] sm:$0xff] }
 0x1bd   :  { %1993 = vmatpush.msra.mxu2 %v816_v57  ;;  %2013 = vmatpush.msra.mxu3 %v864_v58  ;;  %v789_v53 = vld [vmem:[#allocation5 + $0x1510] sm:$0xff]  ;;  %v1145_v57 = vadd.f32 %v2678_v17, %v1125_v16  ;;  %v1524_v58 = vpop.f32.mrf.mxu2  ;;  %v2444_v17 = vld [vmem:[#allocation2 + $0x70] sm:$0xff] }
 0x1be   :  { %1954 = vmatpush.msra.mxu0 %v717_v59  ;;  %1974 = vmatpush.msra.mxu1 %v765_v62  ;;  %v978_v59 = vld [vmem:[#allocation5 + $0x1af8] sm:$0xff]  ;;  %v2100_v62 = vld [vmem:[%s3106_s3 + $0xf0] sm:$0xff]  ;;  %v909_v16 = vld [vmem:[#allocation5 + $0x18d0] sm:$0xff] }
 0x1bf   :  { %1994 = vmatpush.msra.mxu2 %v813_v63  ;;  %2014 = vmatpush.msra.mxu3 %v861_v1  ;;  %v2132_v63 = vld [vmem:[%s3106_s3 + $0x1f0] sm:$0xff]  ;;  %v1165_v1 = vadd.f32 %v2680_v26, %v1145_v57  ;;  %v2130_v26 = vld [vmem:[%s3106_s3 + $0x1e0] sm:$0xff]  ;;  %v1564_v15 = vpop.f32.mrf.mxu0 }
 0x1c0   :  { %1955 = vmatpush.msra.mxu0 %v714_v3  ;;  %1975 = vmatpush.msra.mxu1 %v762_v4  ;;  %v1525_v3 = vadd.f32 %v1524_v58, %v1505_v54  ;;  %v927_v4 = vld [vmem:[#allocation5 + $0x1960] sm:$0xff] }
 0x1c1   :  { %1995 = vmatpush.msra.mxu2 %v810_v8  ;;  %2015 = vmatpush.msra.mxu3 %v858_v10  ;;  %v2098_v8 = vld [vmem:[%s3106_s3 + $0xe0] sm:$0xff]  ;;  %v2445_v10 = vld [vmem:[#allocation2 + $0x68] sm:$0xff]  ;;  %v2084_v54 = vld [vmem:[%s3106_s3 + $0x70] sm:$0xff] }
 0x1c2   :  { %1956 = vmatpush.msra.mxu0 %v711_v11  ;;  %1976 = vmatpush.msra.mxu1 %v759_v12  ;;  %v2446_v11 = vld [vmem:[#allocation2 + $0x78] sm:$0xff]  ;;  %v1545_v56 = vadd.f32 %v1544_v7, %v1525_v3  ;;  %v1584_v30 = vpop.f32.mrf.mxu1  ;;  %v2116_v57 = vld [vmem:[%s3106_s3 + $0x170] sm:$0xff]  ;;  %v945_v7 = vld [vmem:[#allocation5 + $0x19f0] sm:$0xff] }
 0x1c3   :  { %1996 = vmatpush.msra.mxu2 %v807_v13  ;;  %2016 = vmatpush.msra.mxu3 %v855_v14  ;;  %v924_v12 = vld [vmem:[#allocation5 + $0x1948] sm:$0xff]  ;;  %v1185_v14 = vadd.f32 %v2684_v36, %v1165_v1  ;;  %v2094_v36 = vld [vmem:[%s3106_s3 + $0xc0] sm:$0xff] }
 0x1c4   :  { %1957 = vmatpush.msra.mxu0 %v708_v18  ;;  %1977 = vmatpush.msra.mxu1 %v756_v19  ;;  %v972_v13 = vld [vmem:[#allocation5 + $0x1ac8] sm:$0xff]  ;;  %v2096_v18 = vld [vmem:[%s3106_s3 + $0xd0] sm:$0xff] }
 0x1c5   :  { %1997 = vmatpush.msra.mxu2 %v804_v21  ;;  %2017 = vmatpush.msra.mxu3 %v852_v22  ;;  %v2128_v19 = vld [vmem:[%s3106_s3 + $0x1d0] sm:$0xff]  ;;  %v969_v21 = vld [vmem:[#allocation5 + $0x1ab0] sm:$0xff]  ;;  %v1205_v22 = vadd.f32 %v2682_v27, %v1185_v14  ;;  %v942_v14 = vld [vmem:[#allocation5 + $0x19d8] sm:$0xff] }
 0x1c6   :  { %1958 = vmatpush.msra.mxu0 %v705_v23  ;;  %1978 = vmatpush.msra.mxu1 %v753_v24  ;;  %v2126_v23 = vld [vmem:[%s3106_s3 + $0x1c0] sm:$0xff]  ;;  %v1565_v24 = vadd.f32 %v1564_v15, %v1545_v56  ;;  %v2092_v27 = vld [vmem:[%s3106_s3 + $0xb0] sm:$0xff] }
 0x1c7   :  { %1998 = vmatpush.msra.mxu2 %v801_v28  ;;  %2018 = vmatpush.msra.mxu3 %v849_v29  ;;  %v918_v28 = vld [vmem:[#allocation5 + $0x1918] sm:$0xff]  ;;  %v1225_v33 = vadd.f32 %v2686_v37, %v1205_v22  ;;  %v2088_v37 = vld [vmem:[%s3106_s3 + $0x90] sm:$0xff]  ;;  %v2106_v22 = vld [vmem:[%s3106_s3 + $0x120] sm:$0xff] }
 0x1c8   :  { %1959 = vmatpush.msra.mxu0 %v702_v31  ;;  %1979 = vmatpush.msra.mxu1 %v750_v32  ;;  %v966_v29 = vld [vmem:[#allocation5 + $0x1a98] sm:$0xff]  ;;  %v2124_v31 = vld [vmem:[%s3106_s3 + $0x1b0] sm:$0xff] }
 0x1c9   :  { %1999 = vmatpush.msra.mxu2 %v798_v34  ;;  %2019 = vmatpush.msra.mxu3 %v846_v35  ;;  %v915_v32 = vld [vmem:[#allocation5 + $0x1900] sm:$0xff]  ;;  %v1604_v34 = vpop.f32.mrf.mxu2  ;;  %v2090_v35 = vld [vmem:[%s3106_s3 + $0xa0] sm:$0xff]  ;;  %v1245_v41 = vadd.f32 %v2688_v48, %v1225_v33  ;;  %v2101_v33 = vld [vmem:[%s3106_s3 + $0xf8] sm:$0xff] }
 0x1ca   :  { %1960 = vmatpush.msra.mxu0 %v699_v38  ;;  %1980 = vmatpush.msra.mxu1 %v747_v46  ;;  %v2122_v38 = vld [vmem:[%s3106_s3 + $0x1a0] sm:$0xff]  ;;  %v1585_v46 = vadd.f32 %v1584_v30, %v1565_v24  ;;  %v1664_v3 = vpop.f32.mrf.mxu1  ;;  %v891_v56 = vld [vmem:[#allocation5 + $0x1840] sm:$0xff] }
 0x1cb   :  { %2000 = vmatpush.msra.mxu2 %v795_v39  ;;  %2020 = vmatpush.msra.mxu3 %v843_v40  ;;  %v912_v39 = vld [vmem:[#allocation5 + $0x18e8] sm:$0xff]  ;;  %v2086_v48 = vld [vmem:[%s3106_s3 + $0x80] sm:$0xff] }
 0x1cc   :  { %1961 = vmatpush.msra.mxu0 %v696_v42  ;;  %1981 = vmatpush.msra.mxu1 %v744_v43  ;;  %v960_v40 = vld [vmem:[#allocation5 + $0x1a68] sm:$0xff]  ;;  %v2120_v42 = vld [vmem:[%s3106_s3 + $0x190] sm:$0xff]  ;;  %v1605_v43 = vadd.f32 %v1604_v34, %v1585_v46  ;;  %v2099_v46 = vld [vmem:[%s3106_s3 + $0xe8] sm:$0xff] }
 0x1cd   :  { %2001 = vmatpush.msra.mxu2 %v792_v45  ;;  %2021 = vmatpush.msra.mxu3 %v840_v50  ;;  %v1624_v45 = vpop.f32.mrf.mxu3  ;;  %v2118_v50 = vld [vmem:[%s3106_s3 + $0x180] sm:$0xff] }
 0x1ce   :  { %1962 = vmatpush.msra.mxu0 %v693_v51  ;;  %1982 = vmatpush.msra.mxu1 %v741_v52  ;;  %v906_v51 = vld [vmem:[#allocation5 + $0x18b8] sm:$0xff]  ;;  %v1625_v58 = vadd.f32 %v1624_v45, %v1605_v43 }
 0x1cf   :  { %2002 = vmatpush.msra.mxu2 %v789_v53  ;;  %2022 = vmatpush.msra.mxu3 %v837_v55  ;;  %v954_v52 = vld [vmem:[#allocation5 + $0x1a38] sm:$0xff]  ;;  %v1265_v53 = vadd.f32 %v2692_v60, %v1245_v41  ;;  %v1644_v55 = vpop.f32.mrf.mxu0  ;;  %v2082_v60 = vld [vmem:[%s3106_s3 + $0x60] sm:$0xff]  ;;  %v2097_v41 = vld [vmem:[%s3106_s3 + $0xd8] sm:$0xff] }
 0x1d0   :  { %1963 = vmatmul.f32.vlgmr.msra.gmra.mxu0 %v2443_v2  ;;  %2003 = vmatmul.f32.vlgmr.msra.gmra.mxu2 %v2444_v17  ;;  %v1645_v1 = vadd.f32 %v1644_v55, %v1625_v58  ;;  %v900_v2 = vld [vmem:[#allocation5 + $0x1888] sm:$0xff]  ;;  %v2127_v43 = vld [vmem:[%s3106_s3 + $0x1c8] sm:$0xff] }
 0x1d1   :  { %2027 = vmatpush.msrb.mxu0 %v930_v6  ;;  %2047 = vmatpush.msrb.mxu1 %v978_v59  ;;  %v903_v6 = vld [vmem:[#allocation5 + $0x18a0] sm:$0xff]  ;;  %v948_v17 = vld [vmem:[#allocation5 + $0x1a08] sm:$0xff]  ;;  %v2091_v45 = vld [vmem:[%s3106_s3 + $0xa8] sm:$0xff] }
 0x1d2   :  { %2172 = vmatpush.msrb.mxu2 %v2100_v62  ;;  %2192 = vmatpush.msrb.mxu3 %v2132_v63  ;;  %v951_v59 = vld [vmem:[#allocation5 + $0x1a20] sm:$0xff]  ;;  %v1285_v62 = vadd.f32 %v2690_v49, %v1265_v53  ;;  %v2114_v63 = vld [vmem:[%s3106_s3 + $0x160] sm:$0xff]  ;;  %v2119_v53 = vld [vmem:[%s3106_s3 + $0x188] sm:$0xff] }
 0x1d3   :  { %1983 = vmatmul.f32.vlgmr.msra.gmra.mxu1 %v2445_v10  ;;  %2023 = vmatmul.f32.vlgmr.msra.gmra.mxu3 %v2446_v11  ;;  %v2080_v49 = vld [vmem:[%s3106_s3 + $0x50] sm:$0xff]  ;;  %v2078_v10 = vld [vmem:[%s3106_s3 + $0x40] sm:$0xff]  ;;  %v2085_v55 = vld [vmem:[%s3106_s3 + $0x78] sm:$0xff] }
 0x1d4   :  { %2028 = vmatpush.msrb.mxu0 %v927_v4  ;;  %2048 = vmatpush.msrb.mxu1 %v975_v47  ;;  %v2112_v4 = vld [vmem:[%s3106_s3 + $0x150] sm:$0xff]  ;;  %v897_v47 = vld [vmem:[#allocation5 + $0x1870] sm:$0xff]  ;;  %v2115_v58 = vld [vmem:[%s3106_s3 + $0x168] sm:$0xff] }
 0x1d5   :  { %2173 = vmatpush.msrb.mxu2 %v2098_v8  ;;  %2193 = vmatpush.msrb.mxu3 %v2130_v26  ;;  %v1305_v8 = vadd.f32 %v2694_v61, %v1285_v62  ;;  %v1684_v26 = vpop.f32.mrf.mxu2  ;;  %v2110_v11 = vld [vmem:[%s3106_s3 + $0x140] sm:$0xff]  ;;  %v2076_v61 = vld [vmem:[%s3106_s3 + $0x30] sm:$0xff]  ;;  %v2079_v62 = vld [vmem:[%s3106_s3 + $0x48] sm:$0xff] }
 0x1d6   :  { %2029 = vmatpush.msrb.mxu0 %v924_v12  ;;  %2049 = vmatpush.msrb.mxu1 %v972_v13  ;;  %v1665_v12 = vadd.f32 %v1664_v3, %v1645_v1  ;;  %v894_v13 = vld [vmem:[#allocation5 + $0x1858] sm:$0xff]  ;;  %v2109_v1 = vld [vmem:[%s3106_s3 + $0x138] sm:$0xff] }
 0x1d7   :  { %2174 = vmatpush.msrb.mxu2 %v2096_v18  ;;  %2194 = vmatpush.msrb.mxu3 %v2128_v19  ;;  %v1325_v15 = vadd.f32 %v2700_v9, %v1305_v8  ;;  %v2108_v18 = vld [vmem:[%s3106_s3 + $0x130] sm:$0xff]  ;;  %v2074_v9 = vld [vmem:[%s3106_s3 + $0x20] sm:$0xff]  ;;  %v2073_v3 = vld [vmem:[%s3106_s3 + $0x18] sm:$0xff] }
 0x1d8   :  { %2030 = vmatpush.msrb.mxu0 %v921_v20  ;;  %2050 = vmatpush.msrb.mxu1 %v969_v21  ;;  %v1685_v19 = vadd.f32 %v1684_v26, %v1665_v12  ;;  %v939_v20 = vld [vmem:[#allocation5 + $0x19c0] sm:$0xff]  ;;  %v1704_v21 = vpop.f32.mrf.mxu3  ;;  %v2165_v8 = vld [vmem:[%s3106_s3 + $0x2f8] sm:$0xff]  ;;  %v983_v26 = vperm.slane %v2696_v0, 2  ;;  %v2163_v12 = vld [vmem:[%s3106_s3 + $0x2e8] sm:$0xff] }
 0x1d9   :  { %2175 = vmatpush.msrb.mxu2 %v2094_v36  ;;  %2195 = vmatpush.msrb.mxu3 %v2126_v23  ;;  %v888_v36 = vld [vmem:[#allocation5 + $0x1828] sm:$0xff]  ;;  %v2806_v24 = vadd.f32 %v2703_v25, %v1325_v15  ;;  %v2070_v25 = vld [vmem:[%s3106_s3] sm:$0xff]  ;;  %v2159_v15 = vld [vmem:[%s3106_s3 + $0x2c8] sm:$0xff] }
 0x1da   :  { %2031 = vmatpush.msrb.mxu0 %v918_v28  ;;  %2051 = vmatpush.msrb.mxu1 %v966_v29  ;;  %v936_v23 = vld [vmem:[#allocation5 + $0x19a8] sm:$0xff]  ;;  %v2072_v28 = vld [vmem:[%s3106_s3 + $0x10] sm:$0xff]  ;;  %v2814_v30 = vadd.f32 %v1704_v21, %v1685_v19  ;;  %v2158_v0 = vld [vmem:[%s3106_s3 + $0x2c0] sm:$0xff] }
 0x1db   :  { %2176 = vmatpush.msrb.mxu2 %v2092_v27  ;;  %2196 = vmatpush.msrb.mxu3 %v2124_v31  ;;  %v2104_v29 = vld [vmem:[%s3106_s3 + $0x110] sm:$0xff]  ;;  %v885_v27 = vld [vmem:[#allocation5 + $0x1810] sm:$0xff]  ;;  %v2155_v21 = vld [vmem:[%s3106_s3 + $0x2a8] sm:$0xff] }
 0x1dc   :  { %2032 = vmatpush.msrb.mxu0 %v915_v32  ;;  %2052 = vmatpush.msrb.mxu1 %v963_v5  ;;  %v933_v31 = vld [vmem:[#allocation5 + $0x1990] sm:$0xff]  ;;  %v2067_v5 = vmax.f32 %v2806_v24, 0.0  ;;  %v2068_v34 = vmax.f32 %v2814_v30, 0.0  ;;  %v2156_v19 = vld [vmem:[%s3106_s3 + $0x2b0] sm:$0xff] }
 0x1dd   :  { %2177 = vmatpush.msrb.mxu2 %v2090_v35  ;;  %2197 = vmatpush.msrb.mxu3 %v2122_v38  ;;  %v2102_v32 = vld [vmem:[%s3106_s3 + $0x100] sm:$0xff]  ;;  %v2133_v35 = vld [vmem:[%s3106_s3 + $0x1f8] sm:$0xff] }
 0x1de   :  { %2033 = vmatpush.msrb.mxu0 %v912_v39  ;;  %2053 = vmatpush.msrb.mxu1 %v960_v40  ;;  %v2447_v38 = vld [vmem:[#allocation2 + $0x80] sm:$0xff]  ;;  %v2131_v39 = vld [vmem:[%s3106_s3 + $0x1e8] sm:$0xff] }
 0x1df   :  { %2178 = vmatpush.msrb.mxu2 %v2088_v37  ;;  %2198 = vmatpush.msrb.mxu3 %v2120_v42  ;;  %v2448_v40 = vld [vmem:[#allocation2 + $0x88] sm:$0xff]  ;;  %v2129_v37 = vld [vmem:[%s3106_s3 + $0x1d8] sm:$0xff]  ;;  %v2150_v24 = vld [vmem:[%s3106_s3 + $0x280] sm:$0xff] }
 0x1e0   :  { %2034 = vmatpush.msrb.mxu0 %v909_v16  ;;  %2054 = vmatpush.msrb.mxu1 %v957_v44  ;;  %v2095_v42 = vld [vmem:[%s3106_s3 + $0xc8] sm:$0xff]  ;;  %v2093_v16 = vld [vmem:[%s3106_s3 + $0xb8] sm:$0xff] }
 0x1e1   :  { %2179 = vmatpush.msrb.mxu2 %v2086_v48  ;;  %2199 = vmatpush.msrb.mxu3 %v2118_v50  ;;  %v2125_v44 = vld [vmem:[%s3106_s3 + $0x1b8] sm:$0xff]  ;;  %v2123_v48 = vld [vmem:[%s3106_s3 + $0x1a8] sm:$0xff] }
 0x1e2   :  { %2035 = vmatpush.msrb.mxu0 %v906_v51  ;;  %2055 = vmatpush.msrb.mxu1 %v954_v52  ;;  %v2089_v50 = vld [vmem:[%s3106_s3 + $0x98] sm:$0xff]  ;;  %v2087_v52 = vld [vmem:[%s3106_s3 + $0x88] sm:$0xff] }
 0x1e3   :  { %2180 = vmatpush.msrb.mxu2 %v2084_v54  ;;  %2200 = vmatpush.msrb.mxu3 %v2116_v57  ;;  %v2121_v51 = vld [vmem:[%s3106_s3 + $0x198] sm:$0xff]  ;;  %v2083_v57 = vld [vmem:[%s3106_s3 + $0x68] sm:$0xff] }
 0x1e4   :  { %2036 = vmatpush.msrb.mxu0 %v903_v6  ;;  %2056 = vmatpush.msrb.mxu1 %v951_v59  ;;  %v2117_v54 = vld [vmem:[%s3106_s3 + $0x178] sm:$0xff] }
 0x1e5   :  { %2181 = vmatpush.msrb.mxu2 %v2082_v60  ;;  %2201 = vmatpush.msrb.mxu3 %v2114_v63  ;;  %v2081_v6 = vld [vmem:[%s3106_s3 + $0x58] sm:$0xff]  ;;  %v2111_v60 = vld [vmem:[%s3106_s3 + $0x148] sm:$0xff] }
 0x1e6   :  { %2037 = vmatpush.msrb.mxu0 %v900_v2  ;;  %2057 = vmatpush.msrb.mxu1 %v948_v17  ;;  %v2113_v59 = vld [vmem:[%s3106_s3 + $0x158] sm:$0xff]  ;;  %v2075_v2 = vld [vmem:[%s3106_s3 + $0x28] sm:$0xff] }
 0x1e7   :  { %2182 = vmatpush.msrb.mxu2 %v2080_v49  ;;  %2202 = vmatpush.msrb.mxu3 %v2112_v4  ;;  %v2077_v63 = vld [vmem:[%s3106_s3 + $0x38] sm:$0xff]  ;;  %v2107_v17 = vld [vmem:[%s3106_s3 + $0x128] sm:$0xff] }
 0x1e8   :  { %2038 = vmatpush.msrb.mxu0 %v897_v47  ;;  %2058 = vmatpush.msrb.mxu1 %v945_v7  ;;  %v2105_v49 = vld [vmem:[%s3106_s3 + $0x118] sm:$0xff]  ;;  %v2071_v4 = vld [vmem:[%s3106_s3 + $0x8] sm:$0xff]  ;;  %v2164_v7 = vld [vmem:[%s3106_s3 + $0x2f0] sm:$0xff] }
 0x1e9   :  { %2183 = vmatpush.msrb.mxu2 %v2078_v10  ;;  %2203 = vmatpush.msrb.mxu3 %v2110_v11  ;;  %v2103_v47 = vld [vmem:[%s3106_s3 + $0x108] sm:$0xff]  ;;  %v2162_v11 = vld [vmem:[%s3106_s3 + $0x2e0] sm:$0xff] }
 0x1ea   :  { %2039 = vmatpush.msrb.mxu0 %v894_v13  ;;  %2059 = vmatpush.msrb.mxu1 %v942_v14  ;;  %v2160_v13 = vld [vmem:[%s3106_s3 + $0x2d0] sm:$0xff]  ;;  %v2161_v14 = vld [vmem:[%s3106_s3 + $0x2d8] sm:$0xff] }
 0x1eb   :  { %2184 = vmatpush.msrb.mxu2 %v2076_v61  ;;  %2204 = vmatpush.msrb.mxu3 %v2108_v18 }
 0x1ec   :  { %2040 = vmatpush.msrb.mxu0 %v891_v56  ;;  %2060 = vmatpush.msrb.mxu1 %v939_v20  ;;  %v2157_v56 = vld [vmem:[%s3106_s3 + $0x2b8] sm:$0xff]  ;;  %v2154_v20 = vld [vmem:[%s3106_s3 + $0x2a0] sm:$0xff] }
 0x1ed   :  { %2185 = vmatpush.msrb.mxu2 %v2074_v9  ;;  %2205 = vmatpush.msrb.mxu3 %v2106_v22 }
 0x1ee   :  { %2041 = vmatpush.msrb.mxu0 %v888_v36  ;;  %2061 = vmatpush.msrb.mxu1 %v936_v23  ;;  %v2152_v36 = vld [vmem:[%s3106_s3 + $0x290] sm:$0xff]  ;;  %v2153_v23 = vld [vmem:[%s3106_s3 + $0x298] sm:$0xff] }
 0x1ef   :  { %2186 = vmatpush.msrb.mxu2 %v2072_v28  ;;  %2206 = vmatpush.msrb.mxu3 %v2104_v29  ;;  %v2151_v28 = vld [vmem:[%s3106_s3 + $0x288] sm:$0xff] }
 0x1f0   :  { %2042 = vmatpush.msrb.mxu0 %v885_v27  ;;  %2062 = vmatpush.msrb.mxu1 %v933_v31  ;;  %v2148_v27 = vld [vmem:[%s3106_s3 + $0x270] sm:$0xff]  ;;  %v2149_v31 = vld [vmem:[%s3106_s3 + $0x278] sm:$0xff] }
 0x1f1   :  { %2187 = vmatpush.msrb.mxu2 %v2070_v25  ;;  %2207 = vmatpush.msrb.mxu3 %v2102_v32  ;;  %v2146_v25 = vld [vmem:[%s3106_s3 + $0x260] sm:$0xff]  ;;  %v2147_v32 = vld [vmem:[%s3106_s3 + $0x268] sm:$0xff] }
 0x1f2   :  { %2043 = vmatmul.f32.vlgmr.msrb.gmra.mxu0 %v2447_v38  ;;  %2188 = vmatmul.f32.vlgmr.msrb.gmra.mxu2 %v2067_v5  ;;  %v2142_v38 = vld [vmem:[%s3106_s3 + $0x240] sm:$0xff] }
 0x1f3   :  { %2208 = vmatmul.f32.vlgmr.msrb.gmra.mxu3 %v2068_v34  ;;  %2232 = vmatpush.msra.mxu1 %v2101_v33 }
 0x1f4   :  { %2252 = vmatpush.msra.mxu2 %v2133_v35  ;;  %2063 = vmatmul.f32.vlgmr.msrb.gmra.mxu1 %v2448_v40  ;;  %v2145_v35 = vld [vmem:[%s3106_s3 + $0x258] sm:$0xff] }
 0x1f5   :  { %2233 = vmatpush.msra.mxu1 %v2099_v46  ;;  %2212 = vmatpush.msra.mxu0 %v2164_v7  ;;  %v2143_v46 = vld [vmem:[%s3106_s3 + $0x248] sm:$0xff] }
 0x1f6   :  { %2253 = vmatpush.msra.mxu2 %v2131_v39  ;;  %2272 = vmatpush.msra.mxu3 %v2165_v8 }
 0x1f7   :  { %2234 = vmatpush.msra.mxu1 %v2097_v41  ;;  %2213 = vmatpush.msra.mxu0 %v2162_v11 }
 0x1f8   :  { %2254 = vmatpush.msra.mxu2 %v2129_v37  ;;  %2273 = vmatpush.msra.mxu3 %v2163_v12 }
 0x1f9   :  { %2235 = vmatpush.msra.mxu1 %v2095_v42  ;;  %2214 = vmatpush.msra.mxu0 %v2160_v13  ;;  %v2140_v42 = vld [vmem:[%s3106_s3 + $0x230] sm:$0xff]  ;;  %v2309_v13 = vld [vmem:[%s3108_s5 + $0x78] sm:$0xff] }
 0x1fa   :  { %2255 = vmatpush.msra.mxu2 %v2127_v43  ;;  %2274 = vmatpush.msra.mxu3 %v2161_v14  ;;  %v2141_v43 = vld [vmem:[%s3106_s3 + $0x238] sm:$0xff]  ;;  %v2308_v14 = vld [vmem:[%s3108_s5 + $0x70] sm:$0xff] }
 0x1fb   :  { %2236 = vmatpush.msra.mxu1 %v2093_v16  ;;  %2215 = vmatpush.msra.mxu0 %v2158_v0  ;;  %v2307_v0 = vld [vmem:[%s3108_s5 + $0x68] sm:$0xff] }
 0x1fc   :  { %2256 = vmatpush.msra.mxu2 %v2125_v44  ;;  %2275 = vmatpush.msra.mxu3 %v2159_v15  ;;  %v2138_v44 = vld [vmem:[%s3106_s3 + $0x220] sm:$0xff] }
 0x1fd   :  { %2237 = vmatpush.msra.mxu1 %v2091_v45  ;;  %2216 = vmatpush.msra.mxu0 %v2156_v19  ;;  %v2139_v45 = vld [vmem:[%s3106_s3 + $0x228] sm:$0xff]  ;;  %v2306_v15 = vld [vmem:[%s3108_s5 + $0x60] sm:$0xff]  ;;  %v2305_v19 = vld [vmem:[%s3108_s5 + $0x58] sm:$0xff] }
 0x1fe   :  { %2257 = vmatpush.msra.mxu2 %v2123_v48  ;;  %2276 = vmatpush.msra.mxu3 %v2157_v56  ;;  %v2304_v56 = vld [vmem:[%s3108_s5 + $0x50] sm:$0xff] }
 0x1ff   :  { %2238 = vmatpush.msra.mxu1 %v2089_v50  ;;  %2217 = vmatpush.msra.mxu0 %v2154_v20  ;;  %v2136_v50 = vld [vmem:[%s3106_s3 + $0x210] sm:$0xff]  ;;  %v2303_v20 = vld [vmem:[%s3108_s5 + $0x48] sm:$0xff] }
 0x200   :  { %2258 = vmatpush.msra.mxu2 %v2121_v51  ;;  %2277 = vmatpush.msra.mxu3 %v2155_v21  ;;  %v2137_v51 = vld [vmem:[%s3106_s3 + $0x218] sm:$0xff]  ;;  %v2302_v21 = vld [vmem:[%s3108_s5 + $0x40] sm:$0xff] }
 0x201   :  { %2239 = vmatpush.msra.mxu1 %v2087_v52  ;;  %2218 = vmatpush.msra.mxu0 %v2152_v36  ;;  %v2299_v36 = vld [vmem:[%s3108_s5 + $0x28] sm:$0xff] }
 0x202   :  { %2259 = vmatpush.msra.mxu2 %v2119_v53  ;;  %2278 = vmatpush.msra.mxu3 %v2153_v23  ;;  %v2298_v23 = vld [vmem:[%s3108_s5 + $0x20] sm:$0xff] }
 0x203   :  { %2240 = vmatpush.msra.mxu1 %v2085_v55  ;;  %2219 = vmatpush.msra.mxu0 %v2150_v24  ;;  %v2134_v55 = vld [vmem:[%s3106_s3 + $0x200] sm:$0xff]  ;;  %v2297_v24 = vld [vmem:[%s3108_s5 + $0x18] sm:$0xff] }
 0x204   :  { %2260 = vmatpush.msra.mxu2 %v2117_v54  ;;  %2279 = vmatpush.msra.mxu3 %v2151_v28  ;;  %v2135_v54 = vld [vmem:[%s3106_s3 + $0x208] sm:$0xff]  ;;  %v2296_v28 = vld [vmem:[%s3108_s5 + $0x10] sm:$0xff] }
 0x205   :  { %2241 = vmatpush.msra.mxu1 %v2083_v57  ;;  %2220 = vmatpush.msra.mxu0 %v2148_v27  ;;  %v2314_v27 = vld [vmem:[%s3108_s5 + $0xa0] sm:$0xff] }
 0x206   :  { %2261 = vmatpush.msra.mxu2 %v2115_v58  ;;  %2280 = vmatpush.msra.mxu3 %v2149_v31  ;;  %v2294_v31 = vld [vmem:[%s3108_s5] sm:$0xff] }
 0x207   :  { %2242 = vmatpush.msra.mxu1 %v2081_v6  ;;  %v1724_v10 = vpop.f32.mrf.mxu0  ;;  %2221 = vmatpush.msra.mxu0 %v2146_v25  ;;  %v2313_v25 = vld [vmem:[%s3108_s5 + $0x98] sm:$0xff] }
 0x208   :  { %2262 = vmatpush.msra.mxu2 %v2113_v59  ;;  %v1725_v61 = vadd.f32 %v1724_v10, %v983_v26  ;;  %v1744_v18 = vpop.f32.mrf.mxu1  ;;  %2281 = vmatpush.msra.mxu3 %v2147_v32  ;;  %v2312_v32 = vld [vmem:[%s3108_s5 + $0x90] sm:$0xff] }
 0x209   :  { %2243 = vmatpush.msra.mxu1 %v2079_v62 }
 0x20a   :  { %2263 = vmatpush.msra.mxu2 %v2111_v60  ;;  %v1745_v9 = vadd.f32 %v1744_v18, %v1725_v61  ;;  %2282 = vmatpush.msra.mxu3 %v2145_v35  ;;  %v2317_v61 = vld [vmem:[%s3108_s5 + $0xb8] sm:$0xff]  ;;  %v2316_v18 = vld [vmem:[%s3108_s5 + $0xb0] sm:$0xff] }
 0x20b   :  { %2244 = vmatpush.msra.mxu1 %v2077_v63  ;;  %v1764_v22 = vpop.f32.mrf.mxu2 }
 0x20c   :  { %2264 = vmatpush.msra.mxu2 %v2109_v1  ;;  %v1765_v29 = vadd.f32 %v1764_v22, %v1745_v9  ;;  %2283 = vmatpush.msra.mxu3 %v2143_v46  ;;  %v2301_v9 = vld [vmem:[%s3108_s5 + $0x38] sm:$0xff]  ;;  %v2300_v22 = vld [vmem:[%s3108_s5 + $0x30] sm:$0xff] }
 0x20d   :  { %2245 = vmatpush.msra.mxu1 %v2075_v2 }
 0x20e   :  { %2265 = vmatpush.msra.mxu2 %v2107_v17  ;;  %v1784_v30 = vpop.f32.mrf.mxu3  ;;  %2284 = vmatpush.msra.mxu3 %v2141_v43 }
 0x20f   :  { %2246 = vmatpush.msra.mxu1 %v2073_v3 }
 0x210   :  { %2266 = vmatpush.msra.mxu2 %v2105_v49  ;;  %2285 = vmatpush.msra.mxu3 %v2139_v45 }
 0x211   :  { %2247 = vmatpush.msra.mxu1 %v2071_v4  ;;  %v1804_v33 = vpop.f32.mrf.mxu0 }
 0x212   :  { %2267 = vmatpush.msra.mxu2 %v2103_v47  ;;  %2248 = vmatmul.f32.vlgmr.msra.gmra.mxu1 %v2067_v5  ;;  %v1785_v5 = vadd.f32 %v1784_v30, %v1765_v29  ;;  %v2315_v29 = vld [vmem:[%s3108_s5 + $0xa8] sm:$0xff] }
 0x213   :  { %2268 = vmatmul.f32.vlgmr.msra.gmra.mxu2 %v2068_v34  ;;  %v2144_v34 = vld [vmem:[%s3106_s3 + $0x250] sm:$0xff]  ;;  %2286 = vmatpush.msra.mxu3 %v2137_v51  ;;  %v2295_v30 = vld [vmem:[%s3108_s5 + $0x8] sm:$0xff] }
 0x214   :  { %v1805_v39 = vadd.f32 %v1804_v33, %v1785_v5  ;;  %2222 = vmatpush.msra.mxu0 %v2144_v34  ;;  %v1824_v40 = vpop.f32.mrf.mxu1  ;;  %2354 = vmatpush.msrb.mxu1 %v2317_v61  ;;  %v2311_v5 = vld [vmem:[%s3108_s5 + $0x88] sm:$0xff]  ;;  %v2310_v33 = vld [vmem:[%s3108_s5 + $0x80] sm:$0xff]  ;;  %v2166_v34 = vld [vmem:[#allocation8] sm:$0x3]  ;;  %s2608_s5 = smov [#allocation11]  }
 0x215   :  { %v1844_v37 = vpop.f32.mrf.mxu2  ;;  %2287 = vmatpush.msra.mxu3 %v2135_v54  ;;  %v2168_v35 = vperm.slane %v2166_v34, 0  ;;  %s2385_s14 = sshll.u32 %s2608_s5, 4  ;;  %s2386_s14 = int_to_ptr.vmem [resolvable:$true] %s2385_s14 }
 0x216   :  { %2223 = vmatpush.msra.mxu0 %v2142_v38  ;;  %v1825_v41 = vadd.f32 %v1824_v40, %v1805_v39  ;;  %2355 = vmatpush.msrb.mxu1 %v2316_v18 }
 0x218   :  { %2224 = vmatpush.msra.mxu0 %v2140_v42  ;;  %v1845_v16 = vadd.f32 %v1844_v37, %v1825_v41  ;;  %v1864_v48 = vpop.f32.mrf.mxu3  ;;  %2356 = vmatpush.msrb.mxu1 %v2315_v29  ;;  %v2169_v41 = vperm.slane %v2166_v34, 1 }
 0x21a   :  { %2225 = vmatpush.msra.mxu0 %v2138_v44  ;;  %v1865_v53 = vadd.f32 %v1864_v48, %v1845_v16  ;;  %2357 = vmatpush.msrb.mxu1 %v2314_v27 }
 0x21c   :  { %2226 = vmatpush.msra.mxu0 %v2136_v50  ;;  %2358 = vmatpush.msrb.mxu1 %v2313_v25 }
 0x21e   :  { %2227 = vmatpush.msra.mxu0 %v2134_v55  ;;  %2359 = vmatpush.msrb.mxu1 %v2312_v32 }
 0x220   :  { %2326 = vmatpush.msrb.mxu0 %v2309_v13  ;;  %2360 = vmatpush.msrb.mxu1 %v2311_v5 }
 0x222   :  { %2327 = vmatpush.msrb.mxu0 %v2308_v14  ;;  %2361 = vmatpush.msrb.mxu1 %v2310_v33 }
 0x224   :  { %2328 = vmatpush.msrb.mxu0 %v2307_v0 }
 0x226   :  { %2329 = vmatpush.msrb.mxu0 %v2306_v15 }
 0x228   :  { %2330 = vmatpush.msrb.mxu0 %v2305_v19 }
 0x22a   :  { %2331 = vmatpush.msrb.mxu0 %v2304_v56 }
 0x22b   :  { %v1884_v52 = vpop.f32.mrf.mxu0 }
 0x22c   :  { %v1885_v57 = vadd.f32 %v1884_v52, %v1865_v53  ;;  %2332 = vmatpush.msrb.mxu0 %v2303_v20  ;;  %v2408_v53 = vld [vmem:[#allocation10] ss:$0 sm:$0xff] }
 0x22e   :  { %v1904_v58 = vpop.f32.mrf.mxu1  ;;  %2333 = vmatpush.msrb.mxu0 %v2302_v21 }
 0x22f   :  { %v1905_v59 = vadd.f32 %v1904_v58, %v1885_v57 }
 0x230   :  { %2334 = vmatpush.msrb.mxu0 %v2301_v9 }
 0x231   :  { %v1924_v6 = vpop.f32.mrf.mxu2 }
 0x232   :  { %v1925_v62 = vadd.f32 %v1924_v6, %v1905_v59  ;;  %2335 = vmatpush.msrb.mxu0 %v2300_v22 }
 0x234   :  { %v1944_v60 = vpop.f32.mrf.mxu3  ;;  %2336 = vmatpush.msrb.mxu0 %v2299_v36 }
 0x235   :  { %v1945_v1 = vadd.f32 %v1944_v60, %v1925_v62 }
 0x236   :  { %2337 = vmatpush.msrb.mxu0 %v2298_v23 }
 0x238   :  { %2338 = vmatpush.msrb.mxu0 %v2297_v24 }
 0x23a   :  { %2339 = vmatpush.msrb.mxu0 %v2296_v28 }
 0x23c   :  { %2340 = vmatpush.msrb.mxu0 %v2295_v30 }
 0x23e   :  { %2341 = vmatpush.msrb.mxu0 %v2294_v31 }
 0x24d   :  { %v1964_v63 = vpop.f32.mrf.mxu0 }
 0x24e   :  { %v1965_v2 = vadd.f32 %v1964_v63, %v1945_v1 }
 0x250   :  { %v1984_v17 = vpop.f32.mrf.mxu1 }
 0x251   :  { %v1985_v49 = vadd.f32 %v1984_v17, %v1965_v2 }
 0x253   :  { %v2004_v3 = vpop.f32.mrf.mxu2 }
 0x254   :  { %v2005_v4 = vadd.f32 %v2004_v3, %v1985_v49 }
 0x256   :  { %v2024_v47 = vpop.f32.mrf.mxu3 }
 0x257   :  { %v2025_v7 = vadd.f32 %v2024_v47, %v2005_v4 }
 0x26f   :  { %v2044_v8 = vpop.f32.mrf.mxu0 }
 0x270   :  { %v2045_v26 = vadd.f32 %v2044_v8, %v2025_v7 }
 0x271   :  { %v2064_v10 = vpop.f32.mrf.mxu1 }
 0x272   :  { %v2065_v11 = vadd.f32 %v2064_v10, %v2045_v26 }
 0x274   :  { %v2069_v12 = vmax.f32 %v2065_v11, 0.0 }
 0x275   :  { %v2189_v38 = vpop.f32.mrf.mxu2 }
 0x276   :  { %2228 = vmatmul.f32.vlgmr.msra.gmra.mxu0 %v2069_v12  ;;  %2288 = vmatmul.f32.vlgmr.msra.gmra.mxu3 %v2069_v12  ;;  %v2190_v46 = vadd.f32 %v2189_v38, %v2168_v35  ;;  %v2209_v39 = vpop.f32.mrf.mxu3 }
 0x278   :  { %v2210_v40 = vadd.f32 %v2209_v39, %v2190_v46 }
 0x28f   :  { %v2249_v37 = vpop.f32.mrf.mxu1 }
 0x290   :  { %v2250_v44 = vadd.f32 %v2249_v37, %v2169_v41 }
 0x296   :  { %v2269_v16 = vpop.f32.mrf.mxu2 }
 0x297   :  { %v2270_v48 = vadd.f32 %v2269_v16, %v2250_v44 }
 0x2f3   :  { %v2229_v42 = vpop.f32.mrf.mxu0 }
 0x2f4   :  { %v2230_v43 = vadd.f32 %v2229_v42, %v2210_v40 }
 0x2f6   :  { %v2292_v45 = vmax.f32 %v2230_v43, 0.0 }
 0x2f8   :  { %2342 = vmatmul.f32.vlgmr.msrb.gmra.mxu0 %v2292_v45 }
 0x2f9   :  { %v2289_v50 = vpop.f32.mrf.mxu3 }
 0x2fa   :  { %v2290_v51 = vadd.f32 %v2289_v50, %v2270_v48 }
 0x2fc   :  { %v2293_v52 = vmax.f32 %v2290_v51, 0.0 }
 0x2fe   :  { %2399 = vmatmul.msk.f32.vlgmr.msrb.gmra.mxu1 %vm2322_vm0, %v2293_v52 }
 0x375   :  { %v2343_v55 = vpop.f32.mrf.mxu0 }
 0x376   :  { %v2344_v54 = vadd.f32 %v2408_v53, %v2343_v55 }
 0x37b   :  { %v2363_v57 = vpop.f32.mrf.mxu1 }
 0x37c   :  { %v2364_v58 = vadd.f32 %v2363_v57, %v2344_v54 }
 0x37e   :  { %v2367_v6 = vsel %vm2366_vm1, %v2364_v58, -inf }
 0x37f   :  { %2368 = vmax.xlane.f32.xlu0 %v2367_v6 }
 0x3f2   :  { %v2369_v59 = vpop.xlane.xlu0 %2368 }
 0x3f3   :  { %v2370_v62 = vsub.f32 %v2364_v58, %v2369_v59 }
 0x3f5   :  { %v2371_v60 = vmul.f32 1.442695, %v2370_v62 }
 0x3f7   :  { %2409 = vpow2.f32 %v2371_v60 }
 0x3fd   :  { %v2410_v63 = vpop.eup %2409 }
 0x3fe   :  { %v2373_v1 = vsel %vm2366_vm1, %v2410_v63, 0.0 }
 0x3ff   :  { %2374 = vadd.xlane.f32.xlu0 %v2373_v1 }
 0x472   :  { %v2375_v2 = vpop.xlane.xlu0 %2374 }
 0x473   :  { %2411 = vlog2.f32 %v2375_v2 }
 0x479   :  { %v2412_v17 = vpop.eup %2411 }
 0x47a   :  { %v2377_v3 = vmul.f32 0.6931472, %v2412_v17 }
 0x47c   :  { %v2378_v49 = vsub.f32 %v2370_v62, %v2377_v3 }
 0x47e   :  { %2379 = vst.msk [vmem:[#allocation11] sm:$0xff] %vm2366_vm1, %v2378_v49 }
 0x47f   :  { %2390 = dma.vmem_to_hbm [thread:$0]  %s2386_s14, 128, %s2388_s16, [#allocation4]  }
 0x480   :  { %2599 = dma.done.wait [#allocation4], 128  }
 0x481   :  { %2600 = vsyncadd [#allocation4], 4294967168 }
 0x482   :  { %2395 = vsyncpa [#allocation3], 1 }
 0x483   :  { %2396 = vsyncpa [#allocation6], 1 }
 0x484   :  { %2397 = vsyncpa [#allocation9], 1 }
 0x485   :  { %2398 = vsyncpa [#allocation4], 1 }

</bundles_post_ra>
